<compile_context>
chip_gen: v7x
topology: tpu7x:2x2x1
jax: 0.10.0
libtpu: 0.0.40
codegen_flags: <defaults>
</compile_context>

<pallas_src>
import jax
import jax.numpy as jnp
from jax.experimental import pallas as pl
from jax.experimental.pallas import tpu as pltpu

# ---------------------------------------------------------------------------
# Model dimensions
# ---------------------------------------------------------------------------
IH = IW = 32            # input spatial
KH = KW = 3             # conv kernel
OH = OW = 30            # conv output spatial (VALID)
C_OUT = 2               # conv output channels (C_in == 1)
KIN = IH * IW           # 1024: flattened input length
M_CONV = C_OUT * OH * OW            # 1800: flattened conv output (torch order)
M_PAD = 1920                        # 1800 padded to a multiple of 128
N1, N2, N3 = 120, 84, 10            # fc output dims
NPAD = 128                          # lane-aligned padded fc dim
KPAD = 1024                         # padded sliding-window length (v5e path)
XPAD = 1152                         # padded x width for the v5e path (9*128)


# ---------------------------------------------------------------------------
# Fused kernel, MXU path (v6e / v7x): conv-as-matmul + fc1 + fc2 + fc3
# ---------------------------------------------------------------------------
def fused_kernel_mxu(x_ref, wconv_ref, bconv_ref, w1_ref, b1_ref,
                     w2_ref, b2_ref, w3_ref, b3_ref, o_ref):
    # x_ref: (tb, 1024) f32          wconv: (1024, 1920) bf16   bconv: (1, 1920) f32
    # w1: (1920, 128) bf16           w2/w3: (128, 128) bf16     b1/b2/b3: (1, 128) f32
    # o_ref: (tb, 128) f32
    xb = x_ref[...].astype(jnp.bfloat16)

    # conv + bias + relu, expressed as one MXU matmul in torch-flatten order.
    a = jnp.dot(xb, wconv_ref[...], preferred_element_type=jnp.float32) + bconv_ref[...]
    a = jnp.maximum(a, 0.0).astype(jnp.bfloat16)          # (tb, 1920)

    h = jnp.dot(a, w1_ref[...], preferred_element_type=jnp.float32) + b1_ref[...]
    h = jnp.maximum(h, 0.0).astype(jnp.bfloat16)           # (tb, 128)
    h = jnp.dot(h, w2_ref[...], preferred_element_type=jnp.float32) + b2_ref[...]
    h = jnp.maximum(h, 0.0).astype(jnp.bfloat16)
    o_ref[...] = jnp.dot(h, w3_ref[...], preferred_element_type=jnp.float32) + b3_ref[...]


# ---------------------------------------------------------------------------
# Fused kernel, VPU path (v5e): sliding-window conv with one live window/tap
# ---------------------------------------------------------------------------
def fused_kernel_vpu(conv_w_ref, conv_b_ref, x_ref, w1a_ref, w1b_ref, b1_ref,
                     w2_ref, b2_ref, w3_ref, b3_ref, o_ref):
    # conv_w_ref: (18,) f32 SMEM     conv_b_ref: (2,) f32 SMEM
    # x_ref: (tb, 1152) f32          w1a/w1b: (1024, 128) bf16
    # w2/w3: (128, 128) bf16         b1/b2/b3: (1, 128) f32
    xf = x_ref[...]

    acc0 = None
    acc1 = None
    for kh in range(KH):
        for kw in range(KW):
            t = kh * KW + kw
            off = kh * IW + kw
            win = xf[:, off:off + KPAD]          # single live window per tap
            c0 = conv_w_ref[t] * win             # feeds BOTH channel accumulators
            c1 = conv_w_ref[KH * KW + t] * win
            acc0 = c0 if acc0 is None else acc0 + c0
            acc1 = c1 if acc1 is None else acc1 + c1

    a0 = jnp.maximum(acc0 + conv_b_ref[0], 0.0).astype(jnp.bfloat16)  # (tb, 1024)
    a1 = jnp.maximum(acc1 + conv_b_ref[1], 0.0).astype(jnp.bfloat16)

    h = (jnp.dot(a0, w1a_ref[...], preferred_element_type=jnp.float32)
         + jnp.dot(a1, w1b_ref[...], preferred_element_type=jnp.float32)
         + b1_ref[...])
    h = jnp.maximum(h, 0.0).astype(jnp.bfloat16)
    h = jnp.dot(h, w2_ref[...], preferred_element_type=jnp.float32) + b2_ref[...]
    h = jnp.maximum(h, 0.0).astype(jnp.bfloat16)
    o_ref[...] = jnp.dot(h, w3_ref[...], preferred_element_type=jnp.float32) + b3_ref[...]


# ---------------------------------------------------------------------------
# Parameters (torch-equivalent layout) and one-time layout preparation
# ---------------------------------------------------------------------------
def init_params(key):
    """Torch-like fan-in uniform init; weights stored (in_features, out) == torch weight.T."""
    ks = jax.random.split(key, 8)

    def u(k, shape, fan_in):
        bound = 1.0 / (fan_in ** 0.5)
        return jax.random.uniform(k, shape, jnp.float32, -bound, bound)

    return {
        "conv_w": u(ks[0], (C_OUT, 1, KH, KW), KH * KW),
        "conv_b": u(ks[1], (C_OUT,), KH * KW),
        "fc1_w": u(ks[2], (M_CONV, N1), M_CONV),
        "fc1_b": u(ks[3], (N1,), M_CONV),
        "fc2_w": u(ks[4], (N1, N2), N1),
        "fc2_b": u(ks[5], (N2,), N1),
        "fc3_w": u(ks[6], (N2, N3), N2),
        "fc3_b": u(ks[7], (N3,), N2),
    }


def _build_conv_matmul(conv_w, conv_b):
    """Dense conv-as-matmul weight Wconv (1024, 1920) in torch-flatten output
    order: Wconv[(oh+kh)*32 + (ow+kw), oc*900 + oh*30 + ow] = conv_w[oc,0,kh,kw]."""
    oc, oh, ow, kh, kw = jnp.meshgrid(
        jnp.arange(C_OUT), jnp.arange(OH), jnp.arange(OW),
        jnp.arange(KH), jnp.arange(KW), indexing="ij")
    p = (oh + kh) * IW + (ow + kw)               # input flat position (< 1024)
    m = oc * (OH * OW) + oh * OW + ow            # torch-flatten output position (< 1800)
    vals = conv_w[oc, jnp.zeros_like(oc), kh, kw]
    wconv = jnp.zeros((KIN, M_PAD), jnp.float32).at[p.ravel(), m.ravel()].set(vals.ravel())
    bconv = jnp.zeros((M_PAD,), jnp.float32).at[:M_CONV].set(jnp.repeat(conv_b, OH * OW))
    return wconv.astype(jnp.bfloat16), bconv.reshape(1, M_PAD)


def prepare_params(params, use_mxu_conv=True):
    """One-time layout plumbing (not runtime work): pad FC dims to 128 lanes,
    cast matmul weights to bf16, and build either the dense conv-as-matmul
    weight (MXU path) or the wide-flatten fc1 remap (VPU / v5e path)."""
    conv_w = params["conv_w"]
    assert conv_w.shape == (C_OUT, 1, KH, KW), "kernel assumes C_in == 1"

    prepped = {
        "b1": jnp.pad(params["fc1_b"], (0, NPAD - N1)).reshape(1, NPAD),
        "w2": jnp.pad(params["fc2_w"], ((0, NPAD - N1), (0, NPAD - N2))).astype(jnp.bfloat16),
        "b2": jnp.pad(params["fc2_b"], (0, NPAD - N2)).reshape(1, NPAD),
        "w3": jnp.pad(params["fc3_w"], ((0, NPAD - N2), (0, NPAD - N3))).astype(jnp.bfloat16),
        "b3": jnp.pad(params["fc3_b"], (0, NPAD - N3)).reshape(1, NPAD),
    }

    if use_mxu_conv:
        wconv, bconv = _build_conv_matmul(conv_w, params["conv_b"])
        prepped["wconv"] = wconv                                           # (1024, 1920) bf16
        prepped["bconv"] = bconv                                           # (1, 1920) f32
        prepped["w1"] = jnp.pad(
            params["fc1_w"], ((0, M_PAD - M_CONV), (0, NPAD - N1))).astype(jnp.bfloat16)
    else:
        # fc1 rows are in torch flatten order (oc, oh, ow). Remap to q = oh*32+ow
        # (wide layout), zero rows for ow in {30,31}, pad rows 960 -> 1024 and
        # output columns 120 -> 128.
        w1 = params["fc1_w"].reshape(C_OUT, OH, OW, N1)
        w1 = jnp.pad(w1, ((0, 0), (0, 0), (0, IW - OW), (0, NPAD - N1)))
        w1 = w1.reshape(C_OUT, OH * IW, NPAD)
        w1 = jnp.pad(w1, ((0, 0), (0, KPAD - OH * IW), (0, 0)))
        prepped["conv_w_flat"] = conv_w.reshape(-1).astype(jnp.float32)    # (18,)
        prepped["conv_b"] = params["conv_b"].astype(jnp.float32)           # (2,)
        prepped["w1a"] = w1[0].astype(jnp.bfloat16)                        # (1024, 128)
        prepped["w1b"] = w1[1].astype(jnp.bfloat16)
    return prepped


# ---------------------------------------------------------------------------
# Forward pass
# ---------------------------------------------------------------------------
def _round_up(x, m):
    return ((x + m - 1) // m) * m


def _pick_tile(B):
    if B <= 8:
        return B
    # >= 2 batch tiles so ("parallel",) can shard across both v7x TensorCores;
    # harmless on v5e/v6e (1 TC). Cap at 256 rows to stay well inside VMEM.
    return min(256, _round_up(pl.cdiv(B, 2), 8))


def my_model_forward(x_nchw, prepped):
    B = x_nchw.shape[0]
    assert x_nchw.shape[1:] == (1, IH, IW)
    xf = x_nchw.reshape(B, KIN)          # contiguous NCHW with C=1 -> free reshape

    tb = _pick_tile(B)
    grid = (pl.cdiv(B, tb),)
    common = dict(
        out_shape=jax.ShapeDtypeStruct((B, NPAD), jnp.float32),
        grid=grid,
        out_specs=pl.BlockSpec((tb, NPAD), lambda i: (i, 0)),
        compiler_params=pltpu.CompilerParams(dimension_semantics=("parallel",)),
    )

    if "wconv" in prepped:
        # MXU conv-as-matmul path (v6e / v7x)
        out = pl.pallas_call(
            fused_kernel_mxu,
            in_specs=[
                pl.BlockSpec((tb, KIN), lambda i: (i, 0)),          # x batch tile
                pl.BlockSpec((KIN, M_PAD), lambda i: (0, 0)),       # Wconv (VMEM-resident)
                pl.BlockSpec((1, M_PAD), lambda i: (0, 0)),         # bconv
                pl.BlockSpec((M_PAD, NPAD), lambda i: (0, 0)),      # w1
                pl.BlockSpec((1, NPAD), lambda i: (0, 0)),          # b1
                pl.BlockSpec((NPAD, NPAD), lambda i: (0, 0)),       # w2
                pl.BlockSpec((1, NPAD), lambda i: (0, 0)),          # b2
                pl.BlockSpec((NPAD, NPAD), lambda i: (0, 0)),       # w3
                pl.BlockSpec((1, NPAD), lambda i: (0, 0)),          # b3
            ],
            **common,
        )(xf, prepped["wconv"], prepped["bconv"], prepped["w1"], prepped["b1"],
          prepped["w2"], prepped["b2"], prepped["w3"], prepped["b3"])
    else:
        # VPU sliding-window path (v5e); pad x so every window is 1024 lanes.
        xw = jnp.pad(xf, ((0, 0), (0, XPAD - KIN)))
        out = pl.pallas_call(
            fused_kernel_vpu,
            in_specs=[
                pl.BlockSpec(memory_space=pltpu.MemorySpace.SMEM),  # conv weights
                pl.BlockSpec(memory_space=pltpu.MemorySpace.SMEM),  # conv bias
                pl.BlockSpec((tb, XPAD), lambda i: (i, 0)),         # x batch tile
                pl.BlockSpec((KPAD, NPAD), lambda i: (0, 0)),       # w1a (VMEM-resident)
                pl.BlockSpec((KPAD, NPAD), lambda i: (0, 0)),       # w1b
                pl.BlockSpec((1, NPAD), lambda i: (0, 0)),          # b1
                pl.BlockSpec((NPAD, NPAD), lambda i: (0, 0)),       # w2
                pl.BlockSpec((1, NPAD), lambda i: (0, 0)),          # b2
                pl.BlockSpec((NPAD, NPAD), lambda i: (0, 0)),       # w3
                pl.BlockSpec((1, NPAD), lambda i: (0, 0)),          # b3
            ],
            **common,
        )(prepped["conv_w_flat"], prepped["conv_b"], xw,
          prepped["w1a"], prepped["w1b"], prepped["b1"],
          prepped["w2"], prepped["b2"], prepped["w3"], prepped["b3"])

    return out[:, :N3]   # drop the lane padding -> (B, 10)


# Pure-JAX f32 reference (matches the PyTorch module exactly)
def reference_forward(x_nchw, params):
    y = jax.lax.conv_general_dilated(
        x_nchw, params["conv_w"], window_strides=(1, 1), padding="VALID",
        dimension_numbers=("NCHW", "OIHW", "NCHW"))
    y = jnp.maximum(y + params["conv_b"][None, :, None, None], 0.0)
    flat = y.reshape(x_nchw.shape[0], -1)
    h = jnp.maximum(flat @ params["fc1_w"] + params["fc1_b"], 0.0)
    h = jnp.maximum(h @ params["fc2_w"] + params["fc2_b"], 0.0)
    return h @ params["fc3_w"] + params["fc3_b"]


def _is_v5e():
    try:
        kind = jax.devices()[0].device_kind.lower()
        return ("v5 lite" in kind) or ("v5e" in kind) or ("v5litepod" in kind)
    except Exception:
        return False


if __name__ == "__main__":
    key = jax.random.PRNGKey(0)
    k_x, k_p = jax.random.split(key)

    B = 2
    x = jax.random.normal(k_x, (B, 1, IH, IW), jnp.float32)
    params = init_params(k_p)

    # One-time layout plumbing; v5e keeps the VPU conv, everything else uses
    # the MXU conv-as-matmul path.
    prepped = prepare_params(params, use_mxu_conv=not _is_v5e())

    fwd = jax.jit(my_model_forward)
    out = jax.block_until_ready(fwd(x, prepped))
    assert out.shape == (B, N3), out.shape

    # Correctness check vs f32 reference (conv/fc weights run in bf16 inside the
    # kernel with f32 accumulation, so allow a bf16-sized tolerance).
    ref = reference_forward(x, params)
    err = float(jnp.max(jnp.abs(out - ref)))
    assert err < 2.5e-2, f"max abs error vs reference: {err}"

    print("KERNEL_OK")
</pallas_src>

<mosaic_0001>
module attributes {stable_mosaic.version = 11 : i64} {
  func.func @fused_kernel_mxu(%arg0: i32, %arg1: memref<2x1024xf32, #tpu.memory_space<vmem>>, %arg2: memref<1024x1920xbf16, #tpu.memory_space<vmem>>, %arg3: memref<1x1920xf32, #tpu.memory_space<vmem>>, %arg4: memref<1920x128xbf16, #tpu.memory_space<vmem>>, %arg5: memref<1x128xf32, #tpu.memory_space<vmem>>, %arg6: memref<128x128xbf16, #tpu.memory_space<vmem>>, %arg7: memref<1x128xf32, #tpu.memory_space<vmem>>, %arg8: memref<128x128xbf16, #tpu.memory_space<vmem>>, %arg9: memref<1x128xf32, #tpu.memory_space<vmem>>, %arg10: memref<2x128xf32, #tpu.memory_space<vmem>>) attributes {dimension_semantics = [#tpu.dimension_semantics<parallel>], iteration_bounds = array<i64: 1>, scalar_prefetch = 0 : i64, scratch_operands = 0 : i64, tpu.core_type = #tpu.core_type<tc>, window_params = [{transform_indices = @transform_0, window_bounds = array<i64: 2, 1024>}, {pipeline_mode = #tpu.pipeline_mode<synchronous>, transform_indices = @transform_1, window_bounds = array<i64: 1024, 1920>}, {pipeline_mode = #tpu.pipeline_mode<synchronous>, transform_indices = @transform_2, window_bounds = array<i64: 1, 1920>}, {pipeline_mode = #tpu.pipeline_mode<synchronous>, transform_indices = @transform_3, window_bounds = array<i64: 1920, 128>}, {pipeline_mode = #tpu.pipeline_mode<synchronous>, transform_indices = @transform_4, window_bounds = array<i64: 1, 128>}, {pipeline_mode = #tpu.pipeline_mode<synchronous>, transform_indices = @transform_5, window_bounds = array<i64: 128, 128>}, {pipeline_mode = #tpu.pipeline_mode<synchronous>, transform_indices = @transform_6, window_bounds = array<i64: 1, 128>}, {pipeline_mode = #tpu.pipeline_mode<synchronous>, transform_indices = @transform_7, window_bounds = array<i64: 128, 128>}, {pipeline_mode = #tpu.pipeline_mode<synchronous>, transform_indices = @transform_8, window_bounds = array<i64: 1, 128>}, {transform_indices = @transform_9, window_bounds = array<i64: 2, 128>}]} {
    %c0 = arith.constant 0 : index
    %c0_0 = arith.constant 0 : index
    %0 = vector.load %arg1[%c0, %c0_0] : memref<2x1024xf32, #tpu.memory_space<vmem>>, vector<2x1024xf32>
    %1 = arith.truncf %0 : vector<2x1024xf32> to vector<2x1024xbf16>
    %c0_1 = arith.constant 0 : index
    %c0_2 = arith.constant 0 : index
    %2 = vector.load %arg2[%c0_1, %c0_2] : memref<1024x1920xbf16, #tpu.memory_space<vmem>>, vector<1024x1920xbf16>
    %cst = arith.constant dense<0.000000e+00> : vector<2x1920xf32>
    %3 = tpu.matmul %1, %2, %cst {dimension_numbers = #tpu.dot_dimension_numbers<[1], [0], [0], [1], [0, 0, 1, 1], [], []>} : vector<2x1024xbf16>, vector<1024x1920xbf16>, vector<2x1920xf32> -> vector<2x1920xf32>
    %c0_3 = arith.constant 0 : index
    %c0_4 = arith.constant 0 : index
    %4 = vector.load %arg3[%c0_3, %c0_4] : memref<1x1920xf32, #tpu.memory_space<vmem>>, vector<1x1920xf32>
    %5 = vector.broadcast %4 : vector<1x1920xf32> to vector<2x1920xf32>
    %6 = arith.addf %3, %5 : vector<2x1920xf32>
    %cst_5 = arith.constant 0.000000e+00 : f32
    %7 = vector.broadcast %cst_5 : f32 to vector<2x1920xf32>
    %8 = arith.maximumf %6, %7 : vector<2x1920xf32>
    %9 = arith.truncf %8 : vector<2x1920xf32> to vector<2x1920xbf16>
    %c0_6 = arith.constant 0 : index
    %c0_7 = arith.constant 0 : index
    %10 = vector.load %arg4[%c0_6, %c0_7] : memref<1920x128xbf16, #tpu.memory_space<vmem>>, vector<1920x128xbf16>
    %cst_8 = arith.constant dense<0.000000e+00> : vector<2x128xf32>
    %11 = tpu.matmul %9, %10, %cst_8 {dimension_numbers = #tpu.dot_dimension_numbers<[1], [0], [0], [1], [0, 0, 1, 1], [], []>} : vector<2x1920xbf16>, vector<1920x128xbf16>, vector<2x128xf32> -> vector<2x128xf32>
    %c0_9 = arith.constant 0 : index
    %c0_10 = arith.constant 0 : index
    %12 = vector.load %arg5[%c0_9, %c0_10] : memref<1x128xf32, #tpu.memory_space<vmem>>, vector<1x128xf32>
    %13 = vector.broadcast %12 : vector<1x128xf32> to vector<2x128xf32>
    %14 = arith.addf %11, %13 : vector<2x128xf32>
    %cst_11 = arith.constant 0.000000e+00 : f32
    %15 = vector.broadcast %cst_11 : f32 to vector<2x128xf32>
    %16 = arith.maximumf %14, %15 : vector<2x128xf32>
    %17 = arith.truncf %16 : vector<2x128xf32> to vector<2x128xbf16>
    %c0_12 = arith.constant 0 : index
    %c0_13 = arith.constant 0 : index
    %18 = vector.load %arg6[%c0_12, %c0_13] : memref<128x128xbf16, #tpu.memory_space<vmem>>, vector<128x128xbf16>
    %cst_14 = arith.constant dense<0.000000e+00> : vector<2x128xf32>
    %19 = tpu.matmul %17, %18, %cst_14 {dimension_numbers = #tpu.dot_dimension_numbers<[1], [0], [0], [1], [0, 0, 1, 1], [], []>} : vector<2x128xbf16>, vector<128x128xbf16>, vector<2x128xf32> -> vector<2x128xf32>
    %c0_15 = arith.constant 0 : index
    %c0_16 = arith.constant 0 : index
    %20 = vector.load %arg7[%c0_15, %c0_16] : memref<1x128xf32, #tpu.memory_space<vmem>>, vector<1x128xf32>
    %21 = vector.broadcast %20 : vector<1x128xf32> to vector<2x128xf32>
    %22 = arith.addf %19, %21 : vector<2x128xf32>
    %cst_17 = arith.constant 0.000000e+00 : f32
    %23 = vector.broadcast %cst_17 : f32 to vector<2x128xf32>
    %24 = arith.maximumf %22, %23 : vector<2x128xf32>
    %25 = arith.truncf %24 : vector<2x128xf32> to vector<2x128xbf16>
    %c0_18 = arith.constant 0 : index
    %c0_19 = arith.constant 0 : index
    %26 = vector.load %arg8[%c0_18, %c0_19] : memref<128x128xbf16, #tpu.memory_space<vmem>>, vector<128x128xbf16>
    %cst_20 = arith.constant dense<0.000000e+00> : vector<2x128xf32>
    %27 = tpu.matmul %25, %26, %cst_20 {dimension_numbers = #tpu.dot_dimension_numbers<[1], [0], [0], [1], [0, 0, 1, 1], [], []>} : vector<2x128xbf16>, vector<128x128xbf16>, vector<2x128xf32> -> vector<2x128xf32>
    %c0_21 = arith.constant 0 : index
    %c0_22 = arith.constant 0 : index
    %28 = vector.load %arg9[%c0_21, %c0_22] : memref<1x128xf32, #tpu.memory_space<vmem>>, vector<1x128xf32>
    %29 = vector.broadcast %28 : vector<1x128xf32> to vector<2x128xf32>
    %30 = arith.addf %27, %29 : vector<2x128xf32>
    %c0_23 = arith.constant 0 : index
    %c0_24 = arith.constant 0 : index
    %31 = vector.load %arg10[%c0_23, %c0_24] : memref<2x128xf32, #tpu.memory_space<vmem>>, vector<2x128xf32>
    tpu.vector_store %arg10[%c0_23, %c0_24], %30 {strides = array<i32>} : memref<2x128xf32, #tpu.memory_space<vmem>>, vector<2x128xf32>,
    return
  }
  func.func @transform_0(%arg0: i32) -> (i32, i32) {
    %c0_i32 = arith.constant 0 : i32
    %c0_i32_0 = arith.constant 0 : i32
    return %arg0, %c0_i32 : i32, i32
  }
  func.func @transform_1(%arg0: i32) -> (i32, i32) {
    %c0_i32 = arith.constant 0 : i32
    %c0_i32_0 = arith.constant 0 : i32
    %c0_i32_1 = arith.constant 0 : i32
    return %c0_i32, %c0_i32_0 : i32, i32
  }
  func.func @transform_2(%arg0: i32) -> (i32, i32) {
    %c0_i32 = arith.constant 0 : i32
    %c0_i32_0 = arith.constant 0 : i32
    %c0_i32_1 = arith.constant 0 : i32
    return %c0_i32, %c0_i32_0 : i32, i32
  }
  func.func @transform_3(%arg0: i32) -> (i32, i32) {
    %c0_i32 = arith.constant 0 : i32
    %c0_i32_0 = arith.constant 0 : i32
    %c0_i32_1 = arith.constant 0 : i32
    return %c0_i32, %c0_i32_0 : i32, i32
  }
  func.func @transform_4(%arg0: i32) -> (i32, i32) {
    %c0_i32 = arith.constant 0 : i32
    %c0_i32_0 = arith.constant 0 : i32
    %c0_i32_1 = arith.constant 0 : i32
    return %c0_i32, %c0_i32_0 : i32, i32
  }
  func.func @transform_5(%arg0: i32) -> (i32, i32) {
    %c0_i32 = arith.constant 0 : i32
    %c0_i32_0 = arith.constant 0 : i32
    %c0_i32_1 = arith.constant 0 : i32
    return %c0_i32, %c0_i32_0 : i32, i32
  }
  func.func @transform_6(%arg0: i32) -> (i32, i32) {
    %c0_i32 = arith.constant 0 : i32
    %c0_i32_0 = arith.constant 0 : i32
    %c0_i32_1 = arith.constant 0 : i32
    return %c0_i32, %c0_i32_0 : i32, i32
  }
  func.func @transform_7(%arg0: i32) -> (i32, i32) {
    %c0_i32 = arith.constant 0 : i32
    %c0_i32_0 = arith.constant 0 : i32
    %c0_i32_1 = arith.constant 0 : i32
    return %c0_i32, %c0_i32_0 : i32, i32
  }
  func.func @transform_8(%arg0: i32) -> (i32, i32) {
    %c0_i32 = arith.constant 0 : i32
    %c0_i32_0 = arith.constant 0 : i32
    %c0_i32_1 = arith.constant 0 : i32
    return %c0_i32, %c0_i32_0 : i32, i32
  }
  func.func @transform_9(%arg0: i32) -> (i32, i32) {
    %c0_i32 = arith.constant 0 : i32
    %c0_i32_0 = arith.constant 0 : i32
    return %arg0, %c0_i32 : i32, i32
  }
}

</mosaic_0001>

<bundles_post_ra>
// kernel: my_model_forward.1
= control target key start
LH: loop header
LB: loop body
LE: loop exit
PB: predicated region body
PF: predicated region fallthrough
CT: control target
= control target key end

     0   :  { %14 = vsyncpa [#allocation3], 0  ;;  %s12757_s0 = inlined_call_operand.vmem [shape: f32[2,1024], index: 0, kind: input, shape index: {}]   ;;  %s12758_s1 = inlined_call_operand.hbm [shape: bf16[1024,1920], index: 1, kind: input, shape index: {}]   ;;  %s12759_s2 = inlined_call_operand.hbm [shape: f32[1,1920], index: 2, kind: input, shape index: {}]   ;;  %s12760_s3 = inlined_call_operand.hbm [shape: bf16[1920,128], index: 3, kind: input, shape index: {}]   ;;  %s12761_s4 = inlined_call_operand.hbm [shape: f32[1,128], index: 4, kind: input, shape index: {}]   ;;  %s12762_s5 = inlined_call_operand.hbm [shape: bf16[128,128], index: 5, kind: input, shape index: {}]   ;;  %s12763_s6 = inlined_call_operand.hbm [shape: f32[1,128], index: 6, kind: input, shape index: {}]   ;;  %s12764_s7 = inlined_call_operand.hbm [shape: bf16[128,128], index: 7, kind: input, shape index: {}]   ;;  %s12765_s8 = inlined_call_operand.hbm [shape: f32[1,128], index: 8, kind: input, shape index: {}]   ;;  %s12766_s9 = inlined_call_operand.hbm [shape: f32[2,128], index: 9, kind: output, shape index: {}]  }
   0x1   :  { %15 = vsyncpa [#allocation6], 0 }
   0x2   :  { %16 = vsyncpa [#allocation9], 0 }
   0x3   :  { %17 = vsyncpa [#allocation12], 0 }
   0x4   :  { %18 = vsyncpa [#allocation15], 0 }
   0x5   :  { %19 = vsyncpa [#allocation4], 0  ;;  %s12325_s30 = smov [#allocation5]   ;;  %s12326_s11 = smov [#allocation8]  }
   0x6   :  { %s40_s10 = sshll.u32 %s12325_s30, 4  ;;  %s62_s12 = sshll.u32 %s12326_s11, 4  ;;  %s41_s10 = int_to_ptr.vmem [resolvable:$true] %s40_s10  ;;  %s63_s12 = int_to_ptr.vmem [resolvable:$true] %s62_s12 }
   0x7   :  { %s12115_s15 = scalar_lea.hbm %s12759_s2, 240 }
   0x8   :  { %p12116_p0 = scmp.ne.s32.totalorder %s12759_s2, %s12115_s15  ;;  %p12119_p1 = scmp.lt.u32.totalorder %s12115_s15, %s12759_s2 }
   0xa   :  { %p12121_p2 = pnand %p12119_p1, %p12116_p0 }
   0xc   :  { %12124 = shalt.err (!%p12121_p2)
}
   0xd   :  { %s12125_s20 = scalar_lea.vmem %s41_s10, 240  ;;  %s12129_s21 = scalar_lea.vmem %s41_s10, 256 }
   0xe   :  { %p12126_p3 = scmp.ne.s32.totalorder %s41_s10, %s12125_s20  ;;  %p12130_p4 = scmp.lt.s32.totalorder %s41_s10, %s41_s10 }
   0xf   :  { %p12131_p5 = scmp.lt.s32.totalorder %s12129_s21, %s12125_s20 }
  0x11   :  { %p12132_p6 = por %p12131_p5, %p12130_p4 }
  0x13   :  { %p12133_p7 = pnand %p12132_p6, %p12126_p3 }
  0x15   :  { %12136 = shalt.err (!%p12133_p7)
}
  0x16   :  { %43 = dma.hbm_to_vmem [thread:$0]  %s12759_s2, 240, %s41_s10, [#allocation6]  }
  0x17   :  { %s12137_s26 = scalar_lea.hbm %s12761_s4, 16 }
  0x18   :  { %p12138_p8 = scmp.ne.s32.totalorder %s12761_s4, %s12137_s26  ;;  %p12141_p9 = scmp.lt.u32.totalorder %s12137_s26, %s12761_s4 }
  0x1a   :  { %p12143_p10 = pnand %p12141_p9, %p12138_p8 }
  0x1c   :  { %12146 = shalt.err (!%p12143_p10)
}
  0x1d   :  { %s12147_s11 = scalar_lea.vmem %s63_s12, 16  ;;  %s12151_s13 = scalar_lea.vmem %s63_s12, 32 }
  0x1e   :  { %p12148_p11 = scmp.ne.s32.totalorder %s63_s12, %s12147_s11  ;;  %p12152_p12 = scmp.lt.s32.totalorder %s63_s12, %s63_s12 }
  0x1f   :  { %p12153_p13 = scmp.lt.s32.totalorder %s12151_s13, %s12147_s11 }
  0x21   :  { %p12154_p0 = por %p12153_p13, %p12152_p12 }
  0x23   :  { %p12155_p1 = pnand %p12154_p0, %p12148_p11 }
  0x25   :  { %12158 = shalt.err (!%p12155_p1)
}
  0x26   :  { %65 = dma.hbm_to_vmem [thread:$0]  %s12761_s4, 16, %s63_s12, [#allocation9]  }
  0x27   :  { %s12327_s14 = smov [#allocation11]   ;;  %s12328_s16 = smov [#allocation2]  }
  0x28   :  { %s84_s15 = sshll.u32 %s12327_s14, 4  ;;  %s27_s17 = sshll.u32 %s12328_s16, 4  ;;  %s85_s15 = int_to_ptr.vmem [resolvable:$true] %s84_s15  ;;  %s12415_s17 = int_to_ptr.vmem [resolvable:$true] %s27_s17 }
  0x29   :  { %s12159_s20 = scalar_lea.hbm %s12763_s6, 16 }
  0x2a   :  { %p12160_p2 = scmp.ne.s32.totalorder %s12763_s6, %s12159_s20  ;;  %p12163_p3 = scmp.lt.u32.totalorder %s12159_s20, %s12763_s6 }
  0x2c   :  { %p12165_p4 = pnand %p12163_p3, %p12160_p2 }
  0x2e   :  { %12168 = shalt.err (!%p12165_p4)
}
  0x2f   :  { %s12169_s4 = scalar_lea.vmem %s85_s15, 16  ;;  %s12173_s12 = scalar_lea.vmem %s85_s15, 32 }
  0x30   :  { %p12170_p5 = scmp.ne.s32.totalorder %s85_s15, %s12169_s4  ;;  %p12174_p6 = scmp.lt.s32.totalorder %s85_s15, %s85_s15 }
  0x31   :  { %p12175_p7 = scmp.lt.s32.totalorder %s12173_s12, %s12169_s4 }
  0x33   :  { %p12176_p8 = por %p12175_p7, %p12174_p6 }
  0x35   :  { %p12177_p9 = pnand %p12176_p8, %p12170_p5 }
  0x37   :  { %12180 = shalt.err (!%p12177_p9)
}
  0x38   :  { %87 = dma.hbm_to_vmem [thread:$0]  %s12763_s6, 16, %s85_s15, [#allocation12]  }
  0x39   :  { %s12181_s29 = scalar_lea.hbm %s12758_s1, 122880 }
  0x3a   :  { %p12182_p10 = scmp.ne.s32.totalorder %s12758_s1, %s12181_s29  ;;  %p12185_p11 = scmp.lt.u32.totalorder %s12181_s29, %s12758_s1 }
  0x3c   :  { %p12187_p12 = pnand %p12185_p11, %p12182_p10 }
  0x3e   :  { %12190 = shalt.err (!%p12187_p12)
}
  0x3f   :  { %s12191_s10 = scalar_lea.vmem %s12415_s17, 122880  ;;  %p12196_p0 = scmp.lt.s32.totalorder %s12415_s17, %s12415_s17 }
  0x40   :  { %p12192_p13 = scmp.ne.s32.totalorder %s12415_s17, %s12191_s10  ;;  %p12197_p1 = scmp.lt.s32.totalorder %s12191_s10, %s12191_s10 }
  0x42   :  { %p12198_p2 = por %p12197_p1, %p12196_p0 }
  0x44   :  { %p12199_p3 = pnand %p12198_p2, %p12192_p13 }
  0x46   :  { %12202 = shalt.err (!%p12199_p3)
}
  0x47   :  { %s12329_s6 = smov 960   ;;  %s12330_s14 = smov 60  }
  0x48   :  { %33 = dma.hbm_to_vmem [thread:$0]  %s12758_s1, 122880, %s12415_s17, [#allocation3], %s12329_s6, %s12329_s6, %s12330_s14  }
  0x49   :  { %s12331_s18 = smov [#allocation7]   ;;  %s12203_s22 = scalar_lea.hbm %s12760_s3, 15360 }
  0x4a   :  { %s49_s19 = sshll.u32 %s12331_s18, 4  ;;  %p12204_p4 = scmp.ne.s32.totalorder %s12760_s3, %s12203_s22  ;;  %s50_s19 = int_to_ptr.vmem [resolvable:$true] %s49_s19 }
  0x4b   :  { %p12207_p5 = scmp.lt.u32.totalorder %s12203_s22, %s12760_s3 }
  0x4d   :  { %p12209_p6 = pnand %p12207_p5, %p12204_p4 }
  0x4f   :  { %12212 = shalt.err (!%p12209_p6)
}
  0x50   :  { %s12213_s25 = scalar_lea.vmem %s50_s19, 15360  ;;  %p12218_p8 = scmp.lt.s32.totalorder %s50_s19, %s50_s19 }
  0x51   :  { %p12214_p7 = scmp.ne.s32.totalorder %s50_s19, %s12213_s25  ;;  %p12219_p9 = scmp.lt.s32.totalorder %s12213_s25, %s12213_s25 }
  0x53   :  { %p12220_p10 = por %p12219_p9, %p12218_p8 }
  0x55   :  { %p12221_p11 = pnand %p12220_p10, %p12214_p7 }
  0x57   :  { %12224 = shalt.err (!%p12221_p11)
}
  0x58   :  { %s12332_s1 = smov 64   ;;  %s12333_s17 = smov 4  }
  0x59   :  { %55 = dma.hbm_to_vmem [thread:$0]  %s12760_s3, 15360, %s50_s19, [#allocation6], %s12332_s1, %s12332_s1, %s12333_s17  }
  0x5a   :  { %s12334_s28 = smov [#allocation10]   ;;  %s12335_s30 = smov [#allocation13]  }
  0x5b   :  { %s71_s29 = sshll.u32 %s12334_s28, 4  ;;  %s93_s11 = sshll.u32 %s12335_s30, 4  ;;  %s72_s29 = int_to_ptr.vmem [resolvable:$true] %s71_s29  ;;  %s94_s11 = int_to_ptr.vmem [resolvable:$true] %s93_s11 }
  0x5c   :  { %s12225_s10 = scalar_lea.hbm %s12762_s5, 1024 }
  0x5d   :  { %p12226_p12 = scmp.ne.s32.totalorder %s12762_s5, %s12225_s10  ;;  %p12229_p13 = scmp.lt.u32.totalorder %s12225_s10, %s12762_s5 }
  0x5f   :  { %p12231_p0 = pnand %p12229_p13, %p12226_p12 }
  0x61   :  { %12234 = shalt.err (!%p12231_p0)
}
  0x62   :  { %s12235_s3 = scalar_lea.vmem %s72_s29, 1024  ;;  %p12240_p2 = scmp.lt.s32.totalorder %s72_s29, %s72_s29 }
  0x63   :  { %p12236_p1 = scmp.ne.s32.totalorder %s72_s29, %s12235_s3  ;;  %p12241_p3 = scmp.lt.s32.totalorder %s12235_s3, %s12235_s3 }
  0x65   :  { %p12242_p4 = por %p12241_p3, %p12240_p2 }
  0x67   :  { %p12243_p5 = pnand %p12242_p4, %p12236_p1 }
  0x69   :  { %12246 = shalt.err (!%p12243_p5)
}
  0x6a   :  { %77 = dma.hbm_to_vmem [thread:$0]  %s12762_s5, 1024, %s72_s29, [#allocation9], %s12332_s1, %s12332_s1, %s12333_s17  }
  0x6b   :  { %s12247_s22 = scalar_lea.hbm %s12764_s7, 1024 }
  0x6c   :  { %p12248_p6 = scmp.ne.s32.totalorder %s12764_s7, %s12247_s22  ;;  %p12251_p7 = scmp.lt.u32.totalorder %s12247_s22, %s12764_s7 }
  0x6e   :  { %p12253_p8 = pnand %p12251_p7, %p12248_p6 }
  0x70   :  { %12256 = shalt.err (!%p12253_p8)
}
  0x71   :  { %s12257_s25 = scalar_lea.vmem %s94_s11, 1024  ;;  %p12262_p10 = scmp.lt.s32.totalorder %s94_s11, %s94_s11 }
  0x72   :  { %p12258_p9 = scmp.ne.s32.totalorder %s94_s11, %s12257_s25  ;;  %p12263_p11 = scmp.lt.s32.totalorder %s12257_s25, %s12257_s25 }
  0x74   :  { %p12264_p12 = por %p12263_p11, %p12262_p10 }
  0x76   :  { %p12265_p13 = pnand %p12264_p12, %p12258_p9 }
  0x78   :  { %12268 = shalt.err (!%p12265_p13)
}
  0x79   :  { %99 = dma.hbm_to_vmem [thread:$0]  %s12764_s7, 1024, %s94_s11, [#allocation12], %s12332_s1, %s12332_s1, %s12333_s17  }
  0x7a   :  { %s12336_s27 = smov [#allocation14]   ;;  %s12269_s13 = scalar_lea.hbm %s12765_s8, 16 }
  0x7b   :  { %s106_s28 = sshll.u32 %s12336_s27, 4  ;;  %p12270_p0 = scmp.ne.s32.totalorder %s12765_s8, %s12269_s13  ;;  %s107_s28 = int_to_ptr.vmem [resolvable:$true] %s106_s28 }
  0x7c   :  { %p12273_p1 = scmp.lt.u32.totalorder %s12269_s13, %s12765_s8 }
  0x7e   :  { %p12275_p2 = pnand %p12273_p1, %p12270_p0 }
  0x80   :  { %12278 = shalt.err (!%p12275_p2)
}
  0x81   :  { %s12279_s15 = scalar_lea.vmem %s107_s28, 16  ;;  %s12283_s7 = scalar_lea.vmem %s107_s28, 32 }
  0x82   :  { %p12280_p3 = scmp.ne.s32.totalorder %s107_s28, %s12279_s15  ;;  %p12284_p4 = scmp.lt.s32.totalorder %s107_s28, %s107_s28 }
  0x83   :  { %p12285_p5 = scmp.lt.s32.totalorder %s12283_s7, %s12279_s15 }
  0x85   :  { %p12286_p6 = por %p12285_p5, %p12284_p4 }
  0x87   :  { %p12287_p7 = pnand %p12286_p6, %p12280_p3 }
  0x89   :  { %12290 = shalt.err (!%p12287_p7)
}
  0x8a   :  { %109 = dma.hbm_to_vmem [thread:$0]  %s12765_s8, 16, %s107_s28, [#allocation15]  }
  0x8b   :  { %12313 = dma.done.wait [#allocation3], 122880  }
  0x8c   :  { %12314 = vsyncadd [#allocation3], 4294844416 }
  0x8d   :  { %12315 = dma.done.wait [#allocation6], 15600  }
  0x8e   :  { %12316 = vsyncadd [#allocation6], 4294951696 }
  0x8f   :  { %12317 = dma.done.wait [#allocation9], 1040  }
  0x90   :  { %12318 = vsyncadd [#allocation9], 4294966256 }
  0x91   :  { %12319 = dma.done.wait [#allocation12], 1040  }
  0x92   :  { %12320 = vsyncadd [#allocation12], 4294966256 }
  0x93   :  { %12321 = dma.done.wait [#allocation15], 16  }
  0x94   :  { %12322 = vsyncadd [#allocation15], 4294967280  ;;  %v10569_v0 = vld [vmem:[#allocation2 + $0x4] ss:$60 sps:$4 sm:$0xff]   ;;  %v10571_v1 = vld [vmem:[#allocation2 + $0xc] ss:$60 sps:$4 sm:$0xff]   ;;  %v143_v38 = vlaneseq }
  0x95   :  { %6156 = vmatprep.subr.bf16.mxu0 %v10569_v0  ;;  %v10573_v2 = vld [vmem:[#allocation2] ss:$60 sps:$4 sm:$0xff]   ;;  %v10574_v3 = vld [vmem:[#allocation2 + $0x8] ss:$60 sps:$4 sm:$0xff]   ;;  %6320 = vmatprep.subr.bf16.mxu1 %v10571_v1  ;;  %v10579_v6 = vld [vmem:[#allocation2 + $0x78] ss:$60 sps:$4 sm:$0xff]  }
  0x96   :  { %v10575_v4 = vld [vmem:[#allocation2 + $0x7c] ss:$60 sps:$4 sm:$0xff]   ;;  %6157 = vmatpush1.bf16.msra.mxu0 %v10573_v2  ;;  %6321 = vmatpush1.bf16.msra.mxu1 %v10574_v3  ;;  %v10577_v5 = vld [vmem:[#allocation2 + $0x84] ss:$60 sps:$4 sm:$0xff]   ;;  %v10581_v8 = vld [vmem:[#allocation2 + $0xf4] ss:$60 sps:$4 sm:$0xff]  }
  0x97   :  { %6158 = vmatprep.subr.bf16.mxu0 %v10575_v4  ;;  %v10580_v7 = vld [vmem:[#allocation2 + $0x80] ss:$60 sps:$4 sm:$0xff]   ;;  %6322 = vmatprep.subr.bf16.mxu1 %v10577_v5  ;;  %v10585_v10 = vld [vmem:[#allocation2 + $0xf0] ss:$60 sps:$4 sm:$0xff]   ;;  %v10586_v11 = vld [vmem:[#allocation2 + $0xf8] ss:$60 sps:$4 sm:$0xff]  }
  0x98   :  { %v10583_v9 = vld [vmem:[#allocation2 + $0xfc] ss:$60 sps:$4 sm:$0xff]   ;;  %v10587_v12 = vld [vmem:[#allocation2 + $0x16c] ss:$60 sps:$4 sm:$0xff]   ;;  %v10589_v13 = vld [vmem:[#allocation2 + $0x174] ss:$60 sps:$4 sm:$0xff]  }
  0x99   :  { %v10591_v14 = vld [vmem:[#allocation2 + $0x168] ss:$60 sps:$4 sm:$0xff]   ;;  %v10592_v15 = vld [vmem:[#allocation2 + $0x170] ss:$60 sps:$4 sm:$0xff]   ;;  %v10597_v18 = vld [vmem:[#allocation2 + $0x1e0] ss:$60 sps:$4 sm:$0xff]  }
  0x9a   :  { %6159 = vmatpush1.bf16.msra.mxu0 %v10579_v6  ;;  %6323 = vmatpush1.bf16.msra.mxu1 %v10580_v7  ;;  %v10593_v16 = vld [vmem:[#allocation2 + $0x1e4] ss:$60 sps:$4 sm:$0xff]   ;;  %v10595_v17 = vld [vmem:[#allocation2 + $0x1ec] ss:$60 sps:$4 sm:$0xff]   ;;  %v10599_v20 = vld [vmem:[#allocation2 + $0x25c] ss:$60 sps:$4 sm:$0xff]  }
  0x9b   :  { %6160 = vmatprep.subr.bf16.mxu0 %v10581_v8  ;;  %6324 = vmatprep.subr.bf16.mxu1 %v10583_v9  ;;  %v10598_v19 = vld [vmem:[#allocation2 + $0x1e8] ss:$60 sps:$4 sm:$0xff]   ;;  %v10603_v22 = vld [vmem:[#allocation2 + $0x258] ss:$60 sps:$4 sm:$0xff]   ;;  %v10604_v23 = vld [vmem:[#allocation2 + $0x260] ss:$60 sps:$4 sm:$0xff]  }
  0x9c   :  { %v10601_v21 = vld [vmem:[#allocation2 + $0x264] ss:$60 sps:$4 sm:$0xff]   ;;  %v10605_v24 = vld [vmem:[#allocation2 + $0x2d4] ss:$60 sps:$4 sm:$0xff]   ;;  %v10607_v25 = vld [vmem:[#allocation2 + $0x2dc] ss:$60 sps:$4 sm:$0xff]  }
  0x9d   :  { %v10609_v26 = vld [vmem:[#allocation2 + $0x2d0] ss:$60 sps:$4 sm:$0xff]   ;;  %v10610_v27 = vld [vmem:[#allocation2 + $0x2d8] ss:$60 sps:$4 sm:$0xff]   ;;  %v10615_v30 = vld [vmem:[#allocation2 + $0x348] ss:$60 sps:$4 sm:$0xff]  }
  0x9e   :  { %6161 = vmatpush1.bf16.msra.mxu0 %v10585_v10  ;;  %6325 = vmatpush1.bf16.msra.mxu1 %v10586_v11  ;;  %v10611_v28 = vld [vmem:[#allocation2 + $0x34c] ss:$60 sps:$4 sm:$0xff]   ;;  %v10613_v29 = vld [vmem:[#allocation2 + $0x354] ss:$60 sps:$4 sm:$0xff]   ;;  %v10617_v32 = vld [vmem:[#allocation2 + $0x3c4] ss:$60 sps:$4 sm:$0xff]  }
  0x9f   :  { %6162 = vmatprep.subr.bf16.mxu0 %v10587_v12  ;;  %6326 = vmatprep.subr.bf16.mxu1 %v10589_v13  ;;  %v10616_v31 = vld [vmem:[#allocation2 + $0x350] ss:$60 sps:$4 sm:$0xff]   ;;  %v10621_v34 = vld [vmem:[#allocation2 + $0x3c0] ss:$60 sps:$4 sm:$0xff]   ;;  %v10622_v35 = vld [vmem:[#allocation2 + $0x3c8] ss:$60 sps:$4 sm:$0xff]  }
  0xa0   :  { %v10619_v33 = vld [vmem:[#allocation2 + $0x3cc] ss:$60 sps:$4 sm:$0xff]   ;;  %v12337_v36 = vmov 1983009808   ;;  %v10623_v39 = vld [vmem:[#allocation2 + $0x43c] ss:$60 sps:$4 sm:$0xff]  }
  0xa1   :  { %v141_v37 = vunpack.c.l.s4 %v12337_v36  ;;  %v10625_v40 = vld [vmem:[#allocation2 + $0x444] ss:$60 sps:$4 sm:$0xff]   ;;  %v10627_v41 = vld [vmem:[#allocation2 + $0x438] ss:$60 sps:$4 sm:$0xff]   ;;  %v12503_v43 = vshrl.u32 %v143_v38, 7  ;;  %vm12339_vm0 = vmmov 0  }
  0xa2   :  { %6163 = vmatpush1.bf16.msra.mxu0 %v10591_v14  ;;  %6327 = vmatpush1.bf16.msra.mxu1 %v10592_v15  ;;  %v10628_v44 = vld [vmem:[#allocation2 + $0x440] ss:$60 sps:$4 sm:$0xff]   ;;  %v10629_v45 = vld [vmem:[#allocation2 + $0x4b4] ss:$60 sps:$4 sm:$0xff]   ;;  %v10635_v50 = vld [vmem:[#allocation2 + $0x52c] ss:$60 sps:$4 sm:$0xff]  }
  0xa3   :  { %6164 = vmatprep.subr.bf16.mxu0 %v10593_v16  ;;  %6328 = vmatprep.subr.bf16.mxu1 %v10595_v17  ;;  %v142_v42 = vunpack.c.0.s8 %v141_v37  ;;  %v10631_v46 = vld [vmem:[#allocation2 + $0x4bc] ss:$60 sps:$4 sm:$0xff]   ;;  %v10633_v47 = vld [vmem:[#allocation2 + $0x4b0] ss:$60 sps:$4 sm:$0xff]   ;;  %v135_v52 = vld [vmem:[%s12757_s0] sm:$0xff] }
  0xa4   :  { %v10634_v48 = vld [vmem:[#allocation2 + $0x4b8] ss:$60 sps:$4 sm:$0xff]   ;;  %v10639_v53 = vld [vmem:[#allocation2 + $0x528] ss:$60 sps:$4 sm:$0xff]   ;;  %v10640_v55 = vld [vmem:[#allocation2 + $0x530] ss:$60 sps:$4 sm:$0xff]   ;;  %v139_v4 = vcombine.high %v135_v52, %v135_v52 }
  0xa5   :  { %v12506_v49 = vsub.s32 %v142_v42, %v12503_v43  ;;  %v10637_v51 = vld [vmem:[#allocation2 + $0x534] ss:$60 sps:$4 sm:$0xff]   ;;  %v10641_v56 = vld [vmem:[#allocation2 + $0x5a4] ss:$60 sps:$4 sm:$0xff]   ;;  %v10643_v57 = vld [vmem:[#allocation2 + $0x5ac] ss:$60 sps:$4 sm:$0xff]  }
  0xa6   :  { %6165 = vmatpush1.bf16.msra.mxu0 %v10597_v18  ;;  %6329 = vmatpush1.bf16.msra.mxu1 %v10598_v19  ;;  %v10645_v59 = vld [vmem:[#allocation2 + $0x5a0] ss:$60 sps:$4 sm:$0xff]   ;;  %v10646_v61 = vld [vmem:[#allocation2 + $0x5a8] ss:$60 sps:$4 sm:$0xff]   ;;  %v10651_v0 = vld [vmem:[#allocation2 + $0x618] ss:$60 sps:$4 sm:$0xff]  }
  0xa7   :  { %6166 = vmatprep.subr.bf16.mxu0 %v10599_v20  ;;  %6330 = vmatprep.subr.bf16.mxu1 %v10601_v21  ;;  %v146_v54 = vrot.slane %v135_v52, %v12506_v49  ;;  %v10647_v62 = vld [vmem:[#allocation2 + $0x61c] ss:$60 sps:$4 sm:$0xff]   ;;  %v10649_v63 = vld [vmem:[#allocation2 + $0x624] ss:$60 sps:$4 sm:$0xff]   ;;  %v10653_v2 = vld [vmem:[#allocation2 + $0x694] ss:$60 sps:$4 sm:$0xff]   ;;  %v12517_v9 = vrot.slane %v139_v4, %v12506_v49 }
  0xa8   :  { %v10652_v1 = vld [vmem:[#allocation2 + $0x620] ss:$60 sps:$4 sm:$0xff]   ;;  %v10657_v5 = vld [vmem:[#allocation2 + $0x690] ss:$60 sps:$4 sm:$0xff]   ;;  %v10658_v6 = vld [vmem:[#allocation2 + $0x698] ss:$60 sps:$4 sm:$0xff]  }
  0xa9   :  { %v154_v58 = vcombine.high %v146_v54, %v146_v54  ;;  %v10655_v3 = vld [vmem:[#allocation2 + $0x69c] ss:$60 sps:$4 sm:$0xff]   ;;  %v10659_v7 = vld [vmem:[#allocation2 + $0x70c] ss:$60 sps:$4 sm:$0xff]   ;;  %v10661_v8 = vld [vmem:[#allocation2 + $0x714] ss:$60 sps:$4 sm:$0xff]   ;;  %v155_v14 = vcombine.high %v12517_v9, %v12517_v9  ;;  %v12521_v16 = vpack.c.bf16 %v146_v54, %v146_v54 }
  0xaa   :  { %6167 = vmatpush1.bf16.msra.mxu0 %v10603_v22  ;;  %6331 = vmatpush1.bf16.msra.mxu1 %v10604_v23  ;;  %v10663_v10 = vld [vmem:[#allocation2 + $0x708] ss:$60 sps:$4 sm:$0xff]   ;;  %v10664_v11 = vld [vmem:[#allocation2 + $0x710] ss:$60 sps:$4 sm:$0xff]   ;;  %v10665_v15 = vld [vmem:[#allocation2 + $0x780] ss:$60 sps:$4 sm:$0xff]  }
  0xab   :  { %6168 = vmatprep.subr.bf16.mxu0 %v10605_v24  ;;  %6332 = vmatprep.subr.bf16.mxu1 %v10607_v25  ;;  %v12512_v60 = vpack.c.bf16 %v154_v58, %v154_v58  ;;  %v10667_v12 = vld [vmem:[#allocation2 + $0x784] ss:$60 sps:$4 sm:$0xff]   ;;  %v10670_v13 = vld [vmem:[#allocation2 + $0x78c] ss:$60 sps:$4 sm:$0xff]   ;;  %v10673_v18 = vld [vmem:[#allocation2 + $0x7fc] ss:$60 sps:$4 sm:$0xff]   ;;  %v12523_v20 = vpack.c.bf16 %v155_v14, %v155_v14 }
  0xac   :  { %v10668_v17 = vld [vmem:[#allocation2 + $0x788] ss:$60 sps:$4 sm:$0xff]   ;;  %v10671_v21 = vld [vmem:[#allocation2 + $0x7f8] ss:$60 sps:$4 sm:$0xff]   ;;  %v10674_v22 = vld [vmem:[#allocation2 + $0x800] ss:$60 sps:$4 sm:$0xff]  }
  0xad   :  { %6188 = vmatprep.mubr.bf16.mxu0 %v12512_v60  ;;  %6352 = vmatprep.mubr.bf16.mxu1 %v12512_v60  ;;  %v10676_v19 = vld [vmem:[#allocation2 + $0x804] ss:$60 sps:$4 sm:$0xff]   ;;  %v10679_v23 = vld [vmem:[#allocation2 + $0x874] ss:$60 sps:$4 sm:$0xff]   ;;  %v10682_v24 = vld [vmem:[#allocation2 + $0x87c] ss:$60 sps:$4 sm:$0xff]  }
  0xae   :  { %6169 = vmatpush1.bf16.msra.mxu0 %v10609_v26  ;;  %6333 = vmatpush1.bf16.msra.mxu1 %v10610_v27  ;;  %v10677_v25 = vld [vmem:[#allocation2 + $0x870] ss:$60 sps:$4 sm:$0xff]   ;;  %v10680_v26 = vld [vmem:[#allocation2 + $0x878] ss:$60 sps:$4 sm:$0xff]   ;;  %v10700_v36 = vld [vmem:[#allocation2 + $0x9e4] ss:$60 sps:$4 sm:$0xff]  }
  0xaf   :  { %6170 = vmatprep.subr.bf16.mxu0 %v10611_v28  ;;  %6334 = vmatprep.subr.bf16.mxu1 %v10613_v29  ;;  %v10685_v27 = vld [vmem:[#allocation2 + $0x8ec] ss:$60 sps:$4 sm:$0xff]   ;;  %v10688_v28 = vld [vmem:[#allocation2 + $0x8f4] ss:$60 sps:$4 sm:$0xff]   ;;  %v10698_v38 = vld [vmem:[#allocation2 + $0x9e0] ss:$60 sps:$4 sm:$0xff]  }
  0xb0   :  { %v10683_v29 = vld [vmem:[#allocation2 + $0x8e8] ss:$60 sps:$4 sm:$0xff]   ;;  %v10695_v37 = vld [vmem:[#allocation2 + $0x9d8] ss:$60 sps:$4 sm:$0xff]   ;;  %v10737_v4 = vld [vmem:[#allocation2 + $0xd20] ss:$60 sps:$4 sm:$0xff]  }
  0xb1   :  { %v10704_v42 = vld [vmem:[#allocation2 + $0xa58] ss:$60 sps:$4 sm:$0xff]   ;;  %v10716_v52 = vld [vmem:[#allocation2 + $0xb48] ss:$60 sps:$4 sm:$0xff]  }
  0xb2   :  { %6171 = vmatpush1.bf16.msra.mxu0 %v10615_v30  ;;  %6335 = vmatpush1.bf16.msra.mxu1 %v10616_v31  ;;  %v10686_v30 = vld [vmem:[#allocation2 + $0x8f0] ss:$60 sps:$4 sm:$0xff]   ;;  %v10691_v31 = vld [vmem:[#allocation2 + $0x964] ss:$60 sps:$4 sm:$0xff]   ;;  %v10730_v58 = vld [vmem:[#allocation2 + $0xc3c] ss:$60 sps:$4 sm:$0xff]  }
  0xb3   :  { %6172 = vmatprep.subr.bf16.mxu0 %v10617_v32  ;;  %6336 = vmatprep.subr.bf16.mxu1 %v10619_v33  ;;  %v10694_v32 = vld [vmem:[#allocation2 + $0x96c] ss:$60 sps:$4 sm:$0xff]   ;;  %v10689_v33 = vld [vmem:[#allocation2 + $0x960] ss:$60 sps:$4 sm:$0xff]   ;;  %v10752_v14 = vld [vmem:[#allocation2 + $0xe18] ss:$60 sps:$4 sm:$0xff]  }
  0xb4   :  { %v10724_v54 = vld [vmem:[#allocation2 + $0xbc4] ss:$60 sps:$4 sm:$0xff]  }
  0xb6   :  { %6173 = vmatpush1.bf16.msra.mxu0 %v10621_v34  ;;  %6337 = vmatpush1.bf16.msra.mxu1 %v10622_v35  ;;  %v10692_v34 = vld [vmem:[#allocation2 + $0x968] ss:$60 sps:$4 sm:$0xff]   ;;  %v10697_v35 = vld [vmem:[#allocation2 + $0x9dc] ss:$60 sps:$4 sm:$0xff]  }
  0xb7   :  { %6174 = vmatprep.subr.bf16.mxu0 %v10623_v39  ;;  %6338 = vmatprep.subr.bf16.mxu1 %v10625_v40  ;;  %v10703_v39 = vld [vmem:[#allocation2 + $0xa54] ss:$60 sps:$4 sm:$0xff]   ;;  %v10706_v40 = vld [vmem:[#allocation2 + $0xa5c] ss:$60 sps:$4 sm:$0xff]  }
  0xba   :  { %6175 = vmatpush1.bf16.msra.mxu0 %v10627_v41  ;;  %6339 = vmatpush1.bf16.msra.mxu1 %v10628_v44  ;;  %v10701_v41 = vld [vmem:[#allocation2 + $0xa50] ss:$60 sps:$4 sm:$0xff]  }
  0xbb   :  { %6176 = vmatprep.subr.bf16.mxu0 %v10629_v45  ;;  %6340 = vmatprep.subr.bf16.mxu1 %v10631_v46  ;;  %v10709_v44 = vld [vmem:[#allocation2 + $0xacc] ss:$60 sps:$4 sm:$0xff]   ;;  %v10712_v45 = vld [vmem:[#allocation2 + $0xad4] ss:$60 sps:$4 sm:$0xff]  }
  0xbc   :  { %v10707_v46 = vld [vmem:[#allocation2 + $0xac8] ss:$60 sps:$4 sm:$0xff]  }
  0xbe   :  { %6177 = vmatpush1.bf16.msra.mxu0 %v10633_v47  ;;  %6341 = vmatpush1.bf16.msra.mxu1 %v10634_v48  ;;  %v10710_v47 = vld [vmem:[#allocation2 + $0xad0] ss:$60 sps:$4 sm:$0xff]   ;;  %v10715_v48 = vld [vmem:[#allocation2 + $0xb44] ss:$60 sps:$4 sm:$0xff]  }
  0xbf   :  { %6178 = vmatprep.subr.bf16.mxu0 %v10635_v50  ;;  %6342 = vmatprep.subr.bf16.mxu1 %v10637_v51  ;;  %v10718_v50 = vld [vmem:[#allocation2 + $0xb4c] ss:$60 sps:$4 sm:$0xff]   ;;  %v10713_v51 = vld [vmem:[#allocation2 + $0xb40] ss:$60 sps:$4 sm:$0xff]  }
  0xc2   :  { %6179 = vmatpush1.bf16.msra.mxu0 %v10639_v53  ;;  %6343 = vmatpush1.bf16.msra.mxu1 %v10640_v55  ;;  %v10721_v53 = vld [vmem:[#allocation2 + $0xbbc] ss:$60 sps:$4 sm:$0xff]  }
  0xc3   :  { %6180 = vmatprep.subr.bf16.mxu0 %v10641_v56  ;;  %6344 = vmatprep.subr.bf16.mxu1 %v10643_v57  ;;  %v10719_v55 = vld [vmem:[#allocation2 + $0xbb8] ss:$60 sps:$4 sm:$0xff]   ;;  %v10722_v56 = vld [vmem:[#allocation2 + $0xbc0] ss:$60 sps:$4 sm:$0xff]  }
  0xc4   :  { %v10727_v57 = vld [vmem:[#allocation2 + $0xc34] ss:$60 sps:$4 sm:$0xff]  }
  0xc6   :  { %6181 = vmatpush1.bf16.msra.mxu0 %v10645_v59  ;;  %6345 = vmatpush1.bf16.msra.mxu1 %v10646_v61  ;;  %v10725_v59 = vld [vmem:[#allocation2 + $0xc30] ss:$60 sps:$4 sm:$0xff]   ;;  %v10728_v61 = vld [vmem:[#allocation2 + $0xc38] ss:$60 sps:$4 sm:$0xff]  }
  0xc7   :  { %6182 = vmatprep.subr.bf16.mxu0 %v10647_v62  ;;  %6346 = vmatprep.subr.bf16.mxu1 %v10649_v63  ;;  %v10733_v62 = vld [vmem:[#allocation2 + $0xcac] ss:$60 sps:$4 sm:$0xff]   ;;  %v10736_v63 = vld [vmem:[#allocation2 + $0xcb4] ss:$60 sps:$4 sm:$0xff]  }
  0xca   :  { %6183 = vmatpush1.bf16.msra.mxu0 %v10651_v0  ;;  %6347 = vmatpush1.bf16.msra.mxu1 %v10652_v1  ;;  %v10731_v0 = vld [vmem:[#allocation2 + $0xca8] ss:$60 sps:$4 sm:$0xff]   ;;  %v10734_v1 = vld [vmem:[#allocation2 + $0xcb0] ss:$60 sps:$4 sm:$0xff]  }
  0xcb   :  { %6184 = vmatprep.subr.bf16.mxu0 %v10653_v2  ;;  %6348 = vmatprep.subr.bf16.mxu1 %v10655_v3  ;;  %v10739_v2 = vld [vmem:[#allocation2 + $0xd24] ss:$60 sps:$4 sm:$0xff]   ;;  %v10742_v3 = vld [vmem:[#allocation2 + $0xd2c] ss:$60 sps:$4 sm:$0xff]  }
  0xce   :  { %6185 = vmatpush1.bf16.msra.mxu0 %v10657_v5  ;;  %6349 = vmatpush1.bf16.msra.mxu1 %v10658_v6  ;;  %v10740_v5 = vld [vmem:[#allocation2 + $0xd28] ss:$60 sps:$4 sm:$0xff]   ;;  %v10745_v6 = vld [vmem:[#allocation2 + $0xd9c] ss:$60 sps:$4 sm:$0xff]  }
  0xcf   :  { %6186 = vmatprep.subr.bf16.mxu0 %v10659_v7  ;;  %6350 = vmatprep.subr.bf16.mxu1 %v10661_v8  ;;  %v10748_v7 = vld [vmem:[#allocation2 + $0xda4] ss:$60 sps:$4 sm:$0xff]   ;;  %v10743_v8 = vld [vmem:[#allocation2 + $0xd98] ss:$60 sps:$4 sm:$0xff]  }
  0xd2   :  { %6187 = vmatpush1.bf16.msra.mxu0 %v10663_v10  ;;  %6351 = vmatpush1.bf16.msra.mxu1 %v10664_v11  ;;  %v10746_v10 = vld [vmem:[#allocation2 + $0xda0] ss:$60 sps:$4 sm:$0xff]   ;;  %v10751_v11 = vld [vmem:[#allocation2 + $0xe14] ss:$60 sps:$4 sm:$0xff]  }
  0xd3   :  { %6197 = vmatprep.subr.bf16.mxu0 %v10667_v12  ;;  %6361 = vmatprep.subr.bf16.mxu1 %v10670_v13  ;;  %v10754_v12 = vld [vmem:[#allocation2 + $0xe1c] ss:$60 sps:$4 sm:$0xff]   ;;  %v10749_v13 = vld [vmem:[#allocation2 + $0xe10] ss:$60 sps:$4 sm:$0xff]  }
  0xd5   :  { %6189 = vmatmul.mubr.bf16.vlgmr.msra.gmra.mrb[0].mxu0 %v12521_v16  ;;  %6353 = vmatmul.mubr.bf16.vlgmr.msra.gmra.mrb[0].mxu1 %v12521_v16 }
  0xd6   :  { %6198 = vmatpush1.bf16.msra.mxu0 %v10665_v15  ;;  %6362 = vmatpush1.bf16.msra.mxu1 %v10668_v17  ;;  %v10757_v15 = vld [vmem:[#allocation2 + $0xe8c] ss:$60 sps:$4 sm:$0xff]   ;;  %v10760_v17 = vld [vmem:[#allocation2 + $0xe94] ss:$60 sps:$4 sm:$0xff]  }
  0xd7   :  { %6199 = vmatprep.subr.bf16.mxu0 %v10673_v18  ;;  %6363 = vmatprep.subr.bf16.mxu1 %v10676_v19  ;;  %v10755_v18 = vld [vmem:[#allocation2 + $0xe88] ss:$60 sps:$4 sm:$0xff]   ;;  %v10758_v19 = vld [vmem:[#allocation2 + $0xe90] ss:$60 sps:$4 sm:$0xff]  }
  0xd8   :  { %6229 = vmatprep.mubr.bf16.mxu0 %v12523_v20  ;;  %6393 = vmatprep.mubr.bf16.mxu1 %v12523_v20 }
  0xda   :  { %6200 = vmatpush1.bf16.msra.mxu0 %v10671_v21  ;;  %6364 = vmatpush1.bf16.msra.mxu1 %v10674_v22  ;;  %v10764_v21 = vld [vmem:[#allocation2 + $0xf04] ss:$60 sps:$4 sm:$0xff]   ;;  %v10767_v22 = vld [vmem:[#allocation2 + $0xf0c] ss:$60 sps:$4 sm:$0xff]  }
  0xdb   :  { %6201 = vmatprep.subr.bf16.mxu0 %v10679_v23  ;;  %6365 = vmatprep.subr.bf16.mxu1 %v10682_v24  ;;  %v10762_v23 = vld [vmem:[#allocation2 + $0xf00] ss:$60 sps:$4 sm:$0xff]   ;;  %v12531_v24 = vpack.c.bf16 %v12517_v9, %v12517_v9 }
  0xde   :  { %6202 = vmatpush1.bf16.msra.mxu0 %v10677_v25  ;;  %6366 = vmatpush1.bf16.msra.mxu1 %v10680_v26  ;;  %v10765_v25 = vld [vmem:[#allocation2 + $0xf08] ss:$60 sps:$4 sm:$0xff]  }
  0xdf   :  { %6203 = vmatprep.subr.bf16.mxu0 %v10685_v27  ;;  %6367 = vmatprep.subr.bf16.mxu1 %v10688_v28  ;;  %v12536_v26 = vld [vmem:[%s12757_s0 + $0x8] sm:$0xff]  ;;  %v10770_v27 = vld [vmem:[#allocation2 + $0xf7c] ss:$60 sps:$4 sm:$0xff]   ;;  %v10773_v28 = vld [vmem:[#allocation2 + $0xf84] ss:$60 sps:$4 sm:$0xff]   ;;  %s12340_s0 = smov [#allocation16]  }
  0xe0   :  { %s9014_s18 = sshll.u32 %s12340_s0, 4  ;;  %s9015_s18 = int_to_ptr.vmem [resolvable:$true] %s9014_s18 }
  0xe1   :  { %s12291_s19 = scalar_lea.vmem %s9015_s18, 32  ;;  %p12296_p9 = scmp.lt.s32.totalorder %s9015_s18, %s9015_s18 }
  0xe2   :  { %6204 = vmatpush1.bf16.msra.mxu0 %v10683_v29  ;;  %6368 = vmatpush1.bf16.msra.mxu1 %v10686_v30  ;;  %v12540_v29 = vrot.slane %v12536_v26, %v12506_v49  ;;  %v10768_v30 = vld [vmem:[#allocation2 + $0xf78] ss:$60 sps:$4 sm:$0xff]   ;;  %p12292_p8 = scmp.ne.s32.totalorder %s9015_s18, %s12291_s19  ;;  %p12297_p10 = scmp.lt.s32.totalorder %s12291_s19, %s12291_s19 }
  0xe3   :  { %6205 = vmatprep.subr.bf16.mxu0 %v10691_v31  ;;  %6369 = vmatprep.subr.bf16.mxu1 %v10694_v32  ;;  %v10771_v31 = vld [vmem:[#allocation2 + $0xf80] ss:$60 sps:$4 sm:$0xff]   ;;  %v10776_v32 = vld [vmem:[#allocation2 + $0xff4] ss:$60 sps:$4 sm:$0xff]  }
  0xe4   :  { %v171_v9 = vcombine.high %v12540_v29, %v12540_v29  ;;  %p12298_p11 = por %p12297_p10, %p12296_p9 }
  0xe6   :  { %6206 = vmatpush1.bf16.msra.mxu0 %v10689_v33  ;;  %6370 = vmatpush1.bf16.msra.mxu1 %v10692_v34  ;;  %v10779_v33 = vld [vmem:[#allocation2 + $0xffc] ss:$60 sps:$4 sm:$0xff]   ;;  %v12546_v34 = vpack.c.bf16 %v171_v9, %v171_v9  ;;  %p12299_p12 = pnand %p12298_p11, %p12292_p8 }
  0xe7   :  { %6207 = vmatprep.subr.bf16.mxu0 %v10697_v35  ;;  %6371 = vmatprep.subr.bf16.mxu1 %v10700_v36  ;;  %v10774_v35 = vld [vmem:[#allocation2 + $0xff0] ss:$60 sps:$4 sm:$0xff]   ;;  %v10777_v36 = vld [vmem:[#allocation2 + $0xff8] ss:$60 sps:$4 sm:$0xff]  }
  0xe8   :  { %v10849_v9 = vld [vmem:[#allocation2 + $0x1598] ss:$60 sps:$4 sm:$0xff]  }
  0xea   :  { %6208 = vmatpush1.bf16.msra.mxu0 %v10695_v37  ;;  %6372 = vmatpush1.bf16.msra.mxu1 %v10698_v38  ;;  %v10782_v37 = vld [vmem:[#allocation2 + $0x106c] ss:$60 sps:$4 sm:$0xff]   ;;  %v10785_v38 = vld [vmem:[#allocation2 + $0x1074] ss:$60 sps:$4 sm:$0xff]  }
  0xeb   :  { %6209 = vmatprep.subr.bf16.mxu0 %v10703_v39  ;;  %6373 = vmatprep.subr.bf16.mxu1 %v10706_v40  ;;  %v10780_v39 = vld [vmem:[#allocation2 + $0x1068] ss:$60 sps:$4 sm:$0xff]   ;;  %v10783_v40 = vld [vmem:[#allocation2 + $0x1070] ss:$60 sps:$4 sm:$0xff]  }
  0xee   :  { %6210 = vmatpush1.bf16.msra.mxu0 %v10701_v41  ;;  %6374 = vmatpush1.bf16.msra.mxu1 %v10704_v42  ;;  %v10788_v41 = vld [vmem:[#allocation2 + $0x10e4] ss:$60 sps:$4 sm:$0xff]   ;;  %v10791_v42 = vld [vmem:[#allocation2 + $0x10ec] ss:$60 sps:$4 sm:$0xff]  }
  0xef   :  { %6211 = vmatprep.subr.bf16.mxu0 %v10709_v44  ;;  %6375 = vmatprep.subr.bf16.mxu1 %v10712_v45  ;;  %v10786_v44 = vld [vmem:[#allocation2 + $0x10e0] ss:$60 sps:$4 sm:$0xff]   ;;  %v10789_v45 = vld [vmem:[#allocation2 + $0x10e8] ss:$60 sps:$4 sm:$0xff]  }
  0xf2   :  { %6212 = vmatpush1.bf16.msra.mxu0 %v10707_v46  ;;  %6376 = vmatpush1.bf16.msra.mxu1 %v10710_v47  ;;  %v10794_v46 = vld [vmem:[#allocation2 + $0x115c] ss:$60 sps:$4 sm:$0xff]   ;;  %v10797_v47 = vld [vmem:[#allocation2 + $0x1164] ss:$60 sps:$4 sm:$0xff]  }
  0xf3   :  { %6213 = vmatprep.subr.bf16.mxu0 %v10715_v48  ;;  %6377 = vmatprep.subr.bf16.mxu1 %v10718_v50  ;;  %v10792_v48 = vld [vmem:[#allocation2 + $0x1158] ss:$60 sps:$4 sm:$0xff]   ;;  %v10795_v50 = vld [vmem:[#allocation2 + $0x1160] ss:$60 sps:$4 sm:$0xff]  }
  0xf6   :  { %6214 = vmatpush1.bf16.msra.mxu0 %v10713_v51  ;;  %6378 = vmatpush1.bf16.msra.mxu1 %v10716_v52  ;;  %v10800_v51 = vld [vmem:[#allocation2 + $0x11d4] ss:$60 sps:$4 sm:$0xff]   ;;  %v10803_v52 = vld [vmem:[#allocation2 + $0x11dc] ss:$60 sps:$4 sm:$0xff]  }
  0xf7   :  { %6215 = vmatprep.subr.bf16.mxu0 %v10721_v53  ;;  %6379 = vmatprep.subr.bf16.mxu1 %v10724_v54  ;;  %v10798_v53 = vld [vmem:[#allocation2 + $0x11d0] ss:$60 sps:$4 sm:$0xff]   ;;  %v10801_v54 = vld [vmem:[#allocation2 + $0x11d8] ss:$60 sps:$4 sm:$0xff]  }
  0xfa   :  { %6216 = vmatpush1.bf16.msra.mxu0 %v10719_v55  ;;  %6380 = vmatpush1.bf16.msra.mxu1 %v10722_v56  ;;  %v10806_v55 = vld [vmem:[#allocation2 + $0x124c] ss:$60 sps:$4 sm:$0xff]   ;;  %v10809_v56 = vld [vmem:[#allocation2 + $0x1254] ss:$60 sps:$4 sm:$0xff]  }
  0xfb   :  { %6217 = vmatprep.subr.bf16.mxu0 %v10727_v57  ;;  %6381 = vmatprep.subr.bf16.mxu1 %v10730_v58  ;;  %v10804_v57 = vld [vmem:[#allocation2 + $0x1248] ss:$60 sps:$4 sm:$0xff]   ;;  %v10807_v58 = vld [vmem:[#allocation2 + $0x1250] ss:$60 sps:$4 sm:$0xff]  }
  0xfe   :  { %6218 = vmatpush1.bf16.msra.mxu0 %v10725_v59  ;;  %6382 = vmatpush1.bf16.msra.mxu1 %v10728_v61  ;;  %v10812_v59 = vld [vmem:[#allocation2 + $0x12c4] ss:$60 sps:$4 sm:$0xff]   ;;  %v10815_v61 = vld [vmem:[#allocation2 + $0x12cc] ss:$60 sps:$4 sm:$0xff]  }
  0xff   :  { %6219 = vmatprep.subr.bf16.mxu0 %v10733_v62  ;;  %6383 = vmatprep.subr.bf16.mxu1 %v10736_v63  ;;  %v10810_v62 = vld [vmem:[#allocation2 + $0x12c0] ss:$60 sps:$4 sm:$0xff]   ;;  %v10813_v63 = vld [vmem:[#allocation2 + $0x12c8] ss:$60 sps:$4 sm:$0xff]  }
 0x102   :  { %6220 = vmatpush1.bf16.msra.mxu0 %v10731_v0  ;;  %6384 = vmatpush1.bf16.msra.mxu1 %v10734_v1  ;;  %v10818_v0 = vld [vmem:[#allocation2 + $0x133c] ss:$60 sps:$4 sm:$0xff]   ;;  %v10821_v1 = vld [vmem:[#allocation2 + $0x1344] ss:$60 sps:$4 sm:$0xff]  }
 0x103   :  { %6221 = vmatprep.subr.bf16.mxu0 %v10739_v2  ;;  %6385 = vmatprep.subr.bf16.mxu1 %v10742_v3  ;;  %v10816_v2 = vld [vmem:[#allocation2 + $0x1338] ss:$60 sps:$4 sm:$0xff]   ;;  %v10819_v3 = vld [vmem:[#allocation2 + $0x1340] ss:$60 sps:$4 sm:$0xff]  }
 0x106   :  { %6222 = vmatpush1.bf16.msra.mxu0 %v10737_v4  ;;  %6386 = vmatpush1.bf16.msra.mxu1 %v10740_v5  ;;  %v10824_v4 = vld [vmem:[#allocation2 + $0x13b4] ss:$60 sps:$4 sm:$0xff]   ;;  %v10827_v5 = vld [vmem:[#allocation2 + $0x13bc] ss:$60 sps:$4 sm:$0xff]  }
 0x107   :  { %6223 = vmatprep.subr.bf16.mxu0 %v10745_v6  ;;  %6387 = vmatprep.subr.bf16.mxu1 %v10748_v7  ;;  %v10822_v6 = vld [vmem:[#allocation2 + $0x13b0] ss:$60 sps:$4 sm:$0xff]   ;;  %v10825_v7 = vld [vmem:[#allocation2 + $0x13b8] ss:$60 sps:$4 sm:$0xff]  }
 0x10a   :  { %6224 = vmatpush1.bf16.msra.mxu0 %v10743_v8  ;;  %6388 = vmatpush1.bf16.msra.mxu1 %v10746_v10  ;;  %v10830_v8 = vld [vmem:[#allocation2 + $0x142c] ss:$60 sps:$4 sm:$0xff]   ;;  %v10833_v10 = vld [vmem:[#allocation2 + $0x1434] ss:$60 sps:$4 sm:$0xff]  }
 0x10b   :  { %6225 = vmatprep.subr.bf16.mxu0 %v10751_v11  ;;  %6389 = vmatprep.subr.bf16.mxu1 %v10754_v12  ;;  %v10828_v11 = vld [vmem:[#allocation2 + $0x1428] ss:$60 sps:$4 sm:$0xff]   ;;  %v10831_v12 = vld [vmem:[#allocation2 + $0x1430] ss:$60 sps:$4 sm:$0xff]  }
 0x10e   :  { %6226 = vmatpush1.bf16.msra.mxu0 %v10749_v13  ;;  %6390 = vmatpush1.bf16.msra.mxu1 %v10752_v14  ;;  %v10836_v13 = vld [vmem:[#allocation2 + $0x14a4] ss:$60 sps:$4 sm:$0xff]   ;;  %v10839_v14 = vld [vmem:[#allocation2 + $0x14ac] ss:$60 sps:$4 sm:$0xff]  }
 0x10f   :  { %6227 = vmatprep.subr.bf16.mxu0 %v10757_v15  ;;  %6391 = vmatprep.subr.bf16.mxu1 %v10760_v17  ;;  %v10834_v15 = vld [vmem:[#allocation2 + $0x14a0] ss:$60 sps:$4 sm:$0xff]   ;;  %v10837_v17 = vld [vmem:[#allocation2 + $0x14a8] ss:$60 sps:$4 sm:$0xff]  }
 0x112   :  { %6228 = vmatpush1.bf16.msra.mxu0 %v10755_v18  ;;  %6392 = vmatpush1.bf16.msra.mxu1 %v10758_v19  ;;  %v10842_v18 = vld [vmem:[#allocation2 + $0x151c] ss:$60 sps:$4 sm:$0xff]   ;;  %v10845_v19 = vld [vmem:[#allocation2 + $0x1524] ss:$60 sps:$4 sm:$0xff]  }
 0x113   :  { %6238 = vmatprep.subr.bf16.mxu0 %v10764_v21  ;;  %6402 = vmatprep.subr.bf16.mxu1 %v10767_v22  ;;  %v10840_v21 = vld [vmem:[#allocation2 + $0x1518] ss:$60 sps:$4 sm:$0xff]   ;;  %v10843_v22 = vld [vmem:[#allocation2 + $0x1520] ss:$60 sps:$4 sm:$0xff]  }
 0x115   :  { %6230 = vmatmul.mubr.bf16.vlgmr.msra.gmra.mrb[0].mxu0 %v12531_v24  ;;  %6394 = vmatmul.mubr.bf16.vlgmr.msra.gmra.mrb[0].mxu1 %v12531_v24 }
 0x116   :  { %6239 = vmatpush1.bf16.msra.mxu0 %v10762_v23  ;;  %6403 = vmatpush1.bf16.msra.mxu1 %v10765_v25  ;;  %v10848_v23 = vld [vmem:[#allocation2 + $0x1594] ss:$60 sps:$4 sm:$0xff]   ;;  %v10851_v25 = vld [vmem:[#allocation2 + $0x159c] ss:$60 sps:$4 sm:$0xff]  }
 0x117   :  { %6240 = vmatprep.subr.bf16.mxu0 %v10770_v27  ;;  %6404 = vmatprep.subr.bf16.mxu1 %v10773_v28  ;;  %v156_v27 = vcombine.high %v12536_v26, %v12536_v26  ;;  %v10846_v28 = vld [vmem:[#allocation2 + $0x1590] ss:$60 sps:$4 sm:$0xff]  }
 0x118   :  { %6270 = vmatprep.mubr.bf16.mxu0 %v12546_v34  ;;  %6434 = vmatprep.mubr.bf16.mxu1 %v12546_v34 }
 0x11a   :  { %6241 = vmatpush1.bf16.msra.mxu0 %v10768_v30  ;;  %6405 = vmatpush1.bf16.msra.mxu1 %v10771_v31  ;;  %v10854_v30 = vld [vmem:[#allocation2 + $0x160c] ss:$60 sps:$4 sm:$0xff]   ;;  %v10857_v31 = vld [vmem:[#allocation2 + $0x1614] ss:$60 sps:$4 sm:$0xff]  }
 0x11b   :  { %6242 = vmatprep.subr.bf16.mxu0 %v10776_v32  ;;  %6406 = vmatprep.subr.bf16.mxu1 %v10779_v33  ;;  %v12553_v32 = vrot.slane %v156_v27, %v12506_v49  ;;  %v10852_v33 = vld [vmem:[#allocation2 + $0x1608] ss:$60 sps:$4 sm:$0xff]   ;;  %v10927_v27 = vld [vmem:[#allocation2 + $0x1bb0] ss:$60 sps:$4 sm:$0xff]  }
 0x11c   :  { %v10861_v49 = vld [vmem:[#allocation2 + $0x1688] ss:$60 sps:$4 sm:$0xff]  }
 0x11d   :  { %v172_v26 = vcombine.high %v12553_v32, %v12553_v32 }
 0x11e   :  { %6243 = vmatpush1.bf16.msra.mxu0 %v10774_v35  ;;  %6407 = vmatpush1.bf16.msra.mxu1 %v10777_v36  ;;  %v10855_v35 = vld [vmem:[#allocation2 + $0x1610] ss:$60 sps:$4 sm:$0xff]   ;;  %v10860_v36 = vld [vmem:[#allocation2 + $0x1684] ss:$60 sps:$4 sm:$0xff]  }
 0x11f   :  { %6244 = vmatprep.subr.bf16.mxu0 %v10782_v37  ;;  %6408 = vmatprep.subr.bf16.mxu1 %v10785_v38  ;;  %v10863_v37 = vld [vmem:[#allocation2 + $0x168c] ss:$60 sps:$4 sm:$0xff]   ;;  %v12559_v38 = vpack.c.bf16 %v12540_v29, %v12540_v29  ;;  %v10872_v29 = vld [vmem:[#allocation2 + $0x1774] ss:$60 sps:$4 sm:$0xff]  }
 0x122   :  { %6245 = vmatpush1.bf16.msra.mxu0 %v10780_v39  ;;  %6409 = vmatpush1.bf16.msra.mxu1 %v10783_v40  ;;  %v10858_v39 = vld [vmem:[#allocation2 + $0x1680] ss:$60 sps:$4 sm:$0xff]  }
 0x123   :  { %6246 = vmatprep.subr.bf16.mxu0 %v10788_v41  ;;  %6410 = vmatprep.subr.bf16.mxu1 %v10791_v42  ;;  %v10866_v40 = vld [vmem:[#allocation2 + $0x16fc] ss:$60 sps:$4 sm:$0xff]   ;;  %v10869_v41 = vld [vmem:[#allocation2 + $0x1704] ss:$60 sps:$4 sm:$0xff]   ;;  %v12561_v42 = vpack.c.bf16 %v172_v26, %v172_v26  ;;  %v10944_v26 = vld [vmem:[#allocation2 + $0x1d14] ss:$60 sps:$4 sm:$0xff]  }
 0x126   :  { %6247 = vmatpush1.bf16.msra.mxu0 %v10786_v44  ;;  %6411 = vmatpush1.bf16.msra.mxu1 %v10789_v45  ;;  %v10864_v44 = vld [vmem:[#allocation2 + $0x16f8] ss:$60 sps:$4 sm:$0xff]   ;;  %v10867_v45 = vld [vmem:[#allocation2 + $0x1700] ss:$60 sps:$4 sm:$0xff]  }
 0x127   :  { %6248 = vmatprep.subr.bf16.mxu0 %v10794_v46  ;;  %6412 = vmatprep.subr.bf16.mxu1 %v10797_v47  ;;  %v10875_v46 = vld [vmem:[#allocation2 + $0x177c] ss:$60 sps:$4 sm:$0xff]   ;;  %v10870_v47 = vld [vmem:[#allocation2 + $0x1770] ss:$60 sps:$4 sm:$0xff]  }
 0x12a   :  { %6249 = vmatpush1.bf16.msra.mxu0 %v10792_v48  ;;  %6413 = vmatpush1.bf16.msra.mxu1 %v10795_v50  ;;  %v10873_v48 = vld [vmem:[#allocation2 + $0x1778] ss:$60 sps:$4 sm:$0xff]   ;;  %v10878_v50 = vld [vmem:[#allocation2 + $0x17ec] ss:$60 sps:$4 sm:$0xff]  }
 0x12b   :  { %6250 = vmatprep.subr.bf16.mxu0 %v10800_v51  ;;  %6414 = vmatprep.subr.bf16.mxu1 %v10803_v52  ;;  %v10881_v51 = vld [vmem:[#allocation2 + $0x17f4] ss:$60 sps:$4 sm:$0xff]   ;;  %v10876_v52 = vld [vmem:[#allocation2 + $0x17e8] ss:$60 sps:$4 sm:$0xff]  }
 0x12e   :  { %6251 = vmatpush1.bf16.msra.mxu0 %v10798_v53  ;;  %6415 = vmatpush1.bf16.msra.mxu1 %v10801_v54  ;;  %v10879_v53 = vld [vmem:[#allocation2 + $0x17f0] ss:$60 sps:$4 sm:$0xff]   ;;  %v10884_v54 = vld [vmem:[#allocation2 + $0x1864] ss:$60 sps:$4 sm:$0xff]  }
 0x12f   :  { %6252 = vmatprep.subr.bf16.mxu0 %v10806_v55  ;;  %6416 = vmatprep.subr.bf16.mxu1 %v10809_v56  ;;  %v10887_v55 = vld [vmem:[#allocation2 + $0x186c] ss:$60 sps:$4 sm:$0xff]   ;;  %v10882_v56 = vld [vmem:[#allocation2 + $0x1860] ss:$60 sps:$4 sm:$0xff]  }
 0x132   :  { %6253 = vmatpush1.bf16.msra.mxu0 %v10804_v57  ;;  %6417 = vmatpush1.bf16.msra.mxu1 %v10807_v58  ;;  %v10885_v57 = vld [vmem:[#allocation2 + $0x1868] ss:$60 sps:$4 sm:$0xff]   ;;  %v10890_v58 = vld [vmem:[#allocation2 + $0x18dc] ss:$60 sps:$4 sm:$0xff]  }
 0x133   :  { %6254 = vmatprep.subr.bf16.mxu0 %v10812_v59  ;;  %6418 = vmatprep.subr.bf16.mxu1 %v10815_v61  ;;  %v10893_v59 = vld [vmem:[#allocation2 + $0x18e4] ss:$60 sps:$4 sm:$0xff]   ;;  %v10888_v61 = vld [vmem:[#allocation2 + $0x18d8] ss:$60 sps:$4 sm:$0xff]  }
 0x136   :  { %6255 = vmatpush1.bf16.msra.mxu0 %v10810_v62  ;;  %6419 = vmatpush1.bf16.msra.mxu1 %v10813_v63  ;;  %v10891_v62 = vld [vmem:[#allocation2 + $0x18e0] ss:$60 sps:$4 sm:$0xff]   ;;  %v10896_v63 = vld [vmem:[#allocation2 + $0x1954] ss:$60 sps:$4 sm:$0xff]  }
 0x137   :  { %6256 = vmatprep.subr.bf16.mxu0 %v10818_v0  ;;  %6420 = vmatprep.subr.bf16.mxu1 %v10821_v1  ;;  %v10899_v0 = vld [vmem:[#allocation2 + $0x195c] ss:$60 sps:$4 sm:$0xff]   ;;  %v10894_v1 = vld [vmem:[#allocation2 + $0x1950] ss:$60 sps:$4 sm:$0xff]  }
 0x13a   :  { %6257 = vmatpush1.bf16.msra.mxu0 %v10816_v2  ;;  %6421 = vmatpush1.bf16.msra.mxu1 %v10819_v3  ;;  %v10897_v2 = vld [vmem:[#allocation2 + $0x1958] ss:$60 sps:$4 sm:$0xff]   ;;  %v10902_v3 = vld [vmem:[#allocation2 + $0x19cc] ss:$60 sps:$4 sm:$0xff]  }
 0x13b   :  { %6258 = vmatprep.subr.bf16.mxu0 %v10824_v4  ;;  %6422 = vmatprep.subr.bf16.mxu1 %v10827_v5  ;;  %v10905_v4 = vld [vmem:[#allocation2 + $0x19d4] ss:$60 sps:$4 sm:$0xff]   ;;  %v10900_v5 = vld [vmem:[#allocation2 + $0x19c8] ss:$60 sps:$4 sm:$0xff]  }
 0x13e   :  { %6259 = vmatpush1.bf16.msra.mxu0 %v10822_v6  ;;  %6423 = vmatpush1.bf16.msra.mxu1 %v10825_v7  ;;  %v10903_v6 = vld [vmem:[#allocation2 + $0x19d0] ss:$60 sps:$4 sm:$0xff]   ;;  %v10908_v7 = vld [vmem:[#allocation2 + $0x1a44] ss:$60 sps:$4 sm:$0xff]  }
 0x13f   :  { %6260 = vmatprep.subr.bf16.mxu0 %v10830_v8  ;;  %6424 = vmatprep.subr.bf16.mxu1 %v10833_v10  ;;  %v10911_v8 = vld [vmem:[#allocation2 + $0x1a4c] ss:$60 sps:$4 sm:$0xff]   ;;  %v10906_v10 = vld [vmem:[#allocation2 + $0x1a40] ss:$60 sps:$4 sm:$0xff]  }
 0x142   :  { %6261 = vmatpush1.bf16.msra.mxu0 %v10828_v11  ;;  %6425 = vmatpush1.bf16.msra.mxu1 %v10831_v12  ;;  %v10909_v11 = vld [vmem:[#allocation2 + $0x1a48] ss:$60 sps:$4 sm:$0xff]   ;;  %v10914_v12 = vld [vmem:[#allocation2 + $0x1abc] ss:$60 sps:$4 sm:$0xff]  }
 0x143   :  { %6262 = vmatprep.subr.bf16.mxu0 %v10836_v13  ;;  %6426 = vmatprep.subr.bf16.mxu1 %v10839_v14  ;;  %v10917_v13 = vld [vmem:[#allocation2 + $0x1ac4] ss:$60 sps:$4 sm:$0xff]   ;;  %v10912_v14 = vld [vmem:[#allocation2 + $0x1ab8] ss:$60 sps:$4 sm:$0xff]  }
 0x146   :  { %6263 = vmatpush1.bf16.msra.mxu0 %v10834_v15  ;;  %6427 = vmatpush1.bf16.msra.mxu1 %v10837_v17  ;;  %v10915_v15 = vld [vmem:[#allocation2 + $0x1ac0] ss:$60 sps:$4 sm:$0xff]   ;;  %v10920_v17 = vld [vmem:[#allocation2 + $0x1b34] ss:$60 sps:$4 sm:$0xff]  }
 0x147   :  { %6264 = vmatprep.subr.bf16.mxu0 %v10842_v18  ;;  %6428 = vmatprep.subr.bf16.mxu1 %v10845_v19  ;;  %v10923_v18 = vld [vmem:[#allocation2 + $0x1b3c] ss:$60 sps:$4 sm:$0xff]   ;;  %v10918_v19 = vld [vmem:[#allocation2 + $0x1b30] ss:$60 sps:$4 sm:$0xff]  }
 0x14a   :  { %6265 = vmatpush1.bf16.msra.mxu0 %v10840_v21  ;;  %6429 = vmatpush1.bf16.msra.mxu1 %v10843_v22  ;;  %v10921_v21 = vld [vmem:[#allocation2 + $0x1b38] ss:$60 sps:$4 sm:$0xff]   ;;  %v10926_v22 = vld [vmem:[#allocation2 + $0x1bac] ss:$60 sps:$4 sm:$0xff]  }
 0x14b   :  { %6266 = vmatprep.subr.bf16.mxu0 %v10848_v23  ;;  %6430 = vmatprep.subr.bf16.mxu1 %v10851_v25  ;;  %v10929_v23 = vld [vmem:[#allocation2 + $0x1bb4] ss:$60 sps:$4 sm:$0xff]   ;;  %v10924_v25 = vld [vmem:[#allocation2 + $0x1ba8] ss:$60 sps:$4 sm:$0xff]  }
 0x14e   :  { %6267 = vmatpush1.bf16.msra.mxu0 %v10846_v28  ;;  %6431 = vmatpush1.bf16.msra.mxu1 %v10849_v9  ;;  %v10932_v28 = vld [vmem:[#allocation2 + $0x1c24] ss:$60 sps:$4 sm:$0xff]   ;;  %v10935_v9 = vld [vmem:[#allocation2 + $0x1c2c] ss:$60 sps:$4 sm:$0xff]  }
 0x14f   :  { %6268 = vmatprep.subr.bf16.mxu0 %v10854_v30  ;;  %6432 = vmatprep.subr.bf16.mxu1 %v10857_v31  ;;  %v10930_v30 = vld [vmem:[#allocation2 + $0x1c20] ss:$60 sps:$4 sm:$0xff]   ;;  %v10933_v31 = vld [vmem:[#allocation2 + $0x1c28] ss:$60 sps:$4 sm:$0xff]  }
 0x152   :  { %6269 = vmatpush1.bf16.msra.mxu0 %v10852_v33  ;;  %6433 = vmatpush1.bf16.msra.mxu1 %v10855_v35  ;;  %v10938_v33 = vld [vmem:[#allocation2 + $0x1c9c] ss:$60 sps:$4 sm:$0xff]   ;;  %v10941_v35 = vld [vmem:[#allocation2 + $0x1ca4] ss:$60 sps:$4 sm:$0xff]  }
 0x153   :  { %6279 = vmatprep.subr.bf16.mxu0 %v10860_v36  ;;  %6443 = vmatprep.subr.bf16.mxu1 %v10863_v37  ;;  %v10936_v36 = vld [vmem:[#allocation2 + $0x1c98] ss:$60 sps:$4 sm:$0xff]   ;;  %v10939_v37 = vld [vmem:[#allocation2 + $0x1ca0] ss:$60 sps:$4 sm:$0xff]  }
 0x155   :  { %6271 = vmatmul.mubr.bf16.vlgmr.msra.gmra.mrb[0].mxu0 %v12559_v38  ;;  %6435 = vmatmul.mubr.bf16.vlgmr.msra.gmra.mrb[0].mxu1 %v12559_v38 }
 0x156   :  { %6280 = vmatpush1.bf16.msra.mxu0 %v10858_v39  ;;  %6444 = vmatpush1.bf16.msra.mxu1 %v10861_v49  ;;  %v10947_v39 = vld [vmem:[#allocation2 + $0x1d1c] ss:$60 sps:$4 sm:$0xff]   ;;  %v10942_v49 = vld [vmem:[#allocation2 + $0x1d10] ss:$60 sps:$4 sm:$0xff]  }
 0x157   :  { %6281 = vmatprep.subr.bf16.mxu0 %v10866_v40  ;;  %6445 = vmatprep.subr.bf16.mxu1 %v10869_v41  ;;  %v10945_v40 = vld [vmem:[#allocation2 + $0x1d18] ss:$60 sps:$4 sm:$0xff]   ;;  %v10950_v41 = vld [vmem:[#allocation2 + $0x1d8c] ss:$60 sps:$4 sm:$0xff]  }
 0x158   :  { %6311 = vmatprep.mubr.bf16.mxu0 %v12561_v42  ;;  %6475 = vmatprep.mubr.bf16.mxu1 %v12561_v42 }
 0x15a   :  { %6282 = vmatpush1.bf16.msra.mxu0 %v10864_v44  ;;  %6446 = vmatpush1.bf16.msra.mxu1 %v10867_v45  ;;  %v10953_v44 = vld [vmem:[#allocation2 + $0x1d94] ss:$60 sps:$4 sm:$0xff]   ;;  %v10948_v45 = vld [vmem:[#allocation2 + $0x1d88] ss:$60 sps:$4 sm:$0xff]  }
 0x15b   :  { %6283 = vmatprep.subr.bf16.mxu0 %v10872_v29  ;;  %6447 = vmatprep.subr.bf16.mxu1 %v10875_v46  ;;  %v10951_v29 = vld [vmem:[#allocation2 + $0x1d90] ss:$60 sps:$4 sm:$0xff]  }
 0x15c   :  { %v10957_v46 = vld [vmem:[#allocation2 + $0x14] ss:$60 sps:$4 sm:$0xff]  }
 0x15e   :  { %6284 = vmatpush1.bf16.msra.mxu0 %v10870_v47  ;;  %6448 = vmatpush1.bf16.msra.mxu1 %v10873_v48  ;;  %v10960_v47 = vld [vmem:[#allocation2 + $0x1c] ss:$60 sps:$4 sm:$0xff]   ;;  %v12569_v48 = vpack.c.bf16 %v12553_v32, %v12553_v32  ;;  %v10969_v32 = vld [vmem:[#allocation2 + $0x104] ss:$60 sps:$4 sm:$0xff]  }
 0x15f   :  { %6285 = vmatprep.subr.bf16.mxu0 %v10878_v50  ;;  %6449 = vmatprep.subr.bf16.mxu1 %v10881_v51  ;;  %v10955_v50 = vld [vmem:[#allocation2 + $0x10] ss:$60 sps:$4 sm:$0xff]   ;;  %v10958_v51 = vld [vmem:[#allocation2 + $0x18] ss:$60 sps:$4 sm:$0xff]  }
 0x162   :  { %6286 = vmatpush1.bf16.msra.mxu0 %v10876_v52  ;;  %6450 = vmatpush1.bf16.msra.mxu1 %v10879_v53  ;;  %v10963_v52 = vld [vmem:[#allocation2 + $0x8c] ss:$60 sps:$4 sm:$0xff]   ;;  %v10966_v53 = vld [vmem:[#allocation2 + $0x94] ss:$60 sps:$4 sm:$0xff]  }
 0x163   :  { %6287 = vmatprep.subr.bf16.mxu0 %v10884_v54  ;;  %6451 = vmatprep.subr.bf16.mxu1 %v10887_v55  ;;  %v10961_v54 = vld [vmem:[#allocation2 + $0x88] ss:$60 sps:$4 sm:$0xff]   ;;  %v10964_v55 = vld [vmem:[#allocation2 + $0x90] ss:$60 sps:$4 sm:$0xff]  }
 0x166   :  { %6288 = vmatpush1.bf16.msra.mxu0 %v10882_v56  ;;  %6452 = vmatpush1.bf16.msra.mxu1 %v10885_v57  ;;  %v10972_v56 = vld [vmem:[#allocation2 + $0x10c] ss:$60 sps:$4 sm:$0xff]   ;;  %v10967_v57 = vld [vmem:[#allocation2 + $0x100] ss:$60 sps:$4 sm:$0xff]  }
 0x167   :  { %6289 = vmatprep.subr.bf16.mxu0 %v10890_v58  ;;  %6453 = vmatprep.subr.bf16.mxu1 %v10893_v59  ;;  %v10970_v58 = vld [vmem:[#allocation2 + $0x108] ss:$60 sps:$4 sm:$0xff]   ;;  %v10975_v59 = vld [vmem:[#allocation2 + $0x17c] ss:$60 sps:$4 sm:$0xff]  }
 0x16a   :  { %6290 = vmatpush1.bf16.msra.mxu0 %v10888_v61  ;;  %6454 = vmatpush1.bf16.msra.mxu1 %v10891_v62  ;;  %v10978_v61 = vld [vmem:[#allocation2 + $0x184] ss:$60 sps:$4 sm:$0xff]   ;;  %v10973_v62 = vld [vmem:[#allocation2 + $0x178] ss:$60 sps:$4 sm:$0xff]  }
 0x16b   :  { %6291 = vmatprep.subr.bf16.mxu0 %v10896_v63  ;;  %6455 = vmatprep.subr.bf16.mxu1 %v10899_v0  ;;  %v10976_v63 = vld [vmem:[#allocation2 + $0x180] ss:$60 sps:$4 sm:$0xff]   ;;  %v10981_v0 = vld [vmem:[#allocation2 + $0x1f4] ss:$60 sps:$4 sm:$0xff]  }
 0x16e   :  { %6292 = vmatpush1.bf16.msra.mxu0 %v10894_v1  ;;  %6456 = vmatpush1.bf16.msra.mxu1 %v10897_v2  ;;  %v10984_v1 = vld [vmem:[#allocation2 + $0x1fc] ss:$60 sps:$4 sm:$0xff]   ;;  %v10979_v2 = vld [vmem:[#allocation2 + $0x1f0] ss:$60 sps:$4 sm:$0xff]  }
 0x16f   :  { %6293 = vmatprep.subr.bf16.mxu0 %v10902_v3  ;;  %6457 = vmatprep.subr.bf16.mxu1 %v10905_v4  ;;  %v10982_v3 = vld [vmem:[#allocation2 + $0x1f8] ss:$60 sps:$4 sm:$0xff]   ;;  %v10987_v4 = vld [vmem:[#allocation2 + $0x26c] ss:$60 sps:$4 sm:$0xff]  }
 0x172   :  { %6294 = vmatpush1.bf16.msra.mxu0 %v10900_v5  ;;  %6458 = vmatpush1.bf16.msra.mxu1 %v10903_v6  ;;  %v10990_v5 = vld [vmem:[#allocation2 + $0x274] ss:$60 sps:$4 sm:$0xff]   ;;  %v10985_v6 = vld [vmem:[#allocation2 + $0x268] ss:$60 sps:$4 sm:$0xff]  }
 0x173   :  { %6295 = vmatprep.subr.bf16.mxu0 %v10908_v7  ;;  %6459 = vmatprep.subr.bf16.mxu1 %v10911_v8  ;;  %v10988_v7 = vld [vmem:[#allocation2 + $0x270] ss:$60 sps:$4 sm:$0xff]   ;;  %v10993_v8 = vld [vmem:[#allocation2 + $0x2e4] ss:$60 sps:$4 sm:$0xff]  }
 0x176   :  { %6296 = vmatpush1.bf16.msra.mxu0 %v10906_v10  ;;  %6460 = vmatpush1.bf16.msra.mxu1 %v10909_v11  ;;  %v10996_v10 = vld [vmem:[#allocation2 + $0x2ec] ss:$60 sps:$4 sm:$0xff]   ;;  %v10991_v11 = vld [vmem:[#allocation2 + $0x2e0] ss:$60 sps:$4 sm:$0xff]  }
 0x177   :  { %6297 = vmatprep.subr.bf16.mxu0 %v10914_v12  ;;  %6461 = vmatprep.subr.bf16.mxu1 %v10917_v13  ;;  %v10994_v12 = vld [vmem:[#allocation2 + $0x2e8] ss:$60 sps:$4 sm:$0xff]   ;;  %v10999_v13 = vld [vmem:[#allocation2 + $0x35c] ss:$60 sps:$4 sm:$0xff]  }
 0x17a   :  { %6298 = vmatpush1.bf16.msra.mxu0 %v10912_v14  ;;  %6462 = vmatpush1.bf16.msra.mxu1 %v10915_v15  ;;  %v11002_v14 = vld [vmem:[#allocation2 + $0x364] ss:$60 sps:$4 sm:$0xff]   ;;  %v10997_v15 = vld [vmem:[#allocation2 + $0x358] ss:$60 sps:$4 sm:$0xff]  }
 0x17b   :  { %6299 = vmatprep.subr.bf16.mxu0 %v10920_v17  ;;  %6463 = vmatprep.subr.bf16.mxu1 %v10923_v18  ;;  %v11000_v17 = vld [vmem:[#allocation2 + $0x360] ss:$60 sps:$4 sm:$0xff]   ;;  %v11005_v18 = vld [vmem:[#allocation2 + $0x3d4] ss:$60 sps:$4 sm:$0xff]  }
 0x17e   :  { %6300 = vmatpush1.bf16.msra.mxu0 %v10918_v19  ;;  %6464 = vmatpush1.bf16.msra.mxu1 %v10921_v21  ;;  %v11008_v19 = vld [vmem:[#allocation2 + $0x3dc] ss:$60 sps:$4 sm:$0xff]   ;;  %v11003_v21 = vld [vmem:[#allocation2 + $0x3d0] ss:$60 sps:$4 sm:$0xff]  }
 0x17f   :  { %6301 = vmatprep.subr.bf16.mxu0 %v10926_v22  ;;  %6465 = vmatprep.subr.bf16.mxu1 %v10929_v23  ;;  %v11006_v22 = vld [vmem:[#allocation2 + $0x3d8] ss:$60 sps:$4 sm:$0xff]   ;;  %v11011_v23 = vld [vmem:[#allocation2 + $0x44c] ss:$60 sps:$4 sm:$0xff]  }
 0x182   :  { %6302 = vmatpush1.bf16.msra.mxu0 %v10924_v25  ;;  %6466 = vmatpush1.bf16.msra.mxu1 %v10927_v27  ;;  %v11014_v25 = vld [vmem:[#allocation2 + $0x454] ss:$60 sps:$4 sm:$0xff]   ;;  %v11009_v27 = vld [vmem:[#allocation2 + $0x448] ss:$60 sps:$4 sm:$0xff]  }
 0x183   :  { %6303 = vmatprep.subr.bf16.mxu0 %v10932_v28  ;;  %6467 = vmatprep.subr.bf16.mxu1 %v10935_v9  ;;  %v11012_v28 = vld [vmem:[#allocation2 + $0x450] ss:$60 sps:$4 sm:$0xff]   ;;  %v11017_v9 = vld [vmem:[#allocation2 + $0x4c4] ss:$60 sps:$4 sm:$0xff]  }
 0x186   :  { %6304 = vmatpush1.bf16.msra.mxu0 %v10930_v30  ;;  %6468 = vmatpush1.bf16.msra.mxu1 %v10933_v31  ;;  %v11020_v30 = vld [vmem:[#allocation2 + $0x4cc] ss:$60 sps:$4 sm:$0xff]   ;;  %v11015_v31 = vld [vmem:[#allocation2 + $0x4c0] ss:$60 sps:$4 sm:$0xff]  }
 0x187   :  { %6305 = vmatprep.subr.bf16.mxu0 %v10938_v33  ;;  %6469 = vmatprep.subr.bf16.mxu1 %v10941_v35  ;;  %v11018_v33 = vld [vmem:[#allocation2 + $0x4c8] ss:$60 sps:$4 sm:$0xff]   ;;  %v11023_v35 = vld [vmem:[#allocation2 + $0x53c] ss:$60 sps:$4 sm:$0xff]  }
 0x18a   :  { %6306 = vmatpush1.bf16.msra.mxu0 %v10936_v36  ;;  %6470 = vmatpush1.bf16.msra.mxu1 %v10939_v37  ;;  %v11026_v36 = vld [vmem:[#allocation2 + $0x544] ss:$60 sps:$4 sm:$0xff]   ;;  %v11021_v37 = vld [vmem:[#allocation2 + $0x538] ss:$60 sps:$4 sm:$0xff]  }
 0x18b   :  { %6307 = vmatprep.subr.bf16.mxu0 %v10944_v26  ;;  %6471 = vmatprep.subr.bf16.mxu1 %v10947_v39  ;;  %v11024_v26 = vld [vmem:[#allocation2 + $0x540] ss:$60 sps:$4 sm:$0xff]   ;;  %v11029_v39 = vld [vmem:[#allocation2 + $0x5b4] ss:$60 sps:$4 sm:$0xff]  }
 0x18e   :  { %6308 = vmatpush1.bf16.msra.mxu0 %v10942_v49  ;;  %6472 = vmatpush1.bf16.msra.mxu1 %v10945_v40  ;;  %v11032_v49 = vld [vmem:[#allocation2 + $0x5bc] ss:$60 sps:$4 sm:$0xff]   ;;  %v11027_v40 = vld [vmem:[#allocation2 + $0x5b0] ss:$60 sps:$4 sm:$0xff]  }
 0x18f   :  { %6309 = vmatprep.subr.bf16.mxu0 %v10950_v41  ;;  %6473 = vmatprep.subr.bf16.mxu1 %v10953_v44  ;;  %v11030_v41 = vld [vmem:[#allocation2 + $0x5b8] ss:$60 sps:$4 sm:$0xff]   ;;  %v11035_v44 = vld [vmem:[#allocation2 + $0x62c] ss:$60 sps:$4 sm:$0xff]  }
 0x192   :  { %6310 = vmatpush1.bf16.msra.mxu0 %v10948_v45  ;;  %6474 = vmatpush1.bf16.msra.mxu1 %v10951_v29  ;;  %v11038_v45 = vld [vmem:[#allocation2 + $0x634] ss:$60 sps:$4 sm:$0xff]   ;;  %v11033_v29 = vld [vmem:[#allocation2 + $0x628] ss:$60 sps:$4 sm:$0xff]  }
 0x193   :  { %6484 = vmatprep.subr.bf16.mxu0 %v10957_v46  ;;  %6648 = vmatprep.subr.bf16.mxu1 %v10960_v47  ;;  %v11036_v46 = vld [vmem:[#allocation2 + $0x630] ss:$60 sps:$4 sm:$0xff]   ;;  %v11041_v47 = vld [vmem:[#allocation2 + $0x6a4] ss:$60 sps:$4 sm:$0xff]  }
 0x195   :  { %6312 = vmatmul.mubr.bf16.vlgmr.msra.gmra.mrb[0].mxu0 %v12569_v48  ;;  %6476 = vmatmul.mubr.bf16.vlgmr.msra.gmra.mrb[0].mxu1 %v12569_v48 }
 0x196   :  { %6485 = vmatpush1.bf16.msra.mxu0 %v10955_v50  ;;  %6649 = vmatpush1.bf16.msra.mxu1 %v10958_v51  ;;  %v11044_v50 = vld [vmem:[#allocation2 + $0x6ac] ss:$60 sps:$4 sm:$0xff]   ;;  %v11039_v51 = vld [vmem:[#allocation2 + $0x6a0] ss:$60 sps:$4 sm:$0xff]  }
 0x197   :  { %6486 = vmatprep.subr.bf16.mxu0 %v10963_v52  ;;  %6650 = vmatprep.subr.bf16.mxu1 %v10966_v53  ;;  %v11042_v52 = vld [vmem:[#allocation2 + $0x6a8] ss:$60 sps:$4 sm:$0xff]   ;;  %v11047_v53 = vld [vmem:[#allocation2 + $0x71c] ss:$60 sps:$4 sm:$0xff]  }
 0x198   :  { %6516 = vmatprep.mubr.bf16.mxu0 %v12512_v60  ;;  %6680 = vmatprep.mubr.bf16.mxu1 %v12512_v60 }
 0x19a   :  { %6487 = vmatpush1.bf16.msra.mxu0 %v10961_v54  ;;  %6651 = vmatpush1.bf16.msra.mxu1 %v10964_v55  ;;  %v11050_v54 = vld [vmem:[#allocation2 + $0x724] ss:$60 sps:$4 sm:$0xff]   ;;  %v11045_v55 = vld [vmem:[#allocation2 + $0x718] ss:$60 sps:$4 sm:$0xff]  }
 0x19b   :  { %6488 = vmatprep.subr.bf16.mxu0 %v10969_v32  ;;  %6652 = vmatprep.subr.bf16.mxu1 %v10972_v56  ;;  %v11048_v32 = vld [vmem:[#allocation2 + $0x720] ss:$60 sps:$4 sm:$0xff]   ;;  %v11053_v56 = vld [vmem:[#allocation2 + $0x794] ss:$60 sps:$4 sm:$0xff]  }
 0x19e   :  { %6489 = vmatpush1.bf16.msra.mxu0 %v10967_v57  ;;  %6653 = vmatpush1.bf16.msra.mxu1 %v10970_v58  ;;  %v11056_v57 = vld [vmem:[#allocation2 + $0x79c] ss:$60 sps:$4 sm:$0xff]   ;;  %v11051_v58 = vld [vmem:[#allocation2 + $0x790] ss:$60 sps:$4 sm:$0xff]  }
 0x19f   :  { %6490 = vmatprep.subr.bf16.mxu0 %v10975_v59  ;;  %6654 = vmatprep.subr.bf16.mxu1 %v10978_v61  ;;  %v11054_v59 = vld [vmem:[#allocation2 + $0x798] ss:$60 sps:$4 sm:$0xff]   ;;  %v11059_v61 = vld [vmem:[#allocation2 + $0x80c] ss:$60 sps:$4 sm:$0xff]  }
 0x1a2   :  { %6491 = vmatpush1.bf16.msra.mxu0 %v10973_v62  ;;  %6655 = vmatpush1.bf16.msra.mxu1 %v10976_v63  ;;  %v11062_v62 = vld [vmem:[#allocation2 + $0x814] ss:$60 sps:$4 sm:$0xff]   ;;  %v11057_v63 = vld [vmem:[#allocation2 + $0x808] ss:$60 sps:$4 sm:$0xff]  }
 0x1a3   :  { %6492 = vmatprep.subr.bf16.mxu0 %v10981_v0  ;;  %6656 = vmatprep.subr.bf16.mxu1 %v10984_v1  ;;  %v11060_v0 = vld [vmem:[#allocation2 + $0x810] ss:$60 sps:$4 sm:$0xff]   ;;  %v11065_v1 = vld [vmem:[#allocation2 + $0x884] ss:$60 sps:$4 sm:$0xff]  }
 0x1a6   :  { %6493 = vmatpush1.bf16.msra.mxu0 %v10979_v2  ;;  %6657 = vmatpush1.bf16.msra.mxu1 %v10982_v3  ;;  %v11068_v2 = vld [vmem:[#allocation2 + $0x88c] ss:$60 sps:$4 sm:$0xff]   ;;  %v11063_v3 = vld [vmem:[#allocation2 + $0x880] ss:$60 sps:$4 sm:$0xff]  }
 0x1a7   :  { %6494 = vmatprep.subr.bf16.mxu0 %v10987_v4  ;;  %6658 = vmatprep.subr.bf16.mxu1 %v10990_v5  ;;  %v11066_v4 = vld [vmem:[#allocation2 + $0x888] ss:$60 sps:$4 sm:$0xff]   ;;  %v11071_v5 = vld [vmem:[#allocation2 + $0x8fc] ss:$60 sps:$4 sm:$0xff]  }
 0x1aa   :  { %6495 = vmatpush1.bf16.msra.mxu0 %v10985_v6  ;;  %6659 = vmatpush1.bf16.msra.mxu1 %v10988_v7  ;;  %v11074_v6 = vld [vmem:[#allocation2 + $0x904] ss:$60 sps:$4 sm:$0xff]   ;;  %v11069_v7 = vld [vmem:[#allocation2 + $0x8f8] ss:$60 sps:$4 sm:$0xff]  }
 0x1ab   :  { %6496 = vmatprep.subr.bf16.mxu0 %v10993_v8  ;;  %6660 = vmatprep.subr.bf16.mxu1 %v10996_v10  ;;  %v11072_v8 = vld [vmem:[#allocation2 + $0x900] ss:$60 sps:$4 sm:$0xff]   ;;  %v11077_v10 = vld [vmem:[#allocation2 + $0x974] ss:$60 sps:$4 sm:$0xff]  }
 0x1ae   :  { %6497 = vmatpush1.bf16.msra.mxu0 %v10991_v11  ;;  %6661 = vmatpush1.bf16.msra.mxu1 %v10994_v12  ;;  %v11080_v11 = vld [vmem:[#allocation2 + $0x97c] ss:$60 sps:$4 sm:$0xff]   ;;  %v11075_v12 = vld [vmem:[#allocation2 + $0x970] ss:$60 sps:$4 sm:$0xff]  }
 0x1af   :  { %6498 = vmatprep.subr.bf16.mxu0 %v10999_v13  ;;  %6662 = vmatprep.subr.bf16.mxu1 %v11002_v14  ;;  %v11078_v13 = vld [vmem:[#allocation2 + $0x978] ss:$60 sps:$4 sm:$0xff]   ;;  %v11083_v14 = vld [vmem:[#allocation2 + $0x9ec] ss:$60 sps:$4 sm:$0xff]  }
 0x1b2   :  { %6499 = vmatpush1.bf16.msra.mxu0 %v10997_v15  ;;  %6663 = vmatpush1.bf16.msra.mxu1 %v11000_v17  ;;  %v11086_v15 = vld [vmem:[#allocation2 + $0x9f4] ss:$60 sps:$4 sm:$0xff]   ;;  %v11081_v17 = vld [vmem:[#allocation2 + $0x9e8] ss:$60 sps:$4 sm:$0xff]  }
 0x1b3   :  { %6500 = vmatprep.subr.bf16.mxu0 %v11005_v18  ;;  %6664 = vmatprep.subr.bf16.mxu1 %v11008_v19  ;;  %v11084_v18 = vld [vmem:[#allocation2 + $0x9f0] ss:$60 sps:$4 sm:$0xff]   ;;  %v11089_v19 = vld [vmem:[#allocation2 + $0xa64] ss:$60 sps:$4 sm:$0xff]  }
 0x1b6   :  { %6501 = vmatpush1.bf16.msra.mxu0 %v11003_v21  ;;  %6665 = vmatpush1.bf16.msra.mxu1 %v11006_v22  ;;  %v11092_v21 = vld [vmem:[#allocation2 + $0xa6c] ss:$60 sps:$4 sm:$0xff]   ;;  %v11087_v22 = vld [vmem:[#allocation2 + $0xa60] ss:$60 sps:$4 sm:$0xff]  }
 0x1b7   :  { %6502 = vmatprep.subr.bf16.mxu0 %v11011_v23  ;;  %6666 = vmatprep.subr.bf16.mxu1 %v11014_v25  ;;  %v11090_v23 = vld [vmem:[#allocation2 + $0xa68] ss:$60 sps:$4 sm:$0xff]   ;;  %v11095_v25 = vld [vmem:[#allocation2 + $0xadc] ss:$60 sps:$4 sm:$0xff]  }
 0x1ba   :  { %6503 = vmatpush1.bf16.msra.mxu0 %v11009_v27  ;;  %6667 = vmatpush1.bf16.msra.mxu1 %v11012_v28  ;;  %v11098_v27 = vld [vmem:[#allocation2 + $0xae4] ss:$60 sps:$4 sm:$0xff]   ;;  %v11093_v28 = vld [vmem:[#allocation2 + $0xad8] ss:$60 sps:$4 sm:$0xff]  }
 0x1bb   :  { %6504 = vmatprep.subr.bf16.mxu0 %v11017_v9  ;;  %6668 = vmatprep.subr.bf16.mxu1 %v11020_v30  ;;  %v11096_v9 = vld [vmem:[#allocation2 + $0xae0] ss:$60 sps:$4 sm:$0xff]   ;;  %v11101_v30 = vld [vmem:[#allocation2 + $0xb54] ss:$60 sps:$4 sm:$0xff]  }
 0x1be   :  { %6505 = vmatpush1.bf16.msra.mxu0 %v11015_v31  ;;  %6669 = vmatpush1.bf16.msra.mxu1 %v11018_v33  ;;  %v11104_v31 = vld [vmem:[#allocation2 + $0xb5c] ss:$60 sps:$4 sm:$0xff]   ;;  %v11099_v33 = vld [vmem:[#allocation2 + $0xb50] ss:$60 sps:$4 sm:$0xff]  }
 0x1bf   :  { %6506 = vmatprep.subr.bf16.mxu0 %v11023_v35  ;;  %6670 = vmatprep.subr.bf16.mxu1 %v11026_v36  ;;  %v11102_v35 = vld [vmem:[#allocation2 + $0xb58] ss:$60 sps:$4 sm:$0xff]   ;;  %v11107_v36 = vld [vmem:[#allocation2 + $0xbcc] ss:$60 sps:$4 sm:$0xff]  }
 0x1c2   :  { %6507 = vmatpush1.bf16.msra.mxu0 %v11021_v37  ;;  %6671 = vmatpush1.bf16.msra.mxu1 %v11024_v26  ;;  %v11110_v37 = vld [vmem:[#allocation2 + $0xbd4] ss:$60 sps:$4 sm:$0xff]   ;;  %v11105_v26 = vld [vmem:[#allocation2 + $0xbc8] ss:$60 sps:$4 sm:$0xff]  }
 0x1c3   :  { %6508 = vmatprep.subr.bf16.mxu0 %v11029_v39  ;;  %6672 = vmatprep.subr.bf16.mxu1 %v11032_v49  ;;  %v11108_v39 = vld [vmem:[#allocation2 + $0xbd0] ss:$60 sps:$4 sm:$0xff]   ;;  %v11113_v49 = vld [vmem:[#allocation2 + $0xc44] ss:$60 sps:$4 sm:$0xff]  }
 0x1c6   :  { %6509 = vmatpush1.bf16.msra.mxu0 %v11027_v40  ;;  %6673 = vmatpush1.bf16.msra.mxu1 %v11030_v41  ;;  %v11116_v40 = vld [vmem:[#allocation2 + $0xc4c] ss:$60 sps:$4 sm:$0xff]   ;;  %v11111_v41 = vld [vmem:[#allocation2 + $0xc40] ss:$60 sps:$4 sm:$0xff]  }
 0x1c7   :  { %6510 = vmatprep.subr.bf16.mxu0 %v11035_v44  ;;  %6674 = vmatprep.subr.bf16.mxu1 %v11038_v45  ;;  %v11114_v44 = vld [vmem:[#allocation2 + $0xc48] ss:$60 sps:$4 sm:$0xff]   ;;  %v11119_v45 = vld [vmem:[#allocation2 + $0xcbc] ss:$60 sps:$4 sm:$0xff]  }
 0x1ca   :  { %6511 = vmatpush1.bf16.msra.mxu0 %v11033_v29  ;;  %6675 = vmatpush1.bf16.msra.mxu1 %v11036_v46  ;;  %v11122_v29 = vld [vmem:[#allocation2 + $0xcc4] ss:$60 sps:$4 sm:$0xff]   ;;  %v11117_v46 = vld [vmem:[#allocation2 + $0xcb8] ss:$60 sps:$4 sm:$0xff]  }
 0x1cb   :  { %6512 = vmatprep.subr.bf16.mxu0 %v11041_v47  ;;  %6676 = vmatprep.subr.bf16.mxu1 %v11044_v50  ;;  %v11120_v47 = vld [vmem:[#allocation2 + $0xcc0] ss:$60 sps:$4 sm:$0xff]   ;;  %v11125_v50 = vld [vmem:[#allocation2 + $0xd34] ss:$60 sps:$4 sm:$0xff]  }
 0x1ce   :  { %6513 = vmatpush1.bf16.msra.mxu0 %v11039_v51  ;;  %6677 = vmatpush1.bf16.msra.mxu1 %v11042_v52  ;;  %v11128_v51 = vld [vmem:[#allocation2 + $0xd3c] ss:$60 sps:$4 sm:$0xff]   ;;  %v11123_v52 = vld [vmem:[#allocation2 + $0xd30] ss:$60 sps:$4 sm:$0xff]  }
 0x1cf   :  { %6514 = vmatprep.subr.bf16.mxu0 %v11047_v53  ;;  %6678 = vmatprep.subr.bf16.mxu1 %v11050_v54  ;;  %v11126_v53 = vld [vmem:[#allocation2 + $0xd38] ss:$60 sps:$4 sm:$0xff]   ;;  %v11131_v54 = vld [vmem:[#allocation2 + $0xdac] ss:$60 sps:$4 sm:$0xff]  }
 0x1d2   :  { %6515 = vmatpush1.bf16.msra.mxu0 %v11045_v55  ;;  %6679 = vmatpush1.bf16.msra.mxu1 %v11048_v32  ;;  %v11134_v55 = vld [vmem:[#allocation2 + $0xdb4] ss:$60 sps:$4 sm:$0xff]   ;;  %v11129_v32 = vld [vmem:[#allocation2 + $0xda8] ss:$60 sps:$4 sm:$0xff]  }
 0x1d3   :  { %6525 = vmatprep.subr.bf16.mxu0 %v11053_v56  ;;  %6689 = vmatprep.subr.bf16.mxu1 %v11056_v57  ;;  %v11132_v56 = vld [vmem:[#allocation2 + $0xdb0] ss:$60 sps:$4 sm:$0xff]   ;;  %v11137_v57 = vld [vmem:[#allocation2 + $0xe24] ss:$60 sps:$4 sm:$0xff]  }
 0x1d5   :  { %6517 = vmatmul.mubr.bf16.vlgmr.msra.gmra.mrb[4].mxu0 %v12521_v16  ;;  %6681 = vmatmul.mubr.bf16.vlgmr.msra.gmra.mrb[4].mxu1 %v12521_v16 }
 0x1d6   :  { %6526 = vmatpush1.bf16.msra.mxu0 %v11051_v58  ;;  %6690 = vmatpush1.bf16.msra.mxu1 %v11054_v59  ;;  %v11140_v58 = vld [vmem:[#allocation2 + $0xe2c] ss:$60 sps:$4 sm:$0xff]   ;;  %v11135_v59 = vld [vmem:[#allocation2 + $0xe20] ss:$60 sps:$4 sm:$0xff]  }
 0x1d7   :  { %6527 = vmatprep.subr.bf16.mxu0 %v11059_v61  ;;  %6691 = vmatprep.subr.bf16.mxu1 %v11062_v62  ;;  %v11138_v61 = vld [vmem:[#allocation2 + $0xe28] ss:$60 sps:$4 sm:$0xff]   ;;  %v11143_v62 = vld [vmem:[#allocation2 + $0xe9c] ss:$60 sps:$4 sm:$0xff]  }
 0x1d8   :  { %6557 = vmatprep.mubr.bf16.mxu0 %v12523_v20  ;;  %6721 = vmatprep.mubr.bf16.mxu1 %v12523_v20 }
 0x1da   :  { %6528 = vmatpush1.bf16.msra.mxu0 %v11057_v63  ;;  %6692 = vmatpush1.bf16.msra.mxu1 %v11060_v0  ;;  %v11146_v63 = vld [vmem:[#allocation2 + $0xea4] ss:$60 sps:$4 sm:$0xff]   ;;  %v11141_v0 = vld [vmem:[#allocation2 + $0xe98] ss:$60 sps:$4 sm:$0xff]  }
 0x1db   :  { %6529 = vmatprep.subr.bf16.mxu0 %v11065_v1  ;;  %6693 = vmatprep.subr.bf16.mxu1 %v11068_v2  ;;  %v11144_v1 = vld [vmem:[#allocation2 + $0xea0] ss:$60 sps:$4 sm:$0xff]   ;;  %v11149_v2 = vld [vmem:[#allocation2 + $0xf14] ss:$60 sps:$4 sm:$0xff]  }
 0x1de   :  { %6530 = vmatpush1.bf16.msra.mxu0 %v11063_v3  ;;  %6694 = vmatpush1.bf16.msra.mxu1 %v11066_v4  ;;  %v11152_v3 = vld [vmem:[#allocation2 + $0xf1c] ss:$60 sps:$4 sm:$0xff]   ;;  %v11147_v4 = vld [vmem:[#allocation2 + $0xf10] ss:$60 sps:$4 sm:$0xff]  }
 0x1df   :  { %6531 = vmatprep.subr.bf16.mxu0 %v11071_v5  ;;  %6695 = vmatprep.subr.bf16.mxu1 %v11074_v6  ;;  %v11150_v5 = vld [vmem:[#allocation2 + $0xf18] ss:$60 sps:$4 sm:$0xff]   ;;  %v11155_v6 = vld [vmem:[#allocation2 + $0xf8c] ss:$60 sps:$4 sm:$0xff]  }
 0x1e2   :  { %6532 = vmatpush1.bf16.msra.mxu0 %v11069_v7  ;;  %6696 = vmatpush1.bf16.msra.mxu1 %v11072_v8  ;;  %v11158_v7 = vld [vmem:[#allocation2 + $0xf94] ss:$60 sps:$4 sm:$0xff]   ;;  %v11153_v8 = vld [vmem:[#allocation2 + $0xf88] ss:$60 sps:$4 sm:$0xff]  }
 0x1e3   :  { %6533 = vmatprep.subr.bf16.mxu0 %v11077_v10  ;;  %6697 = vmatprep.subr.bf16.mxu1 %v11080_v11  ;;  %v11156_v10 = vld [vmem:[#allocation2 + $0xf90] ss:$60 sps:$4 sm:$0xff]   ;;  %v11161_v11 = vld [vmem:[#allocation2 + $0x1004] ss:$60 sps:$4 sm:$0xff]  }
 0x1e6   :  { %6534 = vmatpush1.bf16.msra.mxu0 %v11075_v12  ;;  %6698 = vmatpush1.bf16.msra.mxu1 %v11078_v13  ;;  %v11164_v12 = vld [vmem:[#allocation2 + $0x100c] ss:$60 sps:$4 sm:$0xff]   ;;  %v11159_v13 = vld [vmem:[#allocation2 + $0x1000] ss:$60 sps:$4 sm:$0xff]  }
 0x1e7   :  { %6535 = vmatprep.subr.bf16.mxu0 %v11083_v14  ;;  %6699 = vmatprep.subr.bf16.mxu1 %v11086_v15  ;;  %v11162_v14 = vld [vmem:[#allocation2 + $0x1008] ss:$60 sps:$4 sm:$0xff]   ;;  %v11167_v15 = vld [vmem:[#allocation2 + $0x107c] ss:$60 sps:$4 sm:$0xff]  }
 0x1ea   :  { %6536 = vmatpush1.bf16.msra.mxu0 %v11081_v17  ;;  %6700 = vmatpush1.bf16.msra.mxu1 %v11084_v18  ;;  %v11170_v17 = vld [vmem:[#allocation2 + $0x1084] ss:$60 sps:$4 sm:$0xff]   ;;  %v11165_v18 = vld [vmem:[#allocation2 + $0x1078] ss:$60 sps:$4 sm:$0xff]  }
 0x1eb   :  { %6537 = vmatprep.subr.bf16.mxu0 %v11089_v19  ;;  %6701 = vmatprep.subr.bf16.mxu1 %v11092_v21  ;;  %v11168_v19 = vld [vmem:[#allocation2 + $0x1080] ss:$60 sps:$4 sm:$0xff]   ;;  %v11173_v21 = vld [vmem:[#allocation2 + $0x10f4] ss:$60 sps:$4 sm:$0xff]  }
 0x1ee   :  { %6538 = vmatpush1.bf16.msra.mxu0 %v11087_v22  ;;  %6702 = vmatpush1.bf16.msra.mxu1 %v11090_v23  ;;  %v11176_v22 = vld [vmem:[#allocation2 + $0x10fc] ss:$60 sps:$4 sm:$0xff]   ;;  %v11171_v23 = vld [vmem:[#allocation2 + $0x10f0] ss:$60 sps:$4 sm:$0xff]  }
 0x1ef   :  { %6539 = vmatprep.subr.bf16.mxu0 %v11095_v25  ;;  %6703 = vmatprep.subr.bf16.mxu1 %v11098_v27  ;;  %v11174_v25 = vld [vmem:[#allocation2 + $0x10f8] ss:$60 sps:$4 sm:$0xff]   ;;  %v11179_v27 = vld [vmem:[#allocation2 + $0x116c] ss:$60 sps:$4 sm:$0xff]  }
 0x1f2   :  { %6540 = vmatpush1.bf16.msra.mxu0 %v11093_v28  ;;  %6704 = vmatpush1.bf16.msra.mxu1 %v11096_v9  ;;  %v11182_v28 = vld [vmem:[#allocation2 + $0x1174] ss:$60 sps:$4 sm:$0xff]   ;;  %v11177_v9 = vld [vmem:[#allocation2 + $0x1168] ss:$60 sps:$4 sm:$0xff]  }
 0x1f3   :  { %6541 = vmatprep.subr.bf16.mxu0 %v11101_v30  ;;  %6705 = vmatprep.subr.bf16.mxu1 %v11104_v31  ;;  %v11180_v30 = vld [vmem:[#allocation2 + $0x1170] ss:$60 sps:$4 sm:$0xff]   ;;  %v11185_v31 = vld [vmem:[#allocation2 + $0x11e4] ss:$60 sps:$4 sm:$0xff]  }
 0x1f6   :  { %6542 = vmatpush1.bf16.msra.mxu0 %v11099_v33  ;;  %6706 = vmatpush1.bf16.msra.mxu1 %v11102_v35  ;;  %v11188_v33 = vld [vmem:[#allocation2 + $0x11ec] ss:$60 sps:$4 sm:$0xff]   ;;  %v11183_v35 = vld [vmem:[#allocation2 + $0x11e0] ss:$60 sps:$4 sm:$0xff]  }
 0x1f7   :  { %6543 = vmatprep.subr.bf16.mxu0 %v11107_v36  ;;  %6707 = vmatprep.subr.bf16.mxu1 %v11110_v37  ;;  %v11186_v36 = vld [vmem:[#allocation2 + $0x11e8] ss:$60 sps:$4 sm:$0xff]   ;;  %v11191_v37 = vld [vmem:[#allocation2 + $0x125c] ss:$60 sps:$4 sm:$0xff]  }
 0x1fa   :  { %6544 = vmatpush1.bf16.msra.mxu0 %v11105_v26  ;;  %6708 = vmatpush1.bf16.msra.mxu1 %v11108_v39  ;;  %v11194_v26 = vld [vmem:[#allocation2 + $0x1264] ss:$60 sps:$4 sm:$0xff]   ;;  %v11189_v39 = vld [vmem:[#allocation2 + $0x1258] ss:$60 sps:$4 sm:$0xff]  }
 0x1fb   :  { %6545 = vmatprep.subr.bf16.mxu0 %v11113_v49  ;;  %6709 = vmatprep.subr.bf16.mxu1 %v11116_v40  ;;  %v11192_v49 = vld [vmem:[#allocation2 + $0x1260] ss:$60 sps:$4 sm:$0xff]   ;;  %v11197_v40 = vld [vmem:[#allocation2 + $0x12d4] ss:$60 sps:$4 sm:$0xff]  }
 0x1fe   :  { %6546 = vmatpush1.bf16.msra.mxu0 %v11111_v41  ;;  %6710 = vmatpush1.bf16.msra.mxu1 %v11114_v44  ;;  %v11200_v41 = vld [vmem:[#allocation2 + $0x12dc] ss:$60 sps:$4 sm:$0xff]   ;;  %v11195_v44 = vld [vmem:[#allocation2 + $0x12d0] ss:$60 sps:$4 sm:$0xff]  }
 0x1ff   :  { %6547 = vmatprep.subr.bf16.mxu0 %v11119_v45  ;;  %6711 = vmatprep.subr.bf16.mxu1 %v11122_v29  ;;  %v11198_v45 = vld [vmem:[#allocation2 + $0x12d8] ss:$60 sps:$4 sm:$0xff]   ;;  %v11203_v29 = vld [vmem:[#allocation2 + $0x134c] ss:$60 sps:$4 sm:$0xff]  }
 0x202   :  { %6548 = vmatpush1.bf16.msra.mxu0 %v11117_v46  ;;  %6712 = vmatpush1.bf16.msra.mxu1 %v11120_v47  ;;  %v11206_v46 = vld [vmem:[#allocation2 + $0x1354] ss:$60 sps:$4 sm:$0xff]   ;;  %v11201_v47 = vld [vmem:[#allocation2 + $0x1348] ss:$60 sps:$4 sm:$0xff]  }
 0x203   :  { %6549 = vmatprep.subr.bf16.mxu0 %v11125_v50  ;;  %6713 = vmatprep.subr.bf16.mxu1 %v11128_v51  ;;  %v11204_v50 = vld [vmem:[#allocation2 + $0x1350] ss:$60 sps:$4 sm:$0xff]   ;;  %v11209_v51 = vld [vmem:[#allocation2 + $0x13c4] ss:$60 sps:$4 sm:$0xff]  }
 0x206   :  { %6550 = vmatpush1.bf16.msra.mxu0 %v11123_v52  ;;  %6714 = vmatpush1.bf16.msra.mxu1 %v11126_v53  ;;  %v11212_v52 = vld [vmem:[#allocation2 + $0x13cc] ss:$60 sps:$4 sm:$0xff]   ;;  %v11207_v53 = vld [vmem:[#allocation2 + $0x13c0] ss:$60 sps:$4 sm:$0xff]  }
 0x207   :  { %6551 = vmatprep.subr.bf16.mxu0 %v11131_v54  ;;  %6715 = vmatprep.subr.bf16.mxu1 %v11134_v55  ;;  %v11210_v54 = vld [vmem:[#allocation2 + $0x13c8] ss:$60 sps:$4 sm:$0xff]   ;;  %v11215_v55 = vld [vmem:[#allocation2 + $0x143c] ss:$60 sps:$4 sm:$0xff]  }
 0x20a   :  { %6552 = vmatpush1.bf16.msra.mxu0 %v11129_v32  ;;  %6716 = vmatpush1.bf16.msra.mxu1 %v11132_v56  ;;  %v11218_v32 = vld [vmem:[#allocation2 + $0x1444] ss:$60 sps:$4 sm:$0xff]   ;;  %v11213_v56 = vld [vmem:[#allocation2 + $0x1438] ss:$60 sps:$4 sm:$0xff]  }
 0x20b   :  { %6553 = vmatprep.subr.bf16.mxu0 %v11137_v57  ;;  %6717 = vmatprep.subr.bf16.mxu1 %v11140_v58  ;;  %v11216_v57 = vld [vmem:[#allocation2 + $0x1440] ss:$60 sps:$4 sm:$0xff]   ;;  %v11221_v58 = vld [vmem:[#allocation2 + $0x14b4] ss:$60 sps:$4 sm:$0xff]  }
 0x20e   :  { %6554 = vmatpush1.bf16.msra.mxu0 %v11135_v59  ;;  %6718 = vmatpush1.bf16.msra.mxu1 %v11138_v61  ;;  %v11224_v59 = vld [vmem:[#allocation2 + $0x14bc] ss:$60 sps:$4 sm:$0xff]   ;;  %v11219_v61 = vld [vmem:[#allocation2 + $0x14b0] ss:$60 sps:$4 sm:$0xff]  }
 0x20f   :  { %6555 = vmatprep.subr.bf16.mxu0 %v11143_v62  ;;  %6719 = vmatprep.subr.bf16.mxu1 %v11146_v63  ;;  %v11222_v62 = vld [vmem:[#allocation2 + $0x14b8] ss:$60 sps:$4 sm:$0xff]   ;;  %v11227_v63 = vld [vmem:[#allocation2 + $0x152c] ss:$60 sps:$4 sm:$0xff]  }
 0x212   :  { %6556 = vmatpush1.bf16.msra.mxu0 %v11141_v0  ;;  %6720 = vmatpush1.bf16.msra.mxu1 %v11144_v1  ;;  %v11230_v0 = vld [vmem:[#allocation2 + $0x1534] ss:$60 sps:$4 sm:$0xff]   ;;  %v11225_v1 = vld [vmem:[#allocation2 + $0x1528] ss:$60 sps:$4 sm:$0xff]  }
 0x213   :  { %6566 = vmatprep.subr.bf16.mxu0 %v11149_v2  ;;  %6730 = vmatprep.subr.bf16.mxu1 %v11152_v3  ;;  %v11228_v2 = vld [vmem:[#allocation2 + $0x1530] ss:$60 sps:$4 sm:$0xff]   ;;  %v11233_v3 = vld [vmem:[#allocation2 + $0x15a4] ss:$60 sps:$4 sm:$0xff]  }
 0x215   :  { %6558 = vmatmul.mubr.bf16.vlgmr.msra.gmra.mrb[4].mxu0 %v12531_v24  ;;  %6722 = vmatmul.mubr.bf16.vlgmr.msra.gmra.mrb[4].mxu1 %v12531_v24 }
 0x216   :  { %6567 = vmatpush1.bf16.msra.mxu0 %v11147_v4  ;;  %6731 = vmatpush1.bf16.msra.mxu1 %v11150_v5  ;;  %v11236_v4 = vld [vmem:[#allocation2 + $0x15ac] ss:$60 sps:$4 sm:$0xff]   ;;  %v11231_v5 = vld [vmem:[#allocation2 + $0x15a0] ss:$60 sps:$4 sm:$0xff]  }
 0x217   :  { %6568 = vmatprep.subr.bf16.mxu0 %v11155_v6  ;;  %6732 = vmatprep.subr.bf16.mxu1 %v11158_v7  ;;  %v11234_v6 = vld [vmem:[#allocation2 + $0x15a8] ss:$60 sps:$4 sm:$0xff]   ;;  %v11239_v7 = vld [vmem:[#allocation2 + $0x161c] ss:$60 sps:$4 sm:$0xff]  }
 0x218   :  { %6598 = vmatprep.mubr.bf16.mxu0 %v12546_v34  ;;  %6762 = vmatprep.mubr.bf16.mxu1 %v12546_v34 }
 0x21a   :  { %6569 = vmatpush1.bf16.msra.mxu0 %v11153_v8  ;;  %6733 = vmatpush1.bf16.msra.mxu1 %v11156_v10  ;;  %v11242_v8 = vld [vmem:[#allocation2 + $0x1624] ss:$60 sps:$4 sm:$0xff]   ;;  %v11237_v10 = vld [vmem:[#allocation2 + $0x1618] ss:$60 sps:$4 sm:$0xff]  }
 0x21b   :  { %6570 = vmatprep.subr.bf16.mxu0 %v11161_v11  ;;  %6734 = vmatprep.subr.bf16.mxu1 %v11164_v12  ;;  %v11240_v11 = vld [vmem:[#allocation2 + $0x1620] ss:$60 sps:$4 sm:$0xff]   ;;  %v11245_v12 = vld [vmem:[#allocation2 + $0x1694] ss:$60 sps:$4 sm:$0xff]  }
 0x21e   :  { %6571 = vmatpush1.bf16.msra.mxu0 %v11159_v13  ;;  %6735 = vmatpush1.bf16.msra.mxu1 %v11162_v14  ;;  %v11248_v13 = vld [vmem:[#allocation2 + $0x169c] ss:$60 sps:$4 sm:$0xff]   ;;  %v11243_v14 = vld [vmem:[#allocation2 + $0x1690] ss:$60 sps:$4 sm:$0xff]  }
 0x21f   :  { %6572 = vmatprep.subr.bf16.mxu0 %v11167_v15  ;;  %6736 = vmatprep.subr.bf16.mxu1 %v11170_v17  ;;  %v11246_v15 = vld [vmem:[#allocation2 + $0x1698] ss:$60 sps:$4 sm:$0xff]   ;;  %v11251_v17 = vld [vmem:[#allocation2 + $0x170c] ss:$60 sps:$4 sm:$0xff]  }
 0x222   :  { %6573 = vmatpush1.bf16.msra.mxu0 %v11165_v18  ;;  %6737 = vmatpush1.bf16.msra.mxu1 %v11168_v19  ;;  %v11254_v18 = vld [vmem:[#allocation2 + $0x1714] ss:$60 sps:$4 sm:$0xff]   ;;  %v11249_v19 = vld [vmem:[#allocation2 + $0x1708] ss:$60 sps:$4 sm:$0xff]  }
 0x223   :  { %6574 = vmatprep.subr.bf16.mxu0 %v11173_v21  ;;  %6738 = vmatprep.subr.bf16.mxu1 %v11176_v22  ;;  %v11252_v21 = vld [vmem:[#allocation2 + $0x1710] ss:$60 sps:$4 sm:$0xff]   ;;  %v11257_v22 = vld [vmem:[#allocation2 + $0x1784] ss:$60 sps:$4 sm:$0xff]  }
 0x226   :  { %6575 = vmatpush1.bf16.msra.mxu0 %v11171_v23  ;;  %6739 = vmatpush1.bf16.msra.mxu1 %v11174_v25  ;;  %v11260_v23 = vld [vmem:[#allocation2 + $0x178c] ss:$60 sps:$4 sm:$0xff]   ;;  %v11255_v25 = vld [vmem:[#allocation2 + $0x1780] ss:$60 sps:$4 sm:$0xff]  }
 0x227   :  { %6576 = vmatprep.subr.bf16.mxu0 %v11179_v27  ;;  %6740 = vmatprep.subr.bf16.mxu1 %v11182_v28  ;;  %v11258_v27 = vld [vmem:[#allocation2 + $0x1788] ss:$60 sps:$4 sm:$0xff]   ;;  %v11263_v28 = vld [vmem:[#allocation2 + $0x17fc] ss:$60 sps:$4 sm:$0xff]  }
 0x22a   :  { %6577 = vmatpush1.bf16.msra.mxu0 %v11177_v9  ;;  %6741 = vmatpush1.bf16.msra.mxu1 %v11180_v30  ;;  %v11266_v9 = vld [vmem:[#allocation2 + $0x1804] ss:$60 sps:$4 sm:$0xff]   ;;  %v11261_v30 = vld [vmem:[#allocation2 + $0x17f8] ss:$60 sps:$4 sm:$0xff]  }
 0x22b   :  { %6578 = vmatprep.subr.bf16.mxu0 %v11185_v31  ;;  %6742 = vmatprep.subr.bf16.mxu1 %v11188_v33  ;;  %v11264_v31 = vld [vmem:[#allocation2 + $0x1800] ss:$60 sps:$4 sm:$0xff]   ;;  %v11269_v33 = vld [vmem:[#allocation2 + $0x1874] ss:$60 sps:$4 sm:$0xff]  }
 0x22e   :  { %6579 = vmatpush1.bf16.msra.mxu0 %v11183_v35  ;;  %6743 = vmatpush1.bf16.msra.mxu1 %v11186_v36  ;;  %v11272_v35 = vld [vmem:[#allocation2 + $0x187c] ss:$60 sps:$4 sm:$0xff]   ;;  %v11267_v36 = vld [vmem:[#allocation2 + $0x1870] ss:$60 sps:$4 sm:$0xff]  }
 0x22f   :  { %6580 = vmatprep.subr.bf16.mxu0 %v11191_v37  ;;  %6744 = vmatprep.subr.bf16.mxu1 %v11194_v26  ;;  %v11270_v37 = vld [vmem:[#allocation2 + $0x1878] ss:$60 sps:$4 sm:$0xff]   ;;  %v11275_v26 = vld [vmem:[#allocation2 + $0x18ec] ss:$60 sps:$4 sm:$0xff]  }
 0x232   :  { %6581 = vmatpush1.bf16.msra.mxu0 %v11189_v39  ;;  %6745 = vmatpush1.bf16.msra.mxu1 %v11192_v49  ;;  %v11278_v39 = vld [vmem:[#allocation2 + $0x18f4] ss:$60 sps:$4 sm:$0xff]   ;;  %v11273_v49 = vld [vmem:[#allocation2 + $0x18e8] ss:$60 sps:$4 sm:$0xff]  }
 0x233   :  { %6582 = vmatprep.subr.bf16.mxu0 %v11197_v40  ;;  %6746 = vmatprep.subr.bf16.mxu1 %v11200_v41  ;;  %v11276_v40 = vld [vmem:[#allocation2 + $0x18f0] ss:$60 sps:$4 sm:$0xff]   ;;  %v11281_v41 = vld [vmem:[#allocation2 + $0x1964] ss:$60 sps:$4 sm:$0xff]  }
 0x236   :  { %6583 = vmatpush1.bf16.msra.mxu0 %v11195_v44  ;;  %6747 = vmatpush1.bf16.msra.mxu1 %v11198_v45  ;;  %v11284_v44 = vld [vmem:[#allocation2 + $0x196c] ss:$60 sps:$4 sm:$0xff]  }
 0x237   :  { %6584 = vmatprep.subr.bf16.mxu0 %v11203_v29  ;;  %6748 = vmatprep.subr.bf16.mxu1 %v11206_v46 }
 0x23a   :  { %6585 = vmatpush1.bf16.msra.mxu0 %v11201_v47  ;;  %6749 = vmatpush1.bf16.msra.mxu1 %v11204_v50 }
 0x23b   :  { %6586 = vmatprep.subr.bf16.mxu0 %v11209_v51  ;;  %6750 = vmatprep.subr.bf16.mxu1 %v11212_v52  ;;  %v11279_v52 = vld [vmem:[#allocation2 + $0x1960] ss:$60 sps:$4 sm:$0xff]  }
 0x23e   :  { %6587 = vmatpush1.bf16.msra.mxu0 %v11207_v53  ;;  %6751 = vmatpush1.bf16.msra.mxu1 %v11210_v54  ;;  %v11282_v53 = vld [vmem:[#allocation2 + $0x1968] ss:$60 sps:$4 sm:$0xff]  }
 0x23f   :  { %6588 = vmatprep.subr.bf16.mxu0 %v11215_v55  ;;  %6752 = vmatprep.subr.bf16.mxu1 %v11218_v32  ;;  %v11287_v32 = vld [vmem:[#allocation2 + $0x19dc] ss:$60 sps:$4 sm:$0xff]  }
 0x242   :  { %6589 = vmatpush1.bf16.msra.mxu0 %v11213_v56  ;;  %6753 = vmatpush1.bf16.msra.mxu1 %v11216_v57  ;;  %v11290_v56 = vld [vmem:[#allocation2 + $0x19e4] ss:$60 sps:$4 sm:$0xff]   ;;  %v11285_v57 = vld [vmem:[#allocation2 + $0x19d8] ss:$60 sps:$4 sm:$0xff]  }
 0x243   :  { %6590 = vmatprep.subr.bf16.mxu0 %v11221_v58  ;;  %6754 = vmatprep.subr.bf16.mxu1 %v11224_v59  ;;  %v11288_v58 = vld [vmem:[#allocation2 + $0x19e0] ss:$60 sps:$4 sm:$0xff]   ;;  %v11293_v59 = vld [vmem:[#allocation2 + $0x1a54] ss:$60 sps:$4 sm:$0xff]  }
 0x246   :  { %6591 = vmatpush1.bf16.msra.mxu0 %v11219_v61  ;;  %6755 = vmatpush1.bf16.msra.mxu1 %v11222_v62  ;;  %v11296_v61 = vld [vmem:[#allocation2 + $0x1a5c] ss:$60 sps:$4 sm:$0xff]   ;;  %v11291_v62 = vld [vmem:[#allocation2 + $0x1a50] ss:$60 sps:$4 sm:$0xff]  }
 0x247   :  { %6592 = vmatprep.subr.bf16.mxu0 %v11227_v63  ;;  %6756 = vmatprep.subr.bf16.mxu1 %v11230_v0  ;;  %v11294_v63 = vld [vmem:[#allocation2 + $0x1a58] ss:$60 sps:$4 sm:$0xff]   ;;  %v11299_v0 = vld [vmem:[#allocation2 + $0x1acc] ss:$60 sps:$4 sm:$0xff]  }
 0x24a   :  { %6593 = vmatpush1.bf16.msra.mxu0 %v11225_v1  ;;  %6757 = vmatpush1.bf16.msra.mxu1 %v11228_v2  ;;  %v11302_v1 = vld [vmem:[#allocation2 + $0x1ad4] ss:$60 sps:$4 sm:$0xff]   ;;  %v11297_v2 = vld [vmem:[#allocation2 + $0x1ac8] ss:$60 sps:$4 sm:$0xff]  }
 0x24b   :  { %6594 = vmatprep.subr.bf16.mxu0 %v11233_v3  ;;  %6758 = vmatprep.subr.bf16.mxu1 %v11236_v4  ;;  %v11300_v3 = vld [vmem:[#allocation2 + $0x1ad0] ss:$60 sps:$4 sm:$0xff]   ;;  %v11305_v4 = vld [vmem:[#allocation2 + $0x1b44] ss:$60 sps:$4 sm:$0xff]  }
 0x24e   :  { %6595 = vmatpush1.bf16.msra.mxu0 %v11231_v5  ;;  %6759 = vmatpush1.bf16.msra.mxu1 %v11234_v6  ;;  %v11308_v5 = vld [vmem:[#allocation2 + $0x1b4c] ss:$60 sps:$4 sm:$0xff]   ;;  %v11303_v6 = vld [vmem:[#allocation2 + $0x1b40] ss:$60 sps:$4 sm:$0xff]  }
 0x24f   :  { %6596 = vmatprep.subr.bf16.mxu0 %v11239_v7  ;;  %6760 = vmatprep.subr.bf16.mxu1 %v11242_v8  ;;  %v11306_v7 = vld [vmem:[#allocation2 + $0x1b48] ss:$60 sps:$4 sm:$0xff]   ;;  %v11311_v8 = vld [vmem:[#allocation2 + $0x1bbc] ss:$60 sps:$4 sm:$0xff]  }
 0x252   :  { %6597 = vmatpush1.bf16.msra.mxu0 %v11237_v10  ;;  %6761 = vmatpush1.bf16.msra.mxu1 %v11240_v11  ;;  %v11314_v10 = vld [vmem:[#allocation2 + $0x1bc4] ss:$60 sps:$4 sm:$0xff]   ;;  %v11309_v11 = vld [vmem:[#allocation2 + $0x1bb8] ss:$60 sps:$4 sm:$0xff]  }
 0x253   :  { %6607 = vmatprep.subr.bf16.mxu0 %v11245_v12  ;;  %6771 = vmatprep.subr.bf16.mxu1 %v11248_v13  ;;  %v11312_v12 = vld [vmem:[#allocation2 + $0x1bc0] ss:$60 sps:$4 sm:$0xff]   ;;  %v11317_v13 = vld [vmem:[#allocation2 + $0x1c34] ss:$60 sps:$4 sm:$0xff]  }
 0x255   :  { %6599 = vmatmul.mubr.bf16.vlgmr.msra.gmra.mrb[4].mxu0 %v12559_v38  ;;  %6763 = vmatmul.mubr.bf16.vlgmr.msra.gmra.mrb[4].mxu1 %v12559_v38 }
 0x256   :  { %6608 = vmatpush1.bf16.msra.mxu0 %v11243_v14  ;;  %6772 = vmatpush1.bf16.msra.mxu1 %v11246_v15  ;;  %v11320_v14 = vld [vmem:[#allocation2 + $0x1c3c] ss:$60 sps:$4 sm:$0xff]   ;;  %v11315_v15 = vld [vmem:[#allocation2 + $0x1c30] ss:$60 sps:$4 sm:$0xff]  }
 0x257   :  { %6609 = vmatprep.subr.bf16.mxu0 %v11251_v17  ;;  %6773 = vmatprep.subr.bf16.mxu1 %v11254_v18  ;;  %v11318_v17 = vld [vmem:[#allocation2 + $0x1c38] ss:$60 sps:$4 sm:$0xff]   ;;  %v11323_v18 = vld [vmem:[#allocation2 + $0x1cac] ss:$60 sps:$4 sm:$0xff]  }
 0x258   :  { %6639 = vmatprep.mubr.bf16.mxu0 %v12561_v42  ;;  %6803 = vmatprep.mubr.bf16.mxu1 %v12561_v42 }
 0x25a   :  { %6610 = vmatpush1.bf16.msra.mxu0 %v11249_v19  ;;  %6774 = vmatpush1.bf16.msra.mxu1 %v11252_v21  ;;  %v11326_v19 = vld [vmem:[#allocation2 + $0x1cb4] ss:$60 sps:$4 sm:$0xff]   ;;  %v11321_v21 = vld [vmem:[#allocation2 + $0x1ca8] ss:$60 sps:$4 sm:$0xff]  }
 0x25b   :  { %6611 = vmatprep.subr.bf16.mxu0 %v11257_v22  ;;  %6775 = vmatprep.subr.bf16.mxu1 %v11260_v23  ;;  %v11324_v22 = vld [vmem:[#allocation2 + $0x1cb0] ss:$60 sps:$4 sm:$0xff]   ;;  %v11329_v23 = vld [vmem:[#allocation2 + $0x1d24] ss:$60 sps:$4 sm:$0xff]  }
 0x25e   :  { %6612 = vmatpush1.bf16.msra.mxu0 %v11255_v25  ;;  %6776 = vmatpush1.bf16.msra.mxu1 %v11258_v27  ;;  %v11332_v25 = vld [vmem:[#allocation2 + $0x1d2c] ss:$60 sps:$4 sm:$0xff]   ;;  %v11327_v27 = vld [vmem:[#allocation2 + $0x1d20] ss:$60 sps:$4 sm:$0xff]  }
 0x25f   :  { %6613 = vmatprep.subr.bf16.mxu0 %v11263_v28  ;;  %6777 = vmatprep.subr.bf16.mxu1 %v11266_v9  ;;  %v11330_v28 = vld [vmem:[#allocation2 + $0x1d28] ss:$60 sps:$4 sm:$0xff]   ;;  %v11335_v9 = vld [vmem:[#allocation2 + $0x1d9c] ss:$60 sps:$4 sm:$0xff]  }
 0x262   :  { %6614 = vmatpush1.bf16.msra.mxu0 %v11261_v30  ;;  %6778 = vmatpush1.bf16.msra.mxu1 %v11264_v31  ;;  %v11338_v30 = vld [vmem:[#allocation2 + $0x1da4] ss:$60 sps:$4 sm:$0xff]   ;;  %v11333_v31 = vld [vmem:[#allocation2 + $0x1d98] ss:$60 sps:$4 sm:$0xff]  }
 0x263   :  { %6615 = vmatprep.subr.bf16.mxu0 %v11269_v33  ;;  %6779 = vmatprep.subr.bf16.mxu1 %v11272_v35  ;;  %v11336_v33 = vld [vmem:[#allocation2 + $0x1da0] ss:$60 sps:$4 sm:$0xff]  }
 0x264   :  { %v11341_v35 = vld [vmem:[#allocation2 + $0x24] ss:$60 sps:$4 sm:$0xff]  }
 0x266   :  { %6616 = vmatpush1.bf16.msra.mxu0 %v11267_v36  ;;  %6780 = vmatpush1.bf16.msra.mxu1 %v11270_v37  ;;  %v11344_v36 = vld [vmem:[#allocation2 + $0x2c] ss:$60 sps:$4 sm:$0xff]   ;;  %v11339_v37 = vld [vmem:[#allocation2 + $0x20] ss:$60 sps:$4 sm:$0xff]  }
 0x267   :  { %6617 = vmatprep.subr.bf16.mxu0 %v11275_v26  ;;  %6781 = vmatprep.subr.bf16.mxu1 %v11278_v39  ;;  %v11342_v26 = vld [vmem:[#allocation2 + $0x28] ss:$60 sps:$4 sm:$0xff]   ;;  %v11347_v39 = vld [vmem:[#allocation2 + $0x9c] ss:$60 sps:$4 sm:$0xff]  }
 0x268   :  { %v12587_v45 = vpop.f32.mrb[0].mxu0  ;;  %v12589_v29 = vpop.f32.mrb[0].mxu1 }
 0x269   :  { %v12591_v46 = vpop.f32.mrb[1].mxu0  ;;  %v12593_v47 = vpop.f32.mrb[1].mxu1 }
 0x26a   :  { %v6317_v50 = vpop.f32.mrb[2].mxu0  ;;  %v6481_v51 = vpop.f32.mrb[2].mxu1  ;;  %6618 = vmatpush1.bf16.msra.mxu0 %v11273_v49  ;;  %6782 = vmatpush1.bf16.msra.mxu1 %v11276_v40  ;;  %v11350_v49 = vld [vmem:[#allocation2 + $0xa4] ss:$60 sps:$4 sm:$0xff]   ;;  %v11345_v40 = vld [vmem:[#allocation2 + $0x98] ss:$60 sps:$4 sm:$0xff]  }
 0x26b   :  { %v6318_v54 = vpop.f32.mrb[3].mxu0  ;;  %v6482_v55 = vpop.f32.mrb[3].mxu1  ;;  %6619 = vmatprep.subr.bf16.mxu0 %v11281_v41  ;;  %6783 = vmatprep.subr.bf16.mxu1 %v11284_v44  ;;  %v11348_v41 = vld [vmem:[#allocation2 + $0xa0] ss:$60 sps:$4 sm:$0xff]   ;;  %v11353_v44 = vld [vmem:[#allocation2 + $0x114] ss:$60 sps:$4 sm:$0xff]  }
 0x26c   :  { %v11356_v50 = vld [vmem:[#allocation2 + $0x11c] ss:$60 sps:$4 sm:$0xff]   ;;  %v11351_v51 = vld [vmem:[#allocation2 + $0x110] ss:$60 sps:$4 sm:$0xff]   ;;  %v11357_v55 = vld [vmem:[#allocation2 + $0x188] ss:$60 sps:$4 sm:$0xff]  }
 0x26d   :  { %v11362_v54 = vld [vmem:[#allocation2 + $0x194] ss:$60 sps:$4 sm:$0xff]  }
 0x26e   :  { %6620 = vmatpush1.bf16.msra.mxu0 %v11279_v52  ;;  %6784 = vmatpush1.bf16.msra.mxu1 %v11282_v53  ;;  %v11354_v52 = vld [vmem:[#allocation2 + $0x118] ss:$60 sps:$4 sm:$0xff]   ;;  %v11359_v53 = vld [vmem:[#allocation2 + $0x18c] ss:$60 sps:$4 sm:$0xff]  }
 0x26f   :  { %6621 = vmatprep.subr.bf16.mxu0 %v11287_v32  ;;  %6785 = vmatprep.subr.bf16.mxu1 %v11290_v56  ;;  %v11360_v32 = vld [vmem:[#allocation2 + $0x190] ss:$60 sps:$4 sm:$0xff]   ;;  %v11365_v56 = vld [vmem:[#allocation2 + $0x204] ss:$60 sps:$4 sm:$0xff]  }
 0x272   :  { %6622 = vmatpush1.bf16.msra.mxu0 %v11285_v57  ;;  %6786 = vmatpush1.bf16.msra.mxu1 %v11288_v58  ;;  %v11368_v57 = vld [vmem:[#allocation2 + $0x20c] ss:$60 sps:$4 sm:$0xff]   ;;  %v11363_v58 = vld [vmem:[#allocation2 + $0x200] ss:$60 sps:$4 sm:$0xff]  }
 0x273   :  { %6623 = vmatprep.subr.bf16.mxu0 %v11293_v59  ;;  %6787 = vmatprep.subr.bf16.mxu1 %v11296_v61  ;;  %v11366_v59 = vld [vmem:[#allocation2 + $0x208] ss:$60 sps:$4 sm:$0xff]   ;;  %v11371_v61 = vld [vmem:[#allocation2 + $0x27c] ss:$60 sps:$4 sm:$0xff]  }
 0x276   :  { %6624 = vmatpush1.bf16.msra.mxu0 %v11291_v62  ;;  %6788 = vmatpush1.bf16.msra.mxu1 %v11294_v63  ;;  %v11374_v62 = vld [vmem:[#allocation2 + $0x284] ss:$60 sps:$4 sm:$0xff]   ;;  %v11369_v63 = vld [vmem:[#allocation2 + $0x278] ss:$60 sps:$4 sm:$0xff]  }
 0x277   :  { %6625 = vmatprep.subr.bf16.mxu0 %v11299_v0  ;;  %6789 = vmatprep.subr.bf16.mxu1 %v11302_v1  ;;  %v11372_v0 = vld [vmem:[#allocation2 + $0x280] ss:$60 sps:$4 sm:$0xff]   ;;  %v11377_v1 = vld [vmem:[#allocation2 + $0x2f4] ss:$60 sps:$4 sm:$0xff]  }
 0x27a   :  { %6626 = vmatpush1.bf16.msra.mxu0 %v11297_v2  ;;  %6790 = vmatpush1.bf16.msra.mxu1 %v11300_v3  ;;  %v11380_v2 = vld [vmem:[#allocation2 + $0x2fc] ss:$60 sps:$4 sm:$0xff]   ;;  %v11375_v3 = vld [vmem:[#allocation2 + $0x2f0] ss:$60 sps:$4 sm:$0xff]  }
 0x27b   :  { %6627 = vmatprep.subr.bf16.mxu0 %v11305_v4  ;;  %6791 = vmatprep.subr.bf16.mxu1 %v11308_v5  ;;  %v11378_v4 = vld [vmem:[#allocation2 + $0x2f8] ss:$60 sps:$4 sm:$0xff]   ;;  %v11383_v5 = vld [vmem:[#allocation2 + $0x36c] ss:$60 sps:$4 sm:$0xff]  }
 0x27e   :  { %6628 = vmatpush1.bf16.msra.mxu0 %v11303_v6  ;;  %6792 = vmatpush1.bf16.msra.mxu1 %v11306_v7  ;;  %v11386_v6 = vld [vmem:[#allocation2 + $0x374] ss:$60 sps:$4 sm:$0xff]   ;;  %v11381_v7 = vld [vmem:[#allocation2 + $0x368] ss:$60 sps:$4 sm:$0xff]  }
 0x27f   :  { %6629 = vmatprep.subr.bf16.mxu0 %v11311_v8  ;;  %6793 = vmatprep.subr.bf16.mxu1 %v11314_v10  ;;  %v11384_v8 = vld [vmem:[#allocation2 + $0x370] ss:$60 sps:$4 sm:$0xff]   ;;  %v11389_v10 = vld [vmem:[#allocation2 + $0x3e4] ss:$60 sps:$4 sm:$0xff]  }
 0x282   :  { %6630 = vmatpush1.bf16.msra.mxu0 %v11309_v11  ;;  %6794 = vmatpush1.bf16.msra.mxu1 %v11312_v12  ;;  %v11392_v11 = vld [vmem:[#allocation2 + $0x3ec] ss:$60 sps:$4 sm:$0xff]   ;;  %v11387_v12 = vld [vmem:[#allocation2 + $0x3e0] ss:$60 sps:$4 sm:$0xff]  }
 0x283   :  { %6631 = vmatprep.subr.bf16.mxu0 %v11317_v13  ;;  %6795 = vmatprep.subr.bf16.mxu1 %v11320_v14  ;;  %v11390_v13 = vld [vmem:[#allocation2 + $0x3e8] ss:$60 sps:$4 sm:$0xff]   ;;  %v11395_v14 = vld [vmem:[#allocation2 + $0x45c] ss:$60 sps:$4 sm:$0xff]  }
 0x286   :  { %6632 = vmatpush1.bf16.msra.mxu0 %v11315_v15  ;;  %6796 = vmatpush1.bf16.msra.mxu1 %v11318_v17  ;;  %v11398_v15 = vld [vmem:[#allocation2 + $0x464] ss:$60 sps:$4 sm:$0xff]   ;;  %v11393_v17 = vld [vmem:[#allocation2 + $0x458] ss:$60 sps:$4 sm:$0xff]  }
 0x287   :  { %6633 = vmatprep.subr.bf16.mxu0 %v11323_v18  ;;  %6797 = vmatprep.subr.bf16.mxu1 %v11326_v19  ;;  %v11396_v18 = vld [vmem:[#allocation2 + $0x460] ss:$60 sps:$4 sm:$0xff]   ;;  %v11401_v19 = vld [vmem:[#allocation2 + $0x4d4] ss:$60 sps:$4 sm:$0xff]  }
 0x28a   :  { %6634 = vmatpush1.bf16.msra.mxu0 %v11321_v21  ;;  %6798 = vmatpush1.bf16.msra.mxu1 %v11324_v22  ;;  %v11404_v21 = vld [vmem:[#allocation2 + $0x4dc] ss:$60 sps:$4 sm:$0xff]   ;;  %v11399_v22 = vld [vmem:[#allocation2 + $0x4d0] ss:$60 sps:$4 sm:$0xff]  }
 0x28b   :  { %6635 = vmatprep.subr.bf16.mxu0 %v11329_v23  ;;  %6799 = vmatprep.subr.bf16.mxu1 %v11332_v25  ;;  %v11402_v23 = vld [vmem:[#allocation2 + $0x4d8] ss:$60 sps:$4 sm:$0xff]   ;;  %v11407_v25 = vld [vmem:[#allocation2 + $0x54c] ss:$60 sps:$4 sm:$0xff]  }
 0x28e   :  { %6636 = vmatpush1.bf16.msra.mxu0 %v11327_v27  ;;  %6800 = vmatpush1.bf16.msra.mxu1 %v11330_v28  ;;  %v11410_v27 = vld [vmem:[#allocation2 + $0x554] ss:$60 sps:$4 sm:$0xff]   ;;  %v11405_v28 = vld [vmem:[#allocation2 + $0x548] ss:$60 sps:$4 sm:$0xff]  }
 0x28f   :  { %6637 = vmatprep.subr.bf16.mxu0 %v11335_v9  ;;  %6801 = vmatprep.subr.bf16.mxu1 %v11338_v30  ;;  %v11408_v9 = vld [vmem:[#allocation2 + $0x550] ss:$60 sps:$4 sm:$0xff]   ;;  %v11413_v30 = vld [vmem:[#allocation2 + $0x5c4] ss:$60 sps:$4 sm:$0xff]  }
 0x292   :  { %6638 = vmatpush1.bf16.msra.mxu0 %v11333_v31  ;;  %6802 = vmatpush1.bf16.msra.mxu1 %v11336_v33  ;;  %v11416_v31 = vld [vmem:[#allocation2 + $0x5cc] ss:$60 sps:$4 sm:$0xff]   ;;  %v11411_v33 = vld [vmem:[#allocation2 + $0x5c0] ss:$60 sps:$4 sm:$0xff]  }
 0x293   :  { %6812 = vmatprep.subr.bf16.mxu0 %v11341_v35  ;;  %6976 = vmatprep.subr.bf16.mxu1 %v11344_v36  ;;  %v11414_v35 = vld [vmem:[#allocation2 + $0x5c8] ss:$60 sps:$4 sm:$0xff]   ;;  %v11419_v36 = vld [vmem:[#allocation2 + $0x63c] ss:$60 sps:$4 sm:$0xff]  }
 0x295   :  { %6640 = vmatmul.mubr.bf16.vlgmr.msra.gmra.mrb[4].mxu0 %v12569_v48  ;;  %6804 = vmatmul.mubr.bf16.vlgmr.msra.gmra.mrb[4].mxu1 %v12569_v48 }
 0x296   :  { %6813 = vmatpush1.bf16.msra.mxu0 %v11339_v37  ;;  %6977 = vmatpush1.bf16.msra.mxu1 %v11342_v26  ;;  %v11422_v37 = vld [vmem:[#allocation2 + $0x644] ss:$60 sps:$4 sm:$0xff]   ;;  %v11417_v26 = vld [vmem:[#allocation2 + $0x638] ss:$60 sps:$4 sm:$0xff]  }
 0x297   :  { %6814 = vmatprep.subr.bf16.mxu0 %v11347_v39  ;;  %6978 = vmatprep.subr.bf16.mxu1 %v11350_v49  ;;  %v11420_v39 = vld [vmem:[#allocation2 + $0x640] ss:$60 sps:$4 sm:$0xff]   ;;  %v11425_v49 = vld [vmem:[#allocation2 + $0x6b4] ss:$60 sps:$4 sm:$0xff]  }
 0x298   :  { %6844 = vmatprep.mubr.bf16.mxu0 %v12512_v60  ;;  %7008 = vmatprep.mubr.bf16.mxu1 %v12512_v60 }
 0x29a   :  { %6815 = vmatpush1.bf16.msra.mxu0 %v11345_v40  ;;  %6979 = vmatpush1.bf16.msra.mxu1 %v11348_v41  ;;  %v11428_v40 = vld [vmem:[#allocation2 + $0x6bc] ss:$60 sps:$4 sm:$0xff]   ;;  %v11423_v41 = vld [vmem:[#allocation2 + $0x6b0] ss:$60 sps:$4 sm:$0xff]  }
 0x29b   :  { %6816 = vmatprep.subr.bf16.mxu0 %v11353_v44  ;;  %6980 = vmatprep.subr.bf16.mxu1 %v11356_v50  ;;  %v11426_v44 = vld [vmem:[#allocation2 + $0x6b8] ss:$60 sps:$4 sm:$0xff]   ;;  %v11431_v50 = vld [vmem:[#allocation2 + $0x72c] ss:$60 sps:$4 sm:$0xff]  }
 0x29e   :  { %6817 = vmatpush1.bf16.msra.mxu0 %v11351_v51  ;;  %6981 = vmatpush1.bf16.msra.mxu1 %v11354_v52  ;;  %v11434_v51 = vld [vmem:[#allocation2 + $0x734] ss:$60 sps:$4 sm:$0xff]   ;;  %v11429_v52 = vld [vmem:[#allocation2 + $0x728] ss:$60 sps:$4 sm:$0xff]  }
 0x29f   :  { %6818 = vmatprep.subr.bf16.mxu0 %v11359_v53  ;;  %6982 = vmatprep.subr.bf16.mxu1 %v11362_v54  ;;  %v11432_v53 = vld [vmem:[#allocation2 + $0x730] ss:$60 sps:$4 sm:$0xff]   ;;  %v11437_v54 = vld [vmem:[#allocation2 + $0x7a4] ss:$60 sps:$4 sm:$0xff]  }
 0x2a2   :  { %6819 = vmatpush1.bf16.msra.mxu0 %v11357_v55  ;;  %6983 = vmatpush1.bf16.msra.mxu1 %v11360_v32  ;;  %v11440_v55 = vld [vmem:[#allocation2 + $0x7ac] ss:$60 sps:$4 sm:$0xff]   ;;  %v11435_v32 = vld [vmem:[#allocation2 + $0x7a0] ss:$60 sps:$4 sm:$0xff]  }
 0x2a3   :  { %6820 = vmatprep.subr.bf16.mxu0 %v11365_v56  ;;  %6984 = vmatprep.subr.bf16.mxu1 %v11368_v57  ;;  %v11438_v56 = vld [vmem:[#allocation2 + $0x7a8] ss:$60 sps:$4 sm:$0xff]   ;;  %v11443_v57 = vld [vmem:[#allocation2 + $0x81c] ss:$60 sps:$4 sm:$0xff]  }
 0x2a6   :  { %6821 = vmatpush1.bf16.msra.mxu0 %v11363_v58  ;;  %6985 = vmatpush1.bf16.msra.mxu1 %v11366_v59  ;;  %v11446_v58 = vld [vmem:[#allocation2 + $0x824] ss:$60 sps:$4 sm:$0xff]   ;;  %v11441_v59 = vld [vmem:[#allocation2 + $0x818] ss:$60 sps:$4 sm:$0xff]  }
 0x2a7   :  { %6822 = vmatprep.subr.bf16.mxu0 %v11371_v61  ;;  %6986 = vmatprep.subr.bf16.mxu1 %v11374_v62  ;;  %v11444_v61 = vld [vmem:[#allocation2 + $0x820] ss:$60 sps:$4 sm:$0xff]   ;;  %v11449_v62 = vld [vmem:[#allocation2 + $0x894] ss:$60 sps:$4 sm:$0xff]  }
 0x2aa   :  { %6823 = vmatpush1.bf16.msra.mxu0 %v11369_v63  ;;  %6987 = vmatpush1.bf16.msra.mxu1 %v11372_v0  ;;  %v11452_v63 = vld [vmem:[#allocation2 + $0x89c] ss:$60 sps:$4 sm:$0xff]   ;;  %v11447_v0 = vld [vmem:[#allocation2 + $0x890] ss:$60 sps:$4 sm:$0xff]  }
 0x2ab   :  { %6824 = vmatprep.subr.bf16.mxu0 %v11377_v1  ;;  %6988 = vmatprep.subr.bf16.mxu1 %v11380_v2  ;;  %v11450_v1 = vld [vmem:[#allocation2 + $0x898] ss:$60 sps:$4 sm:$0xff]   ;;  %v11455_v2 = vld [vmem:[#allocation2 + $0x90c] ss:$60 sps:$4 sm:$0xff]  }
 0x2ae   :  { %6825 = vmatpush1.bf16.msra.mxu0 %v11375_v3  ;;  %6989 = vmatpush1.bf16.msra.mxu1 %v11378_v4  ;;  %v11458_v3 = vld [vmem:[#allocation2 + $0x914] ss:$60 sps:$4 sm:$0xff]   ;;  %v11453_v4 = vld [vmem:[#allocation2 + $0x908] ss:$60 sps:$4 sm:$0xff]  }
 0x2af   :  { %6826 = vmatprep.subr.bf16.mxu0 %v11383_v5  ;;  %6990 = vmatprep.subr.bf16.mxu1 %v11386_v6  ;;  %v11456_v5 = vld [vmem:[#allocation2 + $0x910] ss:$60 sps:$4 sm:$0xff]   ;;  %v11461_v6 = vld [vmem:[#allocation2 + $0x984] ss:$60 sps:$4 sm:$0xff]  }
 0x2b2   :  { %6827 = vmatpush1.bf16.msra.mxu0 %v11381_v7  ;;  %6991 = vmatpush1.bf16.msra.mxu1 %v11384_v8  ;;  %v11464_v7 = vld [vmem:[#allocation2 + $0x98c] ss:$60 sps:$4 sm:$0xff]   ;;  %v11459_v8 = vld [vmem:[#allocation2 + $0x980] ss:$60 sps:$4 sm:$0xff]  }
 0x2b3   :  { %6828 = vmatprep.subr.bf16.mxu0 %v11389_v10  ;;  %6992 = vmatprep.subr.bf16.mxu1 %v11392_v11  ;;  %v11462_v10 = vld [vmem:[#allocation2 + $0x988] ss:$60 sps:$4 sm:$0xff]   ;;  %v11467_v11 = vld [vmem:[#allocation2 + $0x9fc] ss:$60 sps:$4 sm:$0xff]  }
 0x2b6   :  { %6829 = vmatpush1.bf16.msra.mxu0 %v11387_v12  ;;  %6993 = vmatpush1.bf16.msra.mxu1 %v11390_v13  ;;  %v11470_v12 = vld [vmem:[#allocation2 + $0xa04] ss:$60 sps:$4 sm:$0xff]   ;;  %v11465_v13 = vld [vmem:[#allocation2 + $0x9f8] ss:$60 sps:$4 sm:$0xff]  }
 0x2b7   :  { %6830 = vmatprep.subr.bf16.mxu0 %v11395_v14  ;;  %6994 = vmatprep.subr.bf16.mxu1 %v11398_v15  ;;  %v11468_v14 = vld [vmem:[#allocation2 + $0xa00] ss:$60 sps:$4 sm:$0xff]   ;;  %v11473_v15 = vld [vmem:[#allocation2 + $0xa74] ss:$60 sps:$4 sm:$0xff]  }
 0x2ba   :  { %6831 = vmatpush1.bf16.msra.mxu0 %v11393_v17  ;;  %6995 = vmatpush1.bf16.msra.mxu1 %v11396_v18  ;;  %v11476_v17 = vld [vmem:[#allocation2 + $0xa7c] ss:$60 sps:$4 sm:$0xff]   ;;  %v11471_v18 = vld [vmem:[#allocation2 + $0xa70] ss:$60 sps:$4 sm:$0xff]  }
 0x2bb   :  { %6832 = vmatprep.subr.bf16.mxu0 %v11401_v19  ;;  %6996 = vmatprep.subr.bf16.mxu1 %v11404_v21  ;;  %v11474_v19 = vld [vmem:[#allocation2 + $0xa78] ss:$60 sps:$4 sm:$0xff]   ;;  %v11479_v21 = vld [vmem:[#allocation2 + $0xaec] ss:$60 sps:$4 sm:$0xff]  }
 0x2be   :  { %6833 = vmatpush1.bf16.msra.mxu0 %v11399_v22  ;;  %6997 = vmatpush1.bf16.msra.mxu1 %v11402_v23  ;;  %v11482_v22 = vld [vmem:[#allocation2 + $0xaf4] ss:$60 sps:$4 sm:$0xff]   ;;  %v11477_v23 = vld [vmem:[#allocation2 + $0xae8] ss:$60 sps:$4 sm:$0xff]  }
 0x2bf   :  { %6834 = vmatprep.subr.bf16.mxu0 %v11407_v25  ;;  %6998 = vmatprep.subr.bf16.mxu1 %v11410_v27  ;;  %v11480_v25 = vld [vmem:[#allocation2 + $0xaf0] ss:$60 sps:$4 sm:$0xff]   ;;  %v11485_v27 = vld [vmem:[#allocation2 + $0xb64] ss:$60 sps:$4 sm:$0xff]  }
 0x2c2   :  { %6835 = vmatpush1.bf16.msra.mxu0 %v11405_v28  ;;  %6999 = vmatpush1.bf16.msra.mxu1 %v11408_v9  ;;  %v11488_v28 = vld [vmem:[#allocation2 + $0xb6c] ss:$60 sps:$4 sm:$0xff]   ;;  %v11483_v9 = vld [vmem:[#allocation2 + $0xb60] ss:$60 sps:$4 sm:$0xff]  }
 0x2c3   :  { %6836 = vmatprep.subr.bf16.mxu0 %v11413_v30  ;;  %7000 = vmatprep.subr.bf16.mxu1 %v11416_v31  ;;  %v11486_v30 = vld [vmem:[#allocation2 + $0xb68] ss:$60 sps:$4 sm:$0xff]   ;;  %v11491_v31 = vld [vmem:[#allocation2 + $0xbdc] ss:$60 sps:$4 sm:$0xff]  }
 0x2c6   :  { %6837 = vmatpush1.bf16.msra.mxu0 %v11411_v33  ;;  %7001 = vmatpush1.bf16.msra.mxu1 %v11414_v35  ;;  %v11494_v33 = vld [vmem:[#allocation2 + $0xbe4] ss:$60 sps:$4 sm:$0xff]   ;;  %v11489_v35 = vld [vmem:[#allocation2 + $0xbd8] ss:$60 sps:$4 sm:$0xff]  }
 0x2c7   :  { %6838 = vmatprep.subr.bf16.mxu0 %v11419_v36  ;;  %7002 = vmatprep.subr.bf16.mxu1 %v11422_v37  ;;  %v11492_v36 = vld [vmem:[#allocation2 + $0xbe0] ss:$60 sps:$4 sm:$0xff]   ;;  %v11497_v37 = vld [vmem:[#allocation2 + $0xc54] ss:$60 sps:$4 sm:$0xff]  }
 0x2ca   :  { %6839 = vmatpush1.bf16.msra.mxu0 %v11417_v26  ;;  %7003 = vmatpush1.bf16.msra.mxu1 %v11420_v39  ;;  %v11500_v26 = vld [vmem:[#allocation2 + $0xc5c] ss:$60 sps:$4 sm:$0xff]   ;;  %v11495_v39 = vld [vmem:[#allocation2 + $0xc50] ss:$60 sps:$4 sm:$0xff]  }
 0x2cb   :  { %6840 = vmatprep.subr.bf16.mxu0 %v11425_v49  ;;  %7004 = vmatprep.subr.bf16.mxu1 %v11428_v40  ;;  %v11498_v49 = vld [vmem:[#allocation2 + $0xc58] ss:$60 sps:$4 sm:$0xff]   ;;  %v11503_v40 = vld [vmem:[#allocation2 + $0xccc] ss:$60 sps:$4 sm:$0xff]  }
 0x2ce   :  { %6841 = vmatpush1.bf16.msra.mxu0 %v11423_v41  ;;  %7005 = vmatpush1.bf16.msra.mxu1 %v11426_v44  ;;  %v11506_v41 = vld [vmem:[#allocation2 + $0xcd4] ss:$60 sps:$4 sm:$0xff]   ;;  %v11501_v44 = vld [vmem:[#allocation2 + $0xcc8] ss:$60 sps:$4 sm:$0xff]  }
 0x2cf   :  { %6842 = vmatprep.subr.bf16.mxu0 %v11431_v50  ;;  %7006 = vmatprep.subr.bf16.mxu1 %v11434_v51  ;;  %v11504_v50 = vld [vmem:[#allocation2 + $0xcd0] ss:$60 sps:$4 sm:$0xff]   ;;  %v11509_v51 = vld [vmem:[#allocation2 + $0xd44] ss:$60 sps:$4 sm:$0xff]  }
 0x2d2   :  { %6843 = vmatpush1.bf16.msra.mxu0 %v11429_v52  ;;  %7007 = vmatpush1.bf16.msra.mxu1 %v11432_v53  ;;  %v11512_v52 = vld [vmem:[#allocation2 + $0xd4c] ss:$60 sps:$4 sm:$0xff]   ;;  %v11507_v53 = vld [vmem:[#allocation2 + $0xd40] ss:$60 sps:$4 sm:$0xff]  }
 0x2d3   :  { %6853 = vmatprep.subr.bf16.mxu0 %v11437_v54  ;;  %7017 = vmatprep.subr.bf16.mxu1 %v11440_v55  ;;  %v11510_v54 = vld [vmem:[#allocation2 + $0xd48] ss:$60 sps:$4 sm:$0xff]   ;;  %v11515_v55 = vld [vmem:[#allocation2 + $0xdbc] ss:$60 sps:$4 sm:$0xff]  }
 0x2d5   :  { %6845 = vmatmul.mubr.bf16.vlgmr.msra.gmra.mrb[8].mxu0 %v12521_v16  ;;  %7009 = vmatmul.mubr.bf16.vlgmr.msra.gmra.mrb[8].mxu1 %v12521_v16 }
 0x2d6   :  { %6854 = vmatpush1.bf16.msra.mxu0 %v11435_v32  ;;  %7018 = vmatpush1.bf16.msra.mxu1 %v11438_v56  ;;  %v11518_v32 = vld [vmem:[#allocation2 + $0xdc4] ss:$60 sps:$4 sm:$0xff]   ;;  %v11513_v56 = vld [vmem:[#allocation2 + $0xdb8] ss:$60 sps:$4 sm:$0xff]  }
 0x2d7   :  { %6855 = vmatprep.subr.bf16.mxu0 %v11443_v57  ;;  %7019 = vmatprep.subr.bf16.mxu1 %v11446_v58  ;;  %v11516_v57 = vld [vmem:[#allocation2 + $0xdc0] ss:$60 sps:$4 sm:$0xff]   ;;  %v11521_v58 = vld [vmem:[#allocation2 + $0xe34] ss:$60 sps:$4 sm:$0xff]  }
 0x2d8   :  { %6885 = vmatprep.mubr.bf16.mxu0 %v12523_v20  ;;  %7049 = vmatprep.mubr.bf16.mxu1 %v12523_v20 }
 0x2da   :  { %6856 = vmatpush1.bf16.msra.mxu0 %v11441_v59  ;;  %7020 = vmatpush1.bf16.msra.mxu1 %v11444_v61  ;;  %v11524_v59 = vld [vmem:[#allocation2 + $0xe3c] ss:$60 sps:$4 sm:$0xff]   ;;  %v11519_v61 = vld [vmem:[#allocation2 + $0xe30] ss:$60 sps:$4 sm:$0xff]  }
 0x2db   :  { %6857 = vmatprep.subr.bf16.mxu0 %v11449_v62  ;;  %7021 = vmatprep.subr.bf16.mxu1 %v11452_v63  ;;  %v11522_v62 = vld [vmem:[#allocation2 + $0xe38] ss:$60 sps:$4 sm:$0xff]   ;;  %v11527_v63 = vld [vmem:[#allocation2 + $0xeac] ss:$60 sps:$4 sm:$0xff]  }
 0x2de   :  { %6858 = vmatpush1.bf16.msra.mxu0 %v11447_v0  ;;  %7022 = vmatpush1.bf16.msra.mxu1 %v11450_v1  ;;  %v11530_v0 = vld [vmem:[#allocation2 + $0xeb4] ss:$60 sps:$4 sm:$0xff]   ;;  %v11525_v1 = vld [vmem:[#allocation2 + $0xea8] ss:$60 sps:$4 sm:$0xff]  }
 0x2df   :  { %6859 = vmatprep.subr.bf16.mxu0 %v11455_v2  ;;  %7023 = vmatprep.subr.bf16.mxu1 %v11458_v3  ;;  %v11528_v2 = vld [vmem:[#allocation2 + $0xeb0] ss:$60 sps:$4 sm:$0xff]   ;;  %v11533_v3 = vld [vmem:[#allocation2 + $0xf24] ss:$60 sps:$4 sm:$0xff]  }
 0x2e2   :  { %6860 = vmatpush1.bf16.msra.mxu0 %v11453_v4  ;;  %7024 = vmatpush1.bf16.msra.mxu1 %v11456_v5  ;;  %v11536_v4 = vld [vmem:[#allocation2 + $0xf2c] ss:$60 sps:$4 sm:$0xff]   ;;  %v11531_v5 = vld [vmem:[#allocation2 + $0xf20] ss:$60 sps:$4 sm:$0xff]  }
 0x2e3   :  { %6861 = vmatprep.subr.bf16.mxu0 %v11461_v6  ;;  %7025 = vmatprep.subr.bf16.mxu1 %v11464_v7  ;;  %v11534_v6 = vld [vmem:[#allocation2 + $0xf28] ss:$60 sps:$4 sm:$0xff]   ;;  %v11539_v7 = vld [vmem:[#allocation2 + $0xf9c] ss:$60 sps:$4 sm:$0xff]  }
 0x2e6   :  { %6862 = vmatpush1.bf16.msra.mxu0 %v11459_v8  ;;  %7026 = vmatpush1.bf16.msra.mxu1 %v11462_v10  ;;  %v11542_v8 = vld [vmem:[#allocation2 + $0xfa4] ss:$60 sps:$4 sm:$0xff]   ;;  %v11537_v10 = vld [vmem:[#allocation2 + $0xf98] ss:$60 sps:$4 sm:$0xff]  }
 0x2e7   :  { %6863 = vmatprep.subr.bf16.mxu0 %v11467_v11  ;;  %7027 = vmatprep.subr.bf16.mxu1 %v11470_v12  ;;  %v11540_v11 = vld [vmem:[#allocation2 + $0xfa0] ss:$60 sps:$4 sm:$0xff]   ;;  %v11545_v12 = vld [vmem:[#allocation2 + $0x1014] ss:$60 sps:$4 sm:$0xff]  }
 0x2ea   :  { %6864 = vmatpush1.bf16.msra.mxu0 %v11465_v13  ;;  %7028 = vmatpush1.bf16.msra.mxu1 %v11468_v14  ;;  %v11548_v13 = vld [vmem:[#allocation2 + $0x101c] ss:$60 sps:$4 sm:$0xff]   ;;  %v11543_v14 = vld [vmem:[#allocation2 + $0x1010] ss:$60 sps:$4 sm:$0xff]  }
 0x2eb   :  { %6865 = vmatprep.subr.bf16.mxu0 %v11473_v15  ;;  %7029 = vmatprep.subr.bf16.mxu1 %v11476_v17  ;;  %v11546_v15 = vld [vmem:[#allocation2 + $0x1018] ss:$60 sps:$4 sm:$0xff]   ;;  %v11551_v17 = vld [vmem:[#allocation2 + $0x108c] ss:$60 sps:$4 sm:$0xff]  }
 0x2ee   :  { %6866 = vmatpush1.bf16.msra.mxu0 %v11471_v18  ;;  %7030 = vmatpush1.bf16.msra.mxu1 %v11474_v19  ;;  %v11554_v18 = vld [vmem:[#allocation2 + $0x1094] ss:$60 sps:$4 sm:$0xff]   ;;  %v11549_v19 = vld [vmem:[#allocation2 + $0x1088] ss:$60 sps:$4 sm:$0xff]  }
 0x2ef   :  { %6867 = vmatprep.subr.bf16.mxu0 %v11479_v21  ;;  %7031 = vmatprep.subr.bf16.mxu1 %v11482_v22  ;;  %v11552_v21 = vld [vmem:[#allocation2 + $0x1090] ss:$60 sps:$4 sm:$0xff]   ;;  %v11557_v22 = vld [vmem:[#allocation2 + $0x1104] ss:$60 sps:$4 sm:$0xff]  }
 0x2f2   :  { %6868 = vmatpush1.bf16.msra.mxu0 %v11477_v23  ;;  %7032 = vmatpush1.bf16.msra.mxu1 %v11480_v25  ;;  %v11560_v23 = vld [vmem:[#allocation2 + $0x110c] ss:$60 sps:$4 sm:$0xff]   ;;  %v11555_v25 = vld [vmem:[#allocation2 + $0x1100] ss:$60 sps:$4 sm:$0xff]  }
 0x2f3   :  { %6869 = vmatprep.subr.bf16.mxu0 %v11485_v27  ;;  %7033 = vmatprep.subr.bf16.mxu1 %v11488_v28  ;;  %v11558_v27 = vld [vmem:[#allocation2 + $0x1108] ss:$60 sps:$4 sm:$0xff]   ;;  %v11563_v28 = vld [vmem:[#allocation2 + $0x117c] ss:$60 sps:$4 sm:$0xff]  }
 0x2f6   :  { %6870 = vmatpush1.bf16.msra.mxu0 %v11483_v9  ;;  %7034 = vmatpush1.bf16.msra.mxu1 %v11486_v30  ;;  %v11566_v9 = vld [vmem:[#allocation2 + $0x1184] ss:$60 sps:$4 sm:$0xff]   ;;  %v11561_v30 = vld [vmem:[#allocation2 + $0x1178] ss:$60 sps:$4 sm:$0xff]  }
 0x2f7   :  { %6871 = vmatprep.subr.bf16.mxu0 %v11491_v31  ;;  %7035 = vmatprep.subr.bf16.mxu1 %v11494_v33  ;;  %v11564_v31 = vld [vmem:[#allocation2 + $0x1180] ss:$60 sps:$4 sm:$0xff]   ;;  %v11569_v33 = vld [vmem:[#allocation2 + $0x11f4] ss:$60 sps:$4 sm:$0xff]  }
 0x2fa   :  { %6872 = vmatpush1.bf16.msra.mxu0 %v11489_v35  ;;  %7036 = vmatpush1.bf16.msra.mxu1 %v11492_v36  ;;  %v11572_v35 = vld [vmem:[#allocation2 + $0x11fc] ss:$60 sps:$4 sm:$0xff]   ;;  %v11567_v36 = vld [vmem:[#allocation2 + $0x11f0] ss:$60 sps:$4 sm:$0xff]  }
 0x2fb   :  { %6873 = vmatprep.subr.bf16.mxu0 %v11497_v37  ;;  %7037 = vmatprep.subr.bf16.mxu1 %v11500_v26  ;;  %v11570_v37 = vld [vmem:[#allocation2 + $0x11f8] ss:$60 sps:$4 sm:$0xff]   ;;  %v11575_v26 = vld [vmem:[#allocation2 + $0x126c] ss:$60 sps:$4 sm:$0xff]  }
 0x2fe   :  { %6874 = vmatpush1.bf16.msra.mxu0 %v11495_v39  ;;  %7038 = vmatpush1.bf16.msra.mxu1 %v11498_v49  ;;  %v11578_v39 = vld [vmem:[#allocation2 + $0x1274] ss:$60 sps:$4 sm:$0xff]   ;;  %v11573_v49 = vld [vmem:[#allocation2 + $0x1268] ss:$60 sps:$4 sm:$0xff]  }
 0x2ff   :  { %6875 = vmatprep.subr.bf16.mxu0 %v11503_v40  ;;  %7039 = vmatprep.subr.bf16.mxu1 %v11506_v41  ;;  %v11576_v40 = vld [vmem:[#allocation2 + $0x1270] ss:$60 sps:$4 sm:$0xff]   ;;  %v11581_v41 = vld [vmem:[#allocation2 + $0x12e4] ss:$60 sps:$4 sm:$0xff]  }
 0x302   :  { %6876 = vmatpush1.bf16.msra.mxu0 %v11501_v44  ;;  %7040 = vmatpush1.bf16.msra.mxu1 %v11504_v50  ;;  %v11584_v44 = vld [vmem:[#allocation2 + $0x12ec] ss:$60 sps:$4 sm:$0xff]   ;;  %v11579_v50 = vld [vmem:[#allocation2 + $0x12e0] ss:$60 sps:$4 sm:$0xff]  }
 0x303   :  { %6877 = vmatprep.subr.bf16.mxu0 %v11509_v51  ;;  %7041 = vmatprep.subr.bf16.mxu1 %v11512_v52  ;;  %v11582_v51 = vld [vmem:[#allocation2 + $0x12e8] ss:$60 sps:$4 sm:$0xff]   ;;  %v11587_v52 = vld [vmem:[#allocation2 + $0x135c] ss:$60 sps:$4 sm:$0xff]  }
 0x306   :  { %6878 = vmatpush1.bf16.msra.mxu0 %v11507_v53  ;;  %7042 = vmatpush1.bf16.msra.mxu1 %v11510_v54  ;;  %v11590_v53 = vld [vmem:[#allocation2 + $0x1364] ss:$60 sps:$4 sm:$0xff]   ;;  %v11585_v54 = vld [vmem:[#allocation2 + $0x1358] ss:$60 sps:$4 sm:$0xff]  }
 0x307   :  { %6879 = vmatprep.subr.bf16.mxu0 %v11515_v55  ;;  %7043 = vmatprep.subr.bf16.mxu1 %v11518_v32  ;;  %v11588_v55 = vld [vmem:[#allocation2 + $0x1360] ss:$60 sps:$4 sm:$0xff]   ;;  %v11593_v32 = vld [vmem:[#allocation2 + $0x13d4] ss:$60 sps:$4 sm:$0xff]  }
 0x30a   :  { %6880 = vmatpush1.bf16.msra.mxu0 %v11513_v56  ;;  %7044 = vmatpush1.bf16.msra.mxu1 %v11516_v57  ;;  %v11596_v56 = vld [vmem:[#allocation2 + $0x13dc] ss:$60 sps:$4 sm:$0xff]   ;;  %v11591_v57 = vld [vmem:[#allocation2 + $0x13d0] ss:$60 sps:$4 sm:$0xff]  }
 0x30b   :  { %6881 = vmatprep.subr.bf16.mxu0 %v11521_v58  ;;  %7045 = vmatprep.subr.bf16.mxu1 %v11524_v59  ;;  %v11594_v58 = vld [vmem:[#allocation2 + $0x13d8] ss:$60 sps:$4 sm:$0xff]   ;;  %v11599_v59 = vld [vmem:[#allocation2 + $0x144c] ss:$60 sps:$4 sm:$0xff]  }
 0x30e   :  { %6882 = vmatpush1.bf16.msra.mxu0 %v11519_v61  ;;  %7046 = vmatpush1.bf16.msra.mxu1 %v11522_v62  ;;  %v11602_v61 = vld [vmem:[#allocation2 + $0x1454] ss:$60 sps:$4 sm:$0xff]   ;;  %v11597_v62 = vld [vmem:[#allocation2 + $0x1448] ss:$60 sps:$4 sm:$0xff]  }
 0x30f   :  { %6883 = vmatprep.subr.bf16.mxu0 %v11527_v63  ;;  %7047 = vmatprep.subr.bf16.mxu1 %v11530_v0  ;;  %v11600_v63 = vld [vmem:[#allocation2 + $0x1450] ss:$60 sps:$4 sm:$0xff]   ;;  %v11605_v0 = vld [vmem:[#allocation2 + $0x14c4] ss:$60 sps:$4 sm:$0xff]  }
 0x312   :  { %6884 = vmatpush1.bf16.msra.mxu0 %v11525_v1  ;;  %7048 = vmatpush1.bf16.msra.mxu1 %v11528_v2  ;;  %v11608_v1 = vld [vmem:[#allocation2 + $0x14cc] ss:$60 sps:$4 sm:$0xff]   ;;  %v11603_v2 = vld [vmem:[#allocation2 + $0x14c0] ss:$60 sps:$4 sm:$0xff]  }
 0x313   :  { %6894 = vmatprep.subr.bf16.mxu0 %v11533_v3  ;;  %7058 = vmatprep.subr.bf16.mxu1 %v11536_v4  ;;  %v11606_v3 = vld [vmem:[#allocation2 + $0x14c8] ss:$60 sps:$4 sm:$0xff]   ;;  %v11611_v4 = vld [vmem:[#allocation2 + $0x153c] ss:$60 sps:$4 sm:$0xff]  }
 0x315   :  { %6886 = vmatmul.mubr.bf16.vlgmr.msra.gmra.mrb[8].mxu0 %v12531_v24  ;;  %7050 = vmatmul.mubr.bf16.vlgmr.msra.gmra.mrb[8].mxu1 %v12531_v24 }
 0x316   :  { %6895 = vmatpush1.bf16.msra.mxu0 %v11531_v5  ;;  %7059 = vmatpush1.bf16.msra.mxu1 %v11534_v6  ;;  %v11614_v5 = vld [vmem:[#allocation2 + $0x1544] ss:$60 sps:$4 sm:$0xff]   ;;  %v11609_v6 = vld [vmem:[#allocation2 + $0x1538] ss:$60 sps:$4 sm:$0xff]  }
 0x317   :  { %6896 = vmatprep.subr.bf16.mxu0 %v11539_v7  ;;  %7060 = vmatprep.subr.bf16.mxu1 %v11542_v8  ;;  %v11612_v7 = vld [vmem:[#allocation2 + $0x1540] ss:$60 sps:$4 sm:$0xff]   ;;  %v11617_v8 = vld [vmem:[#allocation2 + $0x15b4] ss:$60 sps:$4 sm:$0xff]  }
 0x318   :  { %6926 = vmatprep.mubr.bf16.mxu0 %v12546_v34  ;;  %7090 = vmatprep.mubr.bf16.mxu1 %v12546_v34 }
 0x31a   :  { %6897 = vmatpush1.bf16.msra.mxu0 %v11537_v10  ;;  %7061 = vmatpush1.bf16.msra.mxu1 %v11540_v11  ;;  %v11620_v10 = vld [vmem:[#allocation2 + $0x15bc] ss:$60 sps:$4 sm:$0xff]   ;;  %v11615_v11 = vld [vmem:[#allocation2 + $0x15b0] ss:$60 sps:$4 sm:$0xff]  }
 0x31b   :  { %6898 = vmatprep.subr.bf16.mxu0 %v11545_v12  ;;  %7062 = vmatprep.subr.bf16.mxu1 %v11548_v13  ;;  %v11618_v12 = vld [vmem:[#allocation2 + $0x15b8] ss:$60 sps:$4 sm:$0xff]   ;;  %v11623_v13 = vld [vmem:[#allocation2 + $0x162c] ss:$60 sps:$4 sm:$0xff]  }
 0x31e   :  { %6899 = vmatpush1.bf16.msra.mxu0 %v11543_v14  ;;  %7063 = vmatpush1.bf16.msra.mxu1 %v11546_v15  ;;  %v11626_v14 = vld [vmem:[#allocation2 + $0x1634] ss:$60 sps:$4 sm:$0xff]   ;;  %v11621_v15 = vld [vmem:[#allocation2 + $0x1628] ss:$60 sps:$4 sm:$0xff]  }
 0x31f   :  { %6900 = vmatprep.subr.bf16.mxu0 %v11551_v17  ;;  %7064 = vmatprep.subr.bf16.mxu1 %v11554_v18  ;;  %v11624_v17 = vld [vmem:[#allocation2 + $0x1630] ss:$60 sps:$4 sm:$0xff]   ;;  %v11629_v18 = vld [vmem:[#allocation2 + $0x16a4] ss:$60 sps:$4 sm:$0xff]  }
 0x322   :  { %6901 = vmatpush1.bf16.msra.mxu0 %v11549_v19  ;;  %7065 = vmatpush1.bf16.msra.mxu1 %v11552_v21  ;;  %v11632_v19 = vld [vmem:[#allocation2 + $0x16ac] ss:$60 sps:$4 sm:$0xff]   ;;  %v11627_v21 = vld [vmem:[#allocation2 + $0x16a0] ss:$60 sps:$4 sm:$0xff]  }
 0x323   :  { %6902 = vmatprep.subr.bf16.mxu0 %v11557_v22  ;;  %7066 = vmatprep.subr.bf16.mxu1 %v11560_v23  ;;  %v11630_v22 = vld [vmem:[#allocation2 + $0x16a8] ss:$60 sps:$4 sm:$0xff]   ;;  %v11635_v23 = vld [vmem:[#allocation2 + $0x171c] ss:$60 sps:$4 sm:$0xff]  }
 0x326   :  { %6903 = vmatpush1.bf16.msra.mxu0 %v11555_v25  ;;  %7067 = vmatpush1.bf16.msra.mxu1 %v11558_v27  ;;  %v11638_v25 = vld [vmem:[#allocation2 + $0x1724] ss:$60 sps:$4 sm:$0xff]   ;;  %v11633_v27 = vld [vmem:[#allocation2 + $0x1718] ss:$60 sps:$4 sm:$0xff]  }
 0x327   :  { %6904 = vmatprep.subr.bf16.mxu0 %v11563_v28  ;;  %7068 = vmatprep.subr.bf16.mxu1 %v11566_v9  ;;  %v11636_v28 = vld [vmem:[#allocation2 + $0x1720] ss:$60 sps:$4 sm:$0xff]   ;;  %v11641_v9 = vld [vmem:[#allocation2 + $0x1794] ss:$60 sps:$4 sm:$0xff]  }
 0x32a   :  { %6905 = vmatpush1.bf16.msra.mxu0 %v11561_v30  ;;  %7069 = vmatpush1.bf16.msra.mxu1 %v11564_v31  ;;  %v11644_v30 = vld [vmem:[#allocation2 + $0x179c] ss:$60 sps:$4 sm:$0xff]   ;;  %v11639_v31 = vld [vmem:[#allocation2 + $0x1790] ss:$60 sps:$4 sm:$0xff]  }
 0x32b   :  { %6906 = vmatprep.subr.bf16.mxu0 %v11569_v33  ;;  %7070 = vmatprep.subr.bf16.mxu1 %v11572_v35  ;;  %v11642_v33 = vld [vmem:[#allocation2 + $0x1798] ss:$60 sps:$4 sm:$0xff]   ;;  %v11647_v35 = vld [vmem:[#allocation2 + $0x180c] ss:$60 sps:$4 sm:$0xff]  }
 0x32e   :  { %6907 = vmatpush1.bf16.msra.mxu0 %v11567_v36  ;;  %7071 = vmatpush1.bf16.msra.mxu1 %v11570_v37  ;;  %v11650_v36 = vld [vmem:[#allocation2 + $0x1814] ss:$60 sps:$4 sm:$0xff]   ;;  %v11645_v37 = vld [vmem:[#allocation2 + $0x1808] ss:$60 sps:$4 sm:$0xff]  }
 0x32f   :  { %6908 = vmatprep.subr.bf16.mxu0 %v11575_v26  ;;  %7072 = vmatprep.subr.bf16.mxu1 %v11578_v39  ;;  %v11648_v26 = vld [vmem:[#allocation2 + $0x1810] ss:$60 sps:$4 sm:$0xff]   ;;  %v11653_v39 = vld [vmem:[#allocation2 + $0x1884] ss:$60 sps:$4 sm:$0xff]  }
 0x332   :  { %6909 = vmatpush1.bf16.msra.mxu0 %v11573_v49  ;;  %7073 = vmatpush1.bf16.msra.mxu1 %v11576_v40  ;;  %v11656_v49 = vld [vmem:[#allocation2 + $0x188c] ss:$60 sps:$4 sm:$0xff]   ;;  %v11651_v40 = vld [vmem:[#allocation2 + $0x1880] ss:$60 sps:$4 sm:$0xff]  }
 0x333   :  { %6910 = vmatprep.subr.bf16.mxu0 %v11581_v41  ;;  %7074 = vmatprep.subr.bf16.mxu1 %v11584_v44  ;;  %v11654_v41 = vld [vmem:[#allocation2 + $0x1888] ss:$60 sps:$4 sm:$0xff]   ;;  %v11659_v44 = vld [vmem:[#allocation2 + $0x18fc] ss:$60 sps:$4 sm:$0xff]  }
 0x336   :  { %6911 = vmatpush1.bf16.msra.mxu0 %v11579_v50  ;;  %7075 = vmatpush1.bf16.msra.mxu1 %v11582_v51  ;;  %v11662_v50 = vld [vmem:[#allocation2 + $0x1904] ss:$60 sps:$4 sm:$0xff]   ;;  %v11657_v51 = vld [vmem:[#allocation2 + $0x18f8] ss:$60 sps:$4 sm:$0xff]  }
 0x337   :  { %6912 = vmatprep.subr.bf16.mxu0 %v11587_v52  ;;  %7076 = vmatprep.subr.bf16.mxu1 %v11590_v53  ;;  %v11660_v52 = vld [vmem:[#allocation2 + $0x1900] ss:$60 sps:$4 sm:$0xff]   ;;  %v11665_v53 = vld [vmem:[#allocation2 + $0x1974] ss:$60 sps:$4 sm:$0xff]  }
 0x33a   :  { %6913 = vmatpush1.bf16.msra.mxu0 %v11585_v54  ;;  %7077 = vmatpush1.bf16.msra.mxu1 %v11588_v55  ;;  %v11668_v54 = vld [vmem:[#allocation2 + $0x197c] ss:$60 sps:$4 sm:$0xff]  }
 0x33b   :  { %6914 = vmatprep.subr.bf16.mxu0 %v11593_v32  ;;  %7078 = vmatprep.subr.bf16.mxu1 %v11596_v56 }
 0x33e   :  { %6915 = vmatpush1.bf16.msra.mxu0 %v11591_v57  ;;  %7079 = vmatpush1.bf16.msra.mxu1 %v11594_v58 }
 0x33f   :  { %6916 = vmatprep.subr.bf16.mxu0 %v11599_v59  ;;  %7080 = vmatprep.subr.bf16.mxu1 %v11602_v61  ;;  %v11663_v61 = vld [vmem:[#allocation2 + $0x1970] ss:$60 sps:$4 sm:$0xff]  }
 0x342   :  { %6917 = vmatpush1.bf16.msra.mxu0 %v11597_v62  ;;  %7081 = vmatpush1.bf16.msra.mxu1 %v11600_v63  ;;  %v11666_v62 = vld [vmem:[#allocation2 + $0x1978] ss:$60 sps:$4 sm:$0xff]  }
 0x343   :  { %6918 = vmatprep.subr.bf16.mxu0 %v11605_v0  ;;  %7082 = vmatprep.subr.bf16.mxu1 %v11608_v1  ;;  %v11671_v1 = vld [vmem:[#allocation2 + $0x19ec] ss:$60 sps:$4 sm:$0xff]  }
 0x346   :  { %6919 = vmatpush1.bf16.msra.mxu0 %v11603_v2  ;;  %7083 = vmatpush1.bf16.msra.mxu1 %v11606_v3  ;;  %v11674_v2 = vld [vmem:[#allocation2 + $0x19f4] ss:$60 sps:$4 sm:$0xff]   ;;  %v11669_v3 = vld [vmem:[#allocation2 + $0x19e8] ss:$60 sps:$4 sm:$0xff]  }
 0x347   :  { %6920 = vmatprep.subr.bf16.mxu0 %v11611_v4  ;;  %7084 = vmatprep.subr.bf16.mxu1 %v11614_v5  ;;  %v11672_v4 = vld [vmem:[#allocation2 + $0x19f0] ss:$60 sps:$4 sm:$0xff]   ;;  %v11677_v5 = vld [vmem:[#allocation2 + $0x1a64] ss:$60 sps:$4 sm:$0xff]  }
 0x34a   :  { %6921 = vmatpush1.bf16.msra.mxu0 %v11609_v6  ;;  %7085 = vmatpush1.bf16.msra.mxu1 %v11612_v7  ;;  %v11680_v6 = vld [vmem:[#allocation2 + $0x1a6c] ss:$60 sps:$4 sm:$0xff]   ;;  %v11675_v7 = vld [vmem:[#allocation2 + $0x1a60] ss:$60 sps:$4 sm:$0xff]  }
 0x34b   :  { %6922 = vmatprep.subr.bf16.mxu0 %v11617_v8  ;;  %7086 = vmatprep.subr.bf16.mxu1 %v11620_v10  ;;  %v11678_v8 = vld [vmem:[#allocation2 + $0x1a68] ss:$60 sps:$4 sm:$0xff]   ;;  %v11683_v10 = vld [vmem:[#allocation2 + $0x1adc] ss:$60 sps:$4 sm:$0xff]  }
 0x34e   :  { %6923 = vmatpush1.bf16.msra.mxu0 %v11615_v11  ;;  %7087 = vmatpush1.bf16.msra.mxu1 %v11618_v12  ;;  %v11686_v11 = vld [vmem:[#allocation2 + $0x1ae4] ss:$60 sps:$4 sm:$0xff]   ;;  %v11681_v12 = vld [vmem:[#allocation2 + $0x1ad8] ss:$60 sps:$4 sm:$0xff]  }
 0x34f   :  { %6924 = vmatprep.subr.bf16.mxu0 %v11623_v13  ;;  %7088 = vmatprep.subr.bf16.mxu1 %v11626_v14  ;;  %v11684_v13 = vld [vmem:[#allocation2 + $0x1ae0] ss:$60 sps:$4 sm:$0xff]   ;;  %v11689_v14 = vld [vmem:[#allocation2 + $0x1b54] ss:$60 sps:$4 sm:$0xff]  }
 0x352   :  { %6925 = vmatpush1.bf16.msra.mxu0 %v11621_v15  ;;  %7089 = vmatpush1.bf16.msra.mxu1 %v11624_v17  ;;  %v11692_v15 = vld [vmem:[#allocation2 + $0x1b5c] ss:$60 sps:$4 sm:$0xff]   ;;  %v11687_v17 = vld [vmem:[#allocation2 + $0x1b50] ss:$60 sps:$4 sm:$0xff]  }
 0x353   :  { %6935 = vmatprep.subr.bf16.mxu0 %v11629_v18  ;;  %7099 = vmatprep.subr.bf16.mxu1 %v11632_v19  ;;  %v11690_v18 = vld [vmem:[#allocation2 + $0x1b58] ss:$60 sps:$4 sm:$0xff]   ;;  %v11695_v19 = vld [vmem:[#allocation2 + $0x1bcc] ss:$60 sps:$4 sm:$0xff]  }
 0x355   :  { %6927 = vmatmul.mubr.bf16.vlgmr.msra.gmra.mrb[8].mxu0 %v12559_v38  ;;  %7091 = vmatmul.mubr.bf16.vlgmr.msra.gmra.mrb[8].mxu1 %v12559_v38 }
 0x356   :  { %6936 = vmatpush1.bf16.msra.mxu0 %v11627_v21  ;;  %7100 = vmatpush1.bf16.msra.mxu1 %v11630_v22  ;;  %v11698_v21 = vld [vmem:[#allocation2 + $0x1bd4] ss:$60 sps:$4 sm:$0xff]   ;;  %v11693_v22 = vld [vmem:[#allocation2 + $0x1bc8] ss:$60 sps:$4 sm:$0xff]  }
 0x357   :  { %6937 = vmatprep.subr.bf16.mxu0 %v11635_v23  ;;  %7101 = vmatprep.subr.bf16.mxu1 %v11638_v25  ;;  %v11696_v23 = vld [vmem:[#allocation2 + $0x1bd0] ss:$60 sps:$4 sm:$0xff]   ;;  %v11701_v25 = vld [vmem:[#allocation2 + $0x1c44] ss:$60 sps:$4 sm:$0xff]  }
 0x358   :  { %6967 = vmatprep.mubr.bf16.mxu0 %v12561_v42  ;;  %7131 = vmatprep.mubr.bf16.mxu1 %v12561_v42 }
 0x35a   :  { %6938 = vmatpush1.bf16.msra.mxu0 %v11633_v27  ;;  %7102 = vmatpush1.bf16.msra.mxu1 %v11636_v28  ;;  %v11704_v27 = vld [vmem:[#allocation2 + $0x1c4c] ss:$60 sps:$4 sm:$0xff]   ;;  %v11699_v28 = vld [vmem:[#allocation2 + $0x1c40] ss:$60 sps:$4 sm:$0xff]  }
 0x35b   :  { %6939 = vmatprep.subr.bf16.mxu0 %v11641_v9  ;;  %7103 = vmatprep.subr.bf16.mxu1 %v11644_v30  ;;  %v11702_v9 = vld [vmem:[#allocation2 + $0x1c48] ss:$60 sps:$4 sm:$0xff]   ;;  %v11707_v30 = vld [vmem:[#allocation2 + $0x1cbc] ss:$60 sps:$4 sm:$0xff]  }
 0x35e   :  { %6940 = vmatpush1.bf16.msra.mxu0 %v11639_v31  ;;  %7104 = vmatpush1.bf16.msra.mxu1 %v11642_v33  ;;  %v11710_v31 = vld [vmem:[#allocation2 + $0x1cc4] ss:$60 sps:$4 sm:$0xff]   ;;  %v11705_v33 = vld [vmem:[#allocation2 + $0x1cb8] ss:$60 sps:$4 sm:$0xff]  }
 0x35f   :  { %6941 = vmatprep.subr.bf16.mxu0 %v11647_v35  ;;  %7105 = vmatprep.subr.bf16.mxu1 %v11650_v36  ;;  %v11708_v35 = vld [vmem:[#allocation2 + $0x1cc0] ss:$60 sps:$4 sm:$0xff]   ;;  %v11713_v36 = vld [vmem:[#allocation2 + $0x1d34] ss:$60 sps:$4 sm:$0xff]  }
 0x362   :  { %6942 = vmatpush1.bf16.msra.mxu0 %v11645_v37  ;;  %7106 = vmatpush1.bf16.msra.mxu1 %v11648_v26  ;;  %v11716_v37 = vld [vmem:[#allocation2 + $0x1d3c] ss:$60 sps:$4 sm:$0xff]   ;;  %v11711_v26 = vld [vmem:[#allocation2 + $0x1d30] ss:$60 sps:$4 sm:$0xff]  }
 0x363   :  { %6943 = vmatprep.subr.bf16.mxu0 %v11653_v39  ;;  %7107 = vmatprep.subr.bf16.mxu1 %v11656_v49  ;;  %v11714_v39 = vld [vmem:[#allocation2 + $0x1d38] ss:$60 sps:$4 sm:$0xff]   ;;  %v11719_v49 = vld [vmem:[#allocation2 + $0x1dac] ss:$60 sps:$4 sm:$0xff]  }
 0x366   :  { %6944 = vmatpush1.bf16.msra.mxu0 %v11651_v40  ;;  %7108 = vmatpush1.bf16.msra.mxu1 %v11654_v41  ;;  %v11722_v40 = vld [vmem:[#allocation2 + $0x1db4] ss:$60 sps:$4 sm:$0xff]   ;;  %v11717_v41 = vld [vmem:[#allocation2 + $0x1da8] ss:$60 sps:$4 sm:$0xff]  }
 0x367   :  { %6945 = vmatprep.subr.bf16.mxu0 %v11659_v44  ;;  %7109 = vmatprep.subr.bf16.mxu1 %v11662_v50  ;;  %v11720_v44 = vld [vmem:[#allocation2 + $0x1db0] ss:$60 sps:$4 sm:$0xff]  }
 0x368   :  { %v12611_v55 = vpop.f32.mrb[4].mxu0  ;;  %v12613_v32 = vpop.f32.mrb[4].mxu1  ;;  %v11725_v50 = vld [vmem:[#allocation2 + $0x34] ss:$60 sps:$4 sm:$0xff]  }
 0x369   :  { %v12615_v56 = vpop.f32.mrb[5].mxu0  ;;  %v12617_v57 = vpop.f32.mrb[5].mxu1 }
 0x36a   :  { %v6645_v58 = vpop.f32.mrb[6].mxu0  ;;  %v6809_v59 = vpop.f32.mrb[6].mxu1  ;;  %6946 = vmatpush1.bf16.msra.mxu0 %v11657_v51  ;;  %7110 = vmatpush1.bf16.msra.mxu1 %v11660_v52  ;;  %v11726_v51 = vld [vmem:[#allocation2 + $0x3f8] ss:$60 sps:$4 sm:$0xff]   ;;  %v11723_v52 = vld [vmem:[#allocation2 + $0x30] ss:$60 sps:$4 sm:$0xff]  }
 0x36b   :  { %v6646_v63 = vpop.f32.mrb[7].mxu0  ;;  %v6810_v0 = vpop.f32.mrb[7].mxu1  ;;  %6947 = vmatprep.subr.bf16.mxu0 %v11665_v53  ;;  %7111 = vmatprep.subr.bf16.mxu1 %v11668_v54  ;;  %v11727_v53 = vld [vmem:[#allocation2 + $0x38] ss:$60 sps:$4 sm:$0xff]   ;;  %v11730_v54 = vld [vmem:[#allocation2 + $0xac] ss:$60 sps:$4 sm:$0xff]  }
 0x36c   :  { %v11731_v58 = vld [vmem:[#allocation2 + $0x470] ss:$60 sps:$4 sm:$0xff]   ;;  %v11728_v59 = vld [vmem:[#allocation2 + $0xa8] ss:$60 sps:$4 sm:$0xff]   ;;  %v11733_v0 = vld [vmem:[#allocation2 + $0x120] ss:$60 sps:$4 sm:$0xff]  }
 0x36d   :  { %v11736_v63 = vld [vmem:[#allocation2 + $0x4e8] ss:$60 sps:$4 sm:$0xff]  }
 0x36e   :  { %6948 = vmatpush1.bf16.msra.mxu0 %v11663_v61  ;;  %7112 = vmatpush1.bf16.msra.mxu1 %v11666_v62  ;;  %v11732_v61 = vld [vmem:[#allocation2 + $0xb0] ss:$60 sps:$4 sm:$0xff]   ;;  %v11735_v62 = vld [vmem:[#allocation2 + $0x124] ss:$60 sps:$4 sm:$0xff]  }
 0x36f   :  { %6949 = vmatprep.subr.bf16.mxu0 %v11671_v1  ;;  %7113 = vmatprep.subr.bf16.mxu1 %v11674_v2  ;;  %v11737_v1 = vld [vmem:[#allocation2 + $0x128] ss:$60 sps:$4 sm:$0xff]   ;;  %v11740_v2 = vld [vmem:[#allocation2 + $0x19c] ss:$60 sps:$4 sm:$0xff]  }
 0x372   :  { %6950 = vmatpush1.bf16.msra.mxu0 %v11669_v3  ;;  %7114 = vmatpush1.bf16.msra.mxu1 %v11672_v4  ;;  %v11741_v3 = vld [vmem:[#allocation2 + $0x560] ss:$60 sps:$4 sm:$0xff]   ;;  %v11738_v4 = vld [vmem:[#allocation2 + $0x198] ss:$60 sps:$4 sm:$0xff]  }
 0x373   :  { %6951 = vmatprep.subr.bf16.mxu0 %v11677_v5  ;;  %7115 = vmatprep.subr.bf16.mxu1 %v11680_v6  ;;  %v11742_v5 = vld [vmem:[#allocation2 + $0x1a0] ss:$60 sps:$4 sm:$0xff]   ;;  %v11745_v6 = vld [vmem:[#allocation2 + $0x214] ss:$60 sps:$4 sm:$0xff]  }
 0x376   :  { %6952 = vmatpush1.bf16.msra.mxu0 %v11675_v7  ;;  %7116 = vmatpush1.bf16.msra.mxu1 %v11678_v8  ;;  %v11746_v7 = vld [vmem:[#allocation2 + $0x5d8] ss:$60 sps:$4 sm:$0xff]   ;;  %v11743_v8 = vld [vmem:[#allocation2 + $0x210] ss:$60 sps:$4 sm:$0xff]  }
 0x377   :  { %6953 = vmatprep.subr.bf16.mxu0 %v11683_v10  ;;  %7117 = vmatprep.subr.bf16.mxu1 %v11686_v11  ;;  %v11750_v10 = vld [vmem:[#allocation2 + $0x28c] ss:$60 sps:$4 sm:$0xff]  }
 0x378   :  { %v11751_v11 = vld [vmem:[#allocation2 + $0x650] ss:$60 sps:$4 sm:$0xff]  }
 0x37a   :  { %6954 = vmatpush1.bf16.msra.mxu0 %v11681_v12  ;;  %7118 = vmatpush1.bf16.msra.mxu1 %v11684_v13  ;;  %v11748_v12 = vld [vmem:[#allocation2 + $0x288] ss:$60 sps:$4 sm:$0xff]   ;;  %v11752_v13 = vld [vmem:[#allocation2 + $0x290] ss:$60 sps:$4 sm:$0xff]  }
 0x37b   :  { %6955 = vmatprep.subr.bf16.mxu0 %v11689_v14  ;;  %7119 = vmatprep.subr.bf16.mxu1 %v11692_v15  ;;  %v11755_v14 = vld [vmem:[#allocation2 + $0x304] ss:$60 sps:$4 sm:$0xff]  }
 0x37c   :  { %v11756_v15 = vld [vmem:[#allocation2 + $0x6c8] ss:$60 sps:$4 sm:$0xff]  }
 0x37e   :  { %6956 = vmatpush1.bf16.msra.mxu0 %v11687_v17  ;;  %7120 = vmatpush1.bf16.msra.mxu1 %v11690_v18  ;;  %v11753_v17 = vld [vmem:[#allocation2 + $0x300] ss:$60 sps:$4 sm:$0xff]   ;;  %v11757_v18 = vld [vmem:[#allocation2 + $0x308] ss:$60 sps:$4 sm:$0xff]  }
 0x37f   :  { %6957 = vmatprep.subr.bf16.mxu0 %v11695_v19  ;;  %7121 = vmatprep.subr.bf16.mxu1 %v11698_v21  ;;  %v11760_v19 = vld [vmem:[#allocation2 + $0x37c] ss:$60 sps:$4 sm:$0xff]  }
 0x380   :  { %v11761_v21 = vld [vmem:[#allocation2 + $0x740] ss:$60 sps:$4 sm:$0xff]  }
 0x382   :  { %6958 = vmatpush1.bf16.msra.mxu0 %v11693_v22  ;;  %7122 = vmatpush1.bf16.msra.mxu1 %v11696_v23  ;;  %v11758_v22 = vld [vmem:[#allocation2 + $0x378] ss:$60 sps:$4 sm:$0xff]   ;;  %v11762_v23 = vld [vmem:[#allocation2 + $0x380] ss:$60 sps:$4 sm:$0xff]  }
 0x383   :  { %6959 = vmatprep.subr.bf16.mxu0 %v11701_v25  ;;  %7123 = vmatprep.subr.bf16.mxu1 %v11704_v27  ;;  %v11765_v25 = vld [vmem:[#allocation2 + $0x3f4] ss:$60 sps:$4 sm:$0xff]  }
 0x384   :  { %v11766_v27 = vld [vmem:[#allocation2 + $0xb78] ss:$60 sps:$4 sm:$0xff]  }
 0x386   :  { %6960 = vmatpush1.bf16.msra.mxu0 %v11699_v28  ;;  %7124 = vmatpush1.bf16.msra.mxu1 %v11702_v9  ;;  %v11763_v28 = vld [vmem:[#allocation2 + $0x3f0] ss:$60 sps:$4 sm:$0xff]   ;;  %v11767_v9 = vld [vmem:[#allocation2 + $0x7b8] ss:$60 sps:$4 sm:$0xff]  }
 0x387   :  { %6961 = vmatprep.subr.bf16.mxu0 %v11707_v30  ;;  %7125 = vmatprep.subr.bf16.mxu1 %v11710_v31  ;;  %v11770_v30 = vld [vmem:[#allocation2 + $0x46c] ss:$60 sps:$4 sm:$0xff]  }
 0x388   :  { %v11771_v31 = vld [vmem:[#allocation2 + $0xbf0] ss:$60 sps:$4 sm:$0xff]  }
 0x38a   :  { %6962 = vmatpush1.bf16.msra.mxu0 %v11705_v33  ;;  %7126 = vmatpush1.bf16.msra.mxu1 %v11708_v35  ;;  %v11768_v33 = vld [vmem:[#allocation2 + $0x468] ss:$60 sps:$4 sm:$0xff]   ;;  %v11772_v35 = vld [vmem:[#allocation2 + $0x830] ss:$60 sps:$4 sm:$0xff]  }
 0x38b   :  { %6963 = vmatprep.subr.bf16.mxu0 %v11713_v36  ;;  %7127 = vmatprep.subr.bf16.mxu1 %v11716_v37  ;;  %v11775_v36 = vld [vmem:[#allocation2 + $0x4e4] ss:$60 sps:$4 sm:$0xff]  }
 0x38c   :  { %v11776_v37 = vld [vmem:[#allocation2 + $0xc68] ss:$60 sps:$4 sm:$0xff]  }
 0x38e   :  { %6964 = vmatpush1.bf16.msra.mxu0 %v11711_v26  ;;  %7128 = vmatpush1.bf16.msra.mxu1 %v11714_v39  ;;  %v11773_v26 = vld [vmem:[#allocation2 + $0x4e0] ss:$60 sps:$4 sm:$0xff]   ;;  %v11777_v39 = vld [vmem:[#allocation2 + $0x8a8] ss:$60 sps:$4 sm:$0xff]  }
 0x38f   :  { %6965 = vmatprep.subr.bf16.mxu0 %v11719_v49  ;;  %7129 = vmatprep.subr.bf16.mxu1 %v11722_v40  ;;  %v11780_v49 = vld [vmem:[#allocation2 + $0x55c] ss:$60 sps:$4 sm:$0xff]  }
 0x390   :  { %v11781_v40 = vld [vmem:[#allocation2 + $0xce0] ss:$60 sps:$4 sm:$0xff]  }
 0x392   :  { %6966 = vmatpush1.bf16.msra.mxu0 %v11717_v41  ;;  %7130 = vmatpush1.bf16.msra.mxu1 %v11720_v44  ;;  %v11778_v41 = vld [vmem:[#allocation2 + $0x558] ss:$60 sps:$4 sm:$0xff]   ;;  %v11782_v44 = vld [vmem:[#allocation2 + $0x920] ss:$60 sps:$4 sm:$0xff]  }
 0x393   :  { %7140 = vmatprep.subr.bf16.mxu0 %v11725_v50  ;;  %10126 = vmatprep.subr.bf16.mxu1 %v11726_v51  ;;  %v11785_v50 = vld [vmem:[#allocation2 + $0x5d4] ss:$60 sps:$4 sm:$0xff]  }
 0x394   :  { %v11786_v51 = vld [vmem:[#allocation2 + $0xd58] ss:$60 sps:$4 sm:$0xff]  }
 0x395   :  { %6968 = vmatmul.mubr.bf16.vlgmr.msra.gmra.mrb[8].mxu0 %v12569_v48  ;;  %7132 = vmatmul.mubr.bf16.vlgmr.msra.gmra.mrb[8].mxu1 %v12569_v48 }
 0x396   :  { %7141 = vmatpush1.bf16.msra.mxu0 %v11723_v52  ;;  %10127 = vmatpush3.bf16.msra.mxu1 %v11727_v53  ;;  %v11783_v52 = vld [vmem:[#allocation2 + $0x5d0] ss:$60 sps:$4 sm:$0xff]   ;;  %v11787_v53 = vld [vmem:[#allocation2 + $0x998] ss:$60 sps:$4 sm:$0xff]  }
 0x397   :  { %7142 = vmatprep.subr.bf16.mxu0 %v11730_v54  ;;  %10128 = vmatprep.subr.bf16.mxu1 %v11731_v58  ;;  %v11790_v54 = vld [vmem:[#allocation2 + $0x64c] ss:$60 sps:$4 sm:$0xff]  }
 0x398   :  { %7336 = vmatprep.mubr.bf16.mxu1 %v12512_v60  ;;  %7172 = vmatprep.mubr.bf16.mxu0 %v12512_v60  ;;  %v11747_v60 = vld [vmem:[#allocation2 + $0x218] ss:$60 sps:$4 sm:$0xff]   ;;  %v11791_v58 = vld [vmem:[#allocation2 + $0xdd0] ss:$60 sps:$4 sm:$0xff]  }
 0x39a   :  { %7143 = vmatpush1.bf16.msra.mxu0 %v11728_v59  ;;  %10129 = vmatpush3.bf16.msra.mxu1 %v11732_v61  ;;  %v11788_v59 = vld [vmem:[#allocation2 + $0x648] ss:$60 sps:$4 sm:$0xff]   ;;  %v11792_v61 = vld [vmem:[#allocation2 + $0xa10] ss:$60 sps:$4 sm:$0xff]  }
 0x39b   :  { %7144 = vmatprep.subr.bf16.mxu0 %v11735_v62  ;;  %10130 = vmatprep.subr.bf16.mxu1 %v11736_v63  ;;  %v11795_v62 = vld [vmem:[#allocation2 + $0x6c4] ss:$60 sps:$4 sm:$0xff]  }
 0x39c   :  { %v11796_v63 = vld [vmem:[#allocation2 + $0xe48] ss:$60 sps:$4 sm:$0xff]  }
 0x39e   :  { %7145 = vmatpush1.bf16.msra.mxu0 %v11733_v0  ;;  %10131 = vmatpush3.bf16.msra.mxu1 %v11737_v1  ;;  %v11793_v0 = vld [vmem:[#allocation2 + $0x6c0] ss:$60 sps:$4 sm:$0xff]   ;;  %v11797_v1 = vld [vmem:[#allocation2 + $0xa88] ss:$60 sps:$4 sm:$0xff]  }
 0x39f   :  { %7146 = vmatprep.subr.bf16.mxu0 %v11740_v2  ;;  %10132 = vmatprep.subr.bf16.mxu1 %v11741_v3  ;;  %v11800_v2 = vld [vmem:[#allocation2 + $0x73c] ss:$60 sps:$4 sm:$0xff]  }
 0x3a0   :  { %v11801_v3 = vld [vmem:[#allocation2 + $0xec0] ss:$60 sps:$4 sm:$0xff]  }
 0x3a2   :  { %7147 = vmatpush1.bf16.msra.mxu0 %v11738_v4  ;;  %10133 = vmatpush3.bf16.msra.mxu1 %v11742_v5  ;;  %v11798_v4 = vld [vmem:[#allocation2 + $0x738] ss:$60 sps:$4 sm:$0xff]   ;;  %v11802_v5 = vld [vmem:[#allocation2 + $0xb00] ss:$60 sps:$4 sm:$0xff]  }
 0x3a3   :  { %7148 = vmatprep.subr.bf16.mxu0 %v11745_v6  ;;  %10134 = vmatprep.subr.bf16.mxu1 %v11746_v7  ;;  %v11805_v6 = vld [vmem:[#allocation2 + $0x7b4] ss:$60 sps:$4 sm:$0xff]  }
 0x3a4   :  { %v11806_v7 = vld [vmem:[#allocation2 + $0x12f8] ss:$60 sps:$4 sm:$0xff]  }
 0x3a6   :  { %7149 = vmatpush1.bf16.msra.mxu0 %v11743_v8  ;;  %10135 = vmatpush3.bf16.msra.mxu1 %v11747_v60  ;;  %v11803_v8 = vld [vmem:[#allocation2 + $0x7b0] ss:$60 sps:$4 sm:$0xff]   ;;  %v11807_v60 = vld [vmem:[#allocation2 + $0xf38] ss:$60 sps:$4 sm:$0xff]  }
 0x3a7   :  { %7150 = vmatprep.subr.bf16.mxu0 %v11750_v10  ;;  %10136 = vmatprep.subr.bf16.mxu1 %v11751_v11  ;;  %v11810_v10 = vld [vmem:[#allocation2 + $0x82c] ss:$60 sps:$4 sm:$0xff]  }
 0x3a8   :  { %v11811_v11 = vld [vmem:[#allocation2 + $0x1370] ss:$60 sps:$4 sm:$0xff]  }
 0x3aa   :  { %7151 = vmatpush1.bf16.msra.mxu0 %v11748_v12  ;;  %10137 = vmatpush3.bf16.msra.mxu1 %v11752_v13  ;;  %v11808_v12 = vld [vmem:[#allocation2 + $0x828] ss:$60 sps:$4 sm:$0xff]   ;;  %v11812_v13 = vld [vmem:[#allocation2 + $0xfb0] ss:$60 sps:$4 sm:$0xff]  }
 0x3ab   :  { %7152 = vmatprep.subr.bf16.mxu0 %v11755_v14  ;;  %10138 = vmatprep.subr.bf16.mxu1 %v11756_v15  ;;  %v11815_v14 = vld [vmem:[#allocation2 + $0x8a4] ss:$60 sps:$4 sm:$0xff]  }
 0x3ac   :  { %v11816_v15 = vld [vmem:[#allocation2 + $0x13e8] ss:$60 sps:$4 sm:$0xff]  }
 0x3ae   :  { %7153 = vmatpush1.bf16.msra.mxu0 %v11753_v17  ;;  %10139 = vmatpush3.bf16.msra.mxu1 %v11757_v18  ;;  %v11813_v17 = vld [vmem:[#allocation2 + $0x8a0] ss:$60 sps:$4 sm:$0xff]   ;;  %v11817_v18 = vld [vmem:[#allocation2 + $0x1028] ss:$60 sps:$4 sm:$0xff]  }
 0x3af   :  { %7154 = vmatprep.subr.bf16.mxu0 %v11760_v19  ;;  %10140 = vmatprep.subr.bf16.mxu1 %v11761_v21  ;;  %v11821_v19 = vld [vmem:[#allocation2 + $0x1460] ss:$60 sps:$4 sm:$0xff]   ;;  %v11818_v21 = vld [vmem:[#allocation2 + $0x918] ss:$60 sps:$4 sm:$0xff]  }
 0x3b2   :  { %7155 = vmatpush1.bf16.msra.mxu0 %v11758_v22  ;;  %10141 = vmatpush3.bf16.msra.mxu1 %v11762_v23  ;;  %v11822_v22 = vld [vmem:[#allocation2 + $0x10a0] ss:$60 sps:$4 sm:$0xff]   ;;  %v11825_v23 = vld [vmem:[#allocation2 + $0x994] ss:$60 sps:$4 sm:$0xff]  }
 0x3b3   :  { %7156 = vmatprep.subr.bf16.mxu0 %v11765_v25  ;;  %10148 = vmatprep.subr.bf16.mxu1 %v11766_v27  ;;  %v11826_v25 = vld [vmem:[#allocation2 + $0x14d8] ss:$60 sps:$4 sm:$0xff]   ;;  %v11823_v27 = vld [vmem:[#allocation2 + $0x990] ss:$60 sps:$4 sm:$0xff]  }
 0x3b5   :  { %7337 = vmatmul.mubr.bf16.vlgmr.msra.gmra.mrb[12].mxu1 %v12521_v16 }
 0x3b6   :  { %7157 = vmatpush1.bf16.msra.mxu0 %v11763_v28  ;;  %10149 = vmatpush3.bf16.msra.mxu1 %v11767_v9  ;;  %v11830_v28 = vld [vmem:[#allocation2 + $0xa0c] ss:$60 sps:$4 sm:$0xff]  }
 0x3b7   :  { %7158 = vmatprep.subr.bf16.mxu0 %v11770_v30  ;;  %10150 = vmatprep.subr.bf16.mxu1 %v11771_v31  ;;  %v11831_v9 = vld [vmem:[#allocation2 + $0x1550] ss:$60 sps:$4 sm:$0xff]   ;;  %v11828_v30 = vld [vmem:[#allocation2 + $0xa08] ss:$60 sps:$4 sm:$0xff]  }
 0x3b8   :  { %7376 = vmatprep.mubr.bf16.mxu1 %v12523_v20  ;;  %v11832_v31 = vld [vmem:[#allocation2 + $0x1190] ss:$60 sps:$4 sm:$0xff]  }
 0x3ba   :  { %7159 = vmatpush1.bf16.msra.mxu0 %v11768_v33  ;;  %10151 = vmatpush3.bf16.msra.mxu1 %v11772_v35  ;;  %v11835_v33 = vld [vmem:[#allocation2 + $0xa84] ss:$60 sps:$4 sm:$0xff]  }
 0x3bb   :  { %7160 = vmatprep.subr.bf16.mxu0 %v11775_v36  ;;  %10152 = vmatprep.subr.bf16.mxu1 %v11776_v37  ;;  %v11836_v35 = vld [vmem:[#allocation2 + $0x15c8] ss:$60 sps:$4 sm:$0xff]   ;;  %v11833_v36 = vld [vmem:[#allocation2 + $0xa80] ss:$60 sps:$4 sm:$0xff]  }
 0x3bc   :  { %v11837_v37 = vld [vmem:[#allocation2 + $0x1208] ss:$60 sps:$4 sm:$0xff]  }
 0x3be   :  { %7161 = vmatpush1.bf16.msra.mxu0 %v11773_v26  ;;  %10153 = vmatpush3.bf16.msra.mxu1 %v11777_v39  ;;  %v11840_v26 = vld [vmem:[#allocation2 + $0xafc] ss:$60 sps:$4 sm:$0xff]  }
 0x3bf   :  { %7162 = vmatprep.subr.bf16.mxu0 %v11780_v49  ;;  %10154 = vmatprep.subr.bf16.mxu1 %v11781_v40  ;;  %v11841_v39 = vld [vmem:[#allocation2 + $0x1640] ss:$60 sps:$4 sm:$0xff]   ;;  %v11838_v49 = vld [vmem:[#allocation2 + $0xaf8] ss:$60 sps:$4 sm:$0xff]  }
 0x3c0   :  { %v11842_v40 = vld [vmem:[#allocation2 + $0x1280] ss:$60 sps:$4 sm:$0xff]  }
 0x3c2   :  { %7163 = vmatpush1.bf16.msra.mxu0 %v11778_v41  ;;  %10155 = vmatpush3.bf16.msra.mxu1 %v11782_v44  ;;  %v11845_v41 = vld [vmem:[#allocation2 + $0xb74] ss:$60 sps:$4 sm:$0xff]  }
 0x3c3   :  { %7164 = vmatprep.subr.bf16.mxu0 %v11785_v50  ;;  %10156 = vmatprep.subr.bf16.mxu1 %v11786_v51  ;;  %v11846_v44 = vld [vmem:[#allocation2 + $0x1a78] ss:$60 sps:$4 sm:$0xff]   ;;  %v11843_v50 = vld [vmem:[#allocation2 + $0xb70] ss:$60 sps:$4 sm:$0xff]  }
 0x3c4   :  { %v11847_v51 = vld [vmem:[#allocation2 + $0x16b8] ss:$60 sps:$4 sm:$0xff]  }
 0x3c6   :  { %7165 = vmatpush1.bf16.msra.mxu0 %v11783_v52  ;;  %10157 = vmatpush3.bf16.msra.mxu1 %v11787_v53  ;;  %v11850_v52 = vld [vmem:[#allocation2 + $0xbec] ss:$60 sps:$4 sm:$0xff]  }
 0x3c7   :  { %7166 = vmatprep.subr.bf16.mxu0 %v11790_v54  ;;  %10158 = vmatprep.subr.bf16.mxu1 %v11791_v58  ;;  %v11851_v53 = vld [vmem:[#allocation2 + $0x1af0] ss:$60 sps:$4 sm:$0xff]   ;;  %v11848_v54 = vld [vmem:[#allocation2 + $0xbe8] ss:$60 sps:$4 sm:$0xff]  }
 0x3c8   :  { %v11852_v58 = vld [vmem:[#allocation2 + $0x1730] ss:$60 sps:$4 sm:$0xff]  }
 0x3ca   :  { %7167 = vmatpush1.bf16.msra.mxu0 %v11788_v59  ;;  %10159 = vmatpush3.bf16.msra.mxu1 %v11792_v61  ;;  %v11855_v59 = vld [vmem:[#allocation2 + $0xc64] ss:$60 sps:$4 sm:$0xff]  }
 0x3cb   :  { %7168 = vmatprep.subr.bf16.mxu0 %v11795_v62  ;;  %10160 = vmatprep.subr.bf16.mxu1 %v11796_v63  ;;  %v11856_v61 = vld [vmem:[#allocation2 + $0x1b68] ss:$60 sps:$4 sm:$0xff]   ;;  %v11853_v62 = vld [vmem:[#allocation2 + $0xc60] ss:$60 sps:$4 sm:$0xff]  }
 0x3cc   :  { %v11857_v63 = vld [vmem:[#allocation2 + $0x17a8] ss:$60 sps:$4 sm:$0xff]  }
 0x3ce   :  { %7169 = vmatpush1.bf16.msra.mxu0 %v11793_v0  ;;  %10161 = vmatpush3.bf16.msra.mxu1 %v11797_v1  ;;  %v11860_v0 = vld [vmem:[#allocation2 + $0xcdc] ss:$60 sps:$4 sm:$0xff]  }
 0x3cf   :  { %7170 = vmatprep.subr.bf16.mxu0 %v11800_v2  ;;  %10162 = vmatprep.subr.bf16.mxu1 %v11801_v3  ;;  %v11861_v1 = vld [vmem:[#allocation2 + $0x1be0] ss:$60 sps:$4 sm:$0xff]   ;;  %v11858_v2 = vld [vmem:[#allocation2 + $0xcd8] ss:$60 sps:$4 sm:$0xff]  }
 0x3d0   :  { %v11862_v3 = vld [vmem:[#allocation2 + $0x1820] ss:$60 sps:$4 sm:$0xff]  }
 0x3d2   :  { %7171 = vmatpush1.bf16.msra.mxu0 %v11798_v4  ;;  %10163 = vmatpush3.bf16.msra.mxu1 %v11802_v5  ;;  %v11865_v4 = vld [vmem:[#allocation2 + $0xd54] ss:$60 sps:$4 sm:$0xff]  }
 0x3d3   :  { %7181 = vmatprep.subr.bf16.mxu0 %v11805_v6  ;;  %10170 = vmatprep.subr.bf16.mxu1 %v11806_v7  ;;  %v11866_v5 = vld [vmem:[#allocation2 + $0x1c58] ss:$60 sps:$4 sm:$0xff]   ;;  %v11863_v6 = vld [vmem:[#allocation2 + $0xd50] ss:$60 sps:$4 sm:$0xff]  }
 0x3d4   :  { %v11867_v7 = vld [vmem:[#allocation2 + $0x1898] ss:$60 sps:$4 sm:$0xff]  }
 0x3d5   :  { %7173 = vmatmul.mubr.bf16.vlgmr.msra.gmra.mrb[12].mxu0 %v12521_v16  ;;  %7377 = vmatmul.mubr.bf16.vlgmr.msra.gmra.mrb[16].mxu1 %v12531_v24  ;;  %v11820_v16 = vld [vmem:[#allocation2 + $0x91c] ss:$60 sps:$4 sm:$0xff]  }
 0x3d6   :  { %7182 = vmatpush1.bf16.msra.mxu0 %v11803_v8  ;;  %10171 = vmatpush3.bf16.msra.mxu1 %v11807_v60  ;;  %v11870_v8 = vld [vmem:[#allocation2 + $0xdcc] ss:$60 sps:$4 sm:$0xff]  }
 0x3d7   :  { %7183 = vmatprep.subr.bf16.mxu0 %v11810_v10  ;;  %10172 = vmatprep.subr.bf16.mxu1 %v11811_v11  ;;  %v11871_v60 = vld [vmem:[#allocation2 + $0x1cd0] ss:$60 sps:$4 sm:$0xff]   ;;  %v1223_v10 = vsub.s32 1, %v12503_v43  ;;  %v12632_v11 = vld [vmem:[#allocation5] sm:$0xff] }
 0x3d8   :  { %7416 = vmatprep.mubr.bf16.mxu1 %v12546_v34  ;;  %7213 = vmatprep.mubr.bf16.mxu0 %v12523_v20  ;;  %v11827_v20 = vld [vmem:[#allocation2 + $0x1118] ss:$60 sps:$4 sm:$0xff]  }
 0x3da   :  { %7184 = vmatpush1.bf16.msra.mxu0 %v11808_v12  ;;  %10173 = vmatpush3.bf16.msra.mxu1 %v11812_v13  ;;  %v11868_v12 = vld [vmem:[#allocation2 + $0xdc8] ss:$60 sps:$4 sm:$0xff]   ;;  %v11872_v13 = vld [vmem:[#allocation2 + $0x1910] ss:$60 sps:$4 sm:$0xff]  }
 0x3db   :  { %7185 = vmatprep.subr.bf16.mxu0 %v11815_v14  ;;  %10174 = vmatprep.subr.bf16.mxu1 %v11816_v15  ;;  %v11875_v14 = vld [vmem:[#allocation2 + $0xe44] ss:$60 sps:$4 sm:$0xff]  }
 0x3dc   :  { %v11876_v15 = vld [vmem:[#allocation2 + $0x1d48] ss:$60 sps:$4 sm:$0xff]  }
 0x3de   :  { %7186 = vmatpush1.bf16.msra.mxu0 %v11813_v17  ;;  %10175 = vmatpush3.bf16.msra.mxu1 %v11817_v18  ;;  %v1224_v17 = vrot.slane %v12632_v11, %v1223_v10  ;;  %v11873_v18 = vld [vmem:[#allocation2 + $0xe40] ss:$60 sps:$4 sm:$0xff]  }
 0x3df   :  { %7187 = vmatprep.subr.bf16.mxu0 %v11820_v16  ;;  %10176 = vmatprep.subr.bf16.mxu1 %v11821_v19  ;;  %v11877_v16 = vld [vmem:[#allocation2 + $0x1988] ss:$60 sps:$4 sm:$0xff]   ;;  %v11880_v19 = vld [vmem:[#allocation2 + $0xebc] ss:$60 sps:$4 sm:$0xff]  }
 0x3e2   :  { %7188 = vmatpush1.bf16.msra.mxu0 %v11818_v21  ;;  %10177 = vmatpush3.bf16.msra.mxu1 %v11822_v22  ;;  %v11881_v21 = vld [vmem:[#allocation2 + $0x1dc0] ss:$60 sps:$4 sm:$0xff]   ;;  %v10456_v22 = vadd.f32 %v12591_v46, %v1224_v17  ;;  %v11888_v46 = vld [vmem:[#allocation2 + $0xfa8] ss:$60 sps:$4 sm:$0xff]  }
 0x3e3   :  { %7189 = vmatprep.subr.bf16.mxu0 %v11825_v23  ;;  %10178 = vmatprep.subr.bf16.mxu1 %v11826_v25  ;;  %v11878_v23 = vld [vmem:[#allocation2 + $0xeb8] ss:$60 sps:$4 sm:$0xff]   ;;  %v11882_v25 = vld [vmem:[#allocation2 + $0x1a00] ss:$60 sps:$4 sm:$0xff]  }
 0x3e6   :  { %7190 = vmatpush1.bf16.msra.mxu0 %v11823_v27  ;;  %10179 = vmatpush3.bf16.msra.mxu1 %v11827_v20  ;;  %v11885_v27 = vld [vmem:[#allocation2 + $0xf34] ss:$60 sps:$4 sm:$0xff]  }
 0x3e7   :  { %7191 = vmatprep.subr.bf16.mxu0 %v11830_v28  ;;  %10180 = vmatprep.subr.bf16.mxu1 %v11831_v9  ;;  %v11886_v20 = vld [vmem:[#allocation7 + $0x40] sm:$0xff]   ;;  %v7465_v28 = vmax.f32 %v10456_v22, 0.0  ;;  %v11928_v22 = vld [vmem:[#allocation2 + $0x1368] ss:$60 sps:$4 sm:$0xff]  }
 0x3e8   :  { %v11883_v9 = vld [vmem:[#allocation2 + $0xf30] ss:$60 sps:$4 sm:$0xff]  }
 0x3ea   :  { %7192 = vmatpush1.bf16.msra.mxu0 %v11828_v30  ;;  %10181 = vmatpush3.bf16.msra.mxu1 %v11832_v31  ;;  %v11887_v30 = vld [vmem:[#allocation7] sm:$0xff]   ;;  %v11890_v31 = vld [vmem:[#allocation2 + $0xfac] ss:$60 sps:$4 sm:$0xff]  }
 0x3eb   :  { %7193 = vmatprep.subr.bf16.mxu0 %v11835_v33  ;;  %10182 = vmatprep.subr.bf16.mxu1 %v11836_v35  ;;  %v11891_v33 = vld [vmem:[#allocation7 + $0x48] sm:$0xff]   ;;  %v7480_v35 = vpack.c.bf16 %v7465_v28, %v7465_v28  ;;  %v11937_v28 = vld [vmem:[#allocation7 + $0x90] sm:$0xff]  }
 0x3ee   :  { %7194 = vmatpush1.bf16.msra.mxu0 %v11833_v36  ;;  %10183 = vmatpush3.bf16.msra.mxu1 %v11837_v37  ;;  %v11892_v36 = vld [vmem:[#allocation7 + $0x8] sm:$0xff]   ;;  %v11895_v37 = vld [vmem:[#allocation2 + $0x1024] ss:$60 sps:$4 sm:$0xff]  }
 0x3ef   :  { %7195 = vmatprep.subr.bf16.mxu0 %v11840_v26  ;;  %10184 = vmatprep.subr.bf16.mxu1 %v11841_v39  ;;  %v11896_v26 = vld [vmem:[#allocation7 + $0x50] sm:$0xff]  }
 0x3f0   :  { %v11893_v39 = vld [vmem:[#allocation2 + $0x1020] ss:$60 sps:$4 sm:$0xff]  }
 0x3f2   :  { %7196 = vmatpush1.bf16.msra.mxu0 %v11838_v49  ;;  %10185 = vmatpush3.bf16.msra.mxu1 %v11842_v40  ;;  %v11897_v49 = vld [vmem:[#allocation7 + $0x10] sm:$0xff]   ;;  %v11900_v40 = vld [vmem:[#allocation2 + $0x109c] ss:$60 sps:$4 sm:$0xff]  }
 0x3f3   :  { %7197 = vmatprep.subr.bf16.mxu0 %v11845_v41  ;;  %10192 = vmatprep.subr.bf16.mxu1 %v11846_v44  ;;  %v11901_v41 = vld [vmem:[#allocation7 + $0x58] sm:$0xff]  }
 0x3f4   :  { %v11902_v44 = vld [vmem:[#allocation7 + $0x18] sm:$0xff]  }
 0x3f5   :  { %7417 = vmatmul.mubr.bf16.vlgmr.msra.gmra.mrb[20].mxu1 %v12559_v38 }
 0x3f6   :  { %7198 = vmatpush1.bf16.msra.mxu0 %v11843_v50  ;;  %10193 = vmatpush3.bf16.msra.mxu1 %v11847_v51  ;;  %v11905_v50 = vld [vmem:[#allocation2 + $0x1114] ss:$60 sps:$4 sm:$0xff]  }
 0x3f7   :  { %7199 = vmatprep.subr.bf16.mxu0 %v11850_v52  ;;  %10194 = vmatprep.subr.bf16.mxu1 %v11851_v53  ;;  %v11906_v51 = vld [vmem:[#allocation7 + $0x60] sm:$0xff]   ;;  %v1219_v53 = vsub.s32 0, %v12503_v43 }
 0x3f8   :  { %7456 = vmatprep.mubr.bf16.mxu1 %v12561_v42  ;;  %v11903_v52 = vld [vmem:[#allocation2 + $0x1110] ss:$60 sps:$4 sm:$0xff]  }
 0x3fa   :  { %7200 = vmatpush1.bf16.msra.mxu0 %v11848_v54  ;;  %10195 = vmatpush3.bf16.msra.mxu1 %v11852_v58  ;;  %v11910_v54 = vld [vmem:[#allocation2 + $0x118c] ss:$60 sps:$4 sm:$0xff]   ;;  %v11911_v58 = vld [vmem:[#allocation7 + $0x68] sm:$0xff]  }
 0x3fb   :  { %7201 = vmatprep.subr.bf16.mxu0 %v11855_v59  ;;  %10196 = vmatprep.subr.bf16.mxu1 %v11856_v61  ;;  %v1231_v59 = vsub.s32 3, %v12503_v43  ;;  %v11908_v61 = vld [vmem:[#allocation2 + $0x1188] ss:$60 sps:$4 sm:$0xff]  }
 0x3fe   :  { %7202 = vmatpush1.bf16.msra.mxu0 %v11853_v62  ;;  %10197 = vmatpush3.bf16.msra.mxu1 %v11857_v63  ;;  %v11912_v62 = vld [vmem:[#allocation7 + $0x28] sm:$0xff]   ;;  %v1220_v63 = vrot.slane %v12632_v11, %v1219_v53 }
 0x3ff   :  { %7203 = vmatprep.subr.bf16.mxu0 %v11860_v0  ;;  %10198 = vmatprep.subr.bf16.mxu1 %v11861_v1  ;;  %v11915_v0 = vld [vmem:[#allocation2 + $0x1204] ss:$60 sps:$4 sm:$0xff]  }
 0x400   :  { %v11916_v1 = vld [vmem:[#allocation7 + $0x70] sm:$0xff]  }
 0x402   :  { %7204 = vmatpush1.bf16.msra.mxu0 %v11858_v2  ;;  %10199 = vmatpush3.bf16.msra.mxu1 %v11862_v3  ;;  %v1232_v2 = vrot.slane %v12632_v11, %v1231_v59  ;;  %v11913_v3 = vld [vmem:[#allocation2 + $0x1200] ss:$60 sps:$4 sm:$0xff]  }
 0x403   :  { %7205 = vmatprep.subr.bf16.mxu0 %v11865_v4  ;;  %10200 = vmatprep.subr.bf16.mxu1 %v11866_v5  ;;  %v11917_v4 = vld [vmem:[#allocation7 + $0x30] sm:$0xff]   ;;  %v10455_v5 = vadd.f32 %v12587_v45, %v1220_v63  ;;  %v11927_v45 = vld [vmem:[#allocation7 + $0x80] sm:$0xff]  }
 0x406   :  { %7206 = vmatpush1.bf16.msra.mxu0 %v11863_v6  ;;  %10201 = vmatpush3.bf16.msra.mxu1 %v11867_v7  ;;  %v11920_v6 = vld [vmem:[#allocation2 + $0x127c] ss:$60 sps:$4 sm:$0xff]   ;;  %v11921_v7 = vld [vmem:[#allocation7 + $0x78] sm:$0xff]  }
 0x407   :  { %7207 = vmatprep.subr.bf16.mxu0 %v11870_v8  ;;  %10202 = vmatprep.subr.bf16.mxu1 %v11871_v60  ;;  %v10458_v8 = vadd.f32 %v12593_v47, %v1232_v2  ;;  %v11918_v60 = vld [vmem:[#allocation2 + $0x1278] ss:$60 sps:$4 sm:$0xff]  }
 0x409   :  { %v7467_v17 = vmax.f32 %v10458_v8, 0.0  ;;  %v11970_v8 = vld [vmem:[#allocation2 + $0x172c] ss:$60 sps:$4 sm:$0xff]  }
 0x40a   :  { %7208 = vmatpush1.bf16.msra.mxu0 %v11868_v12  ;;  %10203 = vmatpush3.bf16.msra.mxu1 %v11872_v13  ;;  %v11922_v12 = vld [vmem:[#allocation7 + $0x38] sm:$0xff]   ;;  %v7464_v13 = vmax.f32 %v10455_v5, 0.0 }
 0x40b   :  { %7209 = vmatprep.subr.bf16.mxu0 %v11875_v14  ;;  %10204 = vmatprep.subr.bf16.mxu1 %v11876_v15  ;;  %v11925_v14 = vld [vmem:[#allocation2 + $0x12f4] ss:$60 sps:$4 sm:$0xff]   ;;  %v7482_v47 = vpack.c.bf16 %v7467_v17, %v7467_v17  ;;  %v11973_v17 = vld [vmem:[#allocation2 + $0x17a0] ss:$60 sps:$4 sm:$0xff]  }
 0x40c   :  { %v11926_v15 = vld [vmem:[#allocation7 + $0xc0] sm:$0xff]  }
 0x40e   :  { %7210 = vmatpush1.bf16.msra.mxu0 %v11873_v18  ;;  %10205 = vmatpush3.bf16.msra.mxu1 %v11877_v16  ;;  %v11923_v18 = vld [vmem:[#allocation2 + $0x12f0] ss:$60 sps:$4 sm:$0xff]   ;;  %v7479_v16 = vpack.c.bf16 %v7464_v13, %v7464_v13  ;;  %v11972_v13 = vld [vmem:[#allocation7 + $0x108] sm:$0xff]  }
 0x40f   :  { %7211 = vmatprep.subr.bf16.mxu0 %v11880_v19  ;;  %10206 = vmatprep.subr.bf16.mxu1 %v11881_v21  ;;  %v11930_v19 = vld [vmem:[#allocation2 + $0x136c] ss:$60 sps:$4 sm:$0xff]   ;;  %v11931_v21 = vld [vmem:[#allocation7 + $0xc8] sm:$0xff]  }
 0x412   :  { %7212 = vmatpush1.bf16.msra.mxu0 %v11878_v23  ;;  %10207 = vmatpush3.bf16.msra.mxu1 %v11882_v25  ;;  %v11932_v23 = vld [vmem:[#allocation7 + $0x88] sm:$0xff]   ;;  %v11935_v25 = vld [vmem:[#allocation2 + $0x13e4] ss:$60 sps:$4 sm:$0xff]  }
 0x413   :  { %7222 = vmatprep.subr.bf16.mxu0 %v11885_v27  ;;  %10214 = vmatprep.subr.bf16.mxu1 %v11886_v20  ;;  %v11936_v27 = vld [vmem:[#allocation7 + $0xd0] sm:$0xff]  }
 0x414   :  { %v11933_v20 = vld [vmem:[#allocation2 + $0x13e0] ss:$60 sps:$4 sm:$0xff]  }
 0x415   :  { %7457 = vmatmul.mubr.bf16.vlgmr.msra.gmra.mrb[24].mxu1 %v12569_v48  ;;  %7214 = vmatmul.mubr.bf16.vlgmr.msra.gmra.mrb[12].mxu0 %v12531_v24  ;;  %v11898_v24 = vld [vmem:[#allocation2 + $0x1098] ss:$60 sps:$4 sm:$0xff]  }
 0x416   :  { %7223 = vmatpush1.bf16.msra.mxu0 %v11883_v9  ;;  %10215 = vmatpush3.bf16.msra.mxu1 %v11887_v30  ;;  %v11940_v9 = vld [vmem:[#allocation2 + $0x145c] ss:$60 sps:$4 sm:$0xff]   ;;  %v11941_v30 = vld [vmem:[#allocation7 + $0xd8] sm:$0xff]  }
 0x417   :  { %8493 = vmatprep.mubr.bf16.mxu1 %v7480_v35  ;;  %7224 = vmatprep.subr.bf16.mxu0 %v11890_v31  ;;  %v11938_v31 = vld [vmem:[#allocation2 + $0x1458] ss:$60 sps:$4 sm:$0xff]  }
 0x418   :  { %10216 = vmatprep.subr.bf16.mxu1 %v11891_v33  ;;  %7254 = vmatprep.mubr.bf16.mxu0 %v12546_v34  ;;  %v11907_v34 = vld [vmem:[#allocation7 + $0x20] sm:$0xff]   ;;  %v11942_v33 = vld [vmem:[#allocation7 + $0x98] sm:$0xff]  }
 0x419   :  { %v11945_v35 = vld [vmem:[#allocation2 + $0x14d4] ss:$60 sps:$4 sm:$0xff]  }
 0x41a   :  { %7225 = vmatpush1.bf16.msra.mxu0 %v11888_v46  ;;  %10217 = vmatpush3.bf16.msra.mxu1 %v11892_v36  ;;  %v11946_v46 = vld [vmem:[#allocation7 + $0xe0] sm:$0xff]  }
 0x41b   :  { %7226 = vmatprep.subr.bf16.mxu0 %v11895_v37  ;;  %10218 = vmatprep.subr.bf16.mxu1 %v11896_v26  ;;  %v11943_v36 = vld [vmem:[#allocation2 + $0x14d0] ss:$60 sps:$4 sm:$0xff]   ;;  %v1227_v26 = vsub.s32 2, %v12503_v43 }
 0x41c   :  { %v11947_v37 = vld [vmem:[#allocation7 + $0xa0] sm:$0xff]  }
 0x41e   :  { %7227 = vmatpush1.bf16.msra.mxu0 %v11893_v39  ;;  %10219 = vmatpush3.bf16.msra.mxu1 %v11897_v49  ;;  %v11950_v39 = vld [vmem:[#allocation2 + $0x154c] ss:$60 sps:$4 sm:$0xff]   ;;  %v11951_v49 = vld [vmem:[#allocation7 + $0xe8] sm:$0xff]  }
 0x41f   :  { %7228 = vmatprep.subr.bf16.mxu0 %v11900_v40  ;;  %10220 = vmatprep.subr.bf16.mxu1 %v11901_v41  ;;  %v1239_v40 = vsub.s32 5, %v12503_v43  ;;  %v11948_v41 = vld [vmem:[#allocation2 + $0x1548] ss:$60 sps:$4 sm:$0xff]  }
 0x422   :  { %7229 = vmatpush1.bf16.msra.mxu0 %v11898_v24  ;;  %10221 = vmatpush3.bf16.msra.mxu1 %v11902_v44  ;;  %v11952_v24 = vld [vmem:[#allocation7 + $0xa8] sm:$0xff]   ;;  %v1228_v44 = vrot.slane %v12632_v11, %v1227_v26 }
 0x423   :  { %7230 = vmatprep.subr.bf16.mxu0 %v11905_v50  ;;  %10222 = vmatprep.subr.bf16.mxu1 %v11906_v51  ;;  %v11955_v50 = vld [vmem:[#allocation2 + $0x15c4] ss:$60 sps:$4 sm:$0xff]  }
 0x424   :  { %v11956_v51 = vld [vmem:[#allocation7 + $0xf0] sm:$0xff]  }
 0x426   :  { %7231 = vmatpush1.bf16.msra.mxu0 %v11903_v52  ;;  %10223 = vmatpush3.bf16.msra.mxu1 %v11907_v34  ;;  %v1240_v52 = vrot.slane %v12632_v11, %v1239_v40  ;;  %v11953_v34 = vld [vmem:[#allocation2 + $0x15c0] ss:$60 sps:$4 sm:$0xff]  }
 0x427   :  { %7232 = vmatprep.subr.bf16.mxu0 %v11910_v54  ;;  %10224 = vmatprep.subr.bf16.mxu1 %v11911_v58  ;;  %v11957_v54 = vld [vmem:[#allocation7 + $0xb0] sm:$0xff]   ;;  %v10457_v58 = vadd.f32 %v12589_v29, %v1228_v44  ;;  %v11967_v29 = vld [vmem:[#allocation7 + $0x100] sm:$0xff]  }
 0x428   :  { %v10460_v63 = vadd.f32 %v12615_v56, %v1240_v52  ;;  %v11997_v44 = vld [vmem:[#allocation7 + $0x130] sm:$0xff]  }
 0x429   :  { %v7466_v2 = vmax.f32 %v10457_v58, 0.0 }
 0x42a   :  { %7233 = vmatpush1.bf16.msra.mxu0 %v11908_v61  ;;  %10225 = vmatpush3.bf16.msra.mxu1 %v11912_v62  ;;  %v11960_v61 = vld [vmem:[#allocation2 + $0x163c] ss:$60 sps:$4 sm:$0xff]   ;;  %v11961_v62 = vld [vmem:[#allocation7 + $0xf8] sm:$0xff]   ;;  %v7469_v5 = vmax.f32 %v10460_v63, 0.0 }
 0x42b   :  { %7234 = vmatprep.subr.bf16.mxu0 %v11915_v0  ;;  %10226 = vmatprep.subr.bf16.mxu1 %v11916_v1  ;;  %v11958_v0 = vld [vmem:[#allocation2 + $0x1638] ss:$60 sps:$4 sm:$0xff]   ;;  %v11962_v1 = vld [vmem:[#allocation7 + $0xb8] sm:$0xff]  }
 0x42c   :  { %v7484_v56 = vpack.c.bf16 %v7469_v5, %v7469_v5  ;;  %v12010_v5 = vld [vmem:[#allocation2 + $0x1aec] ss:$60 sps:$4 sm:$0xff]  }
 0x42e   :  { %7235 = vmatpush1.bf16.msra.mxu0 %v11913_v3  ;;  %10227 = vmatpush3.bf16.msra.mxu1 %v11917_v4  ;;  %v11965_v3 = vld [vmem:[#allocation2 + $0x16b4] ss:$60 sps:$4 sm:$0xff]  }
 0x42f   :  { %7236 = vmatprep.subr.bf16.mxu0 %v11920_v6  ;;  %10228 = vmatprep.subr.bf16.mxu1 %v11921_v7  ;;  %v11966_v4 = vld [vmem:[#allocation7 + $0x140] sm:$0xff]   ;;  %v7481_v7 = vpack.c.bf16 %v7466_v2, %v7466_v2 }
 0x430   :  { %v11963_v6 = vld [vmem:[#allocation2 + $0x16b0] ss:$60 sps:$4 sm:$0xff]  }
 0x432   :  { %7237 = vmatpush1.bf16.msra.mxu0 %v11918_v60  ;;  %10229 = vmatpush3.bf16.msra.mxu1 %v11922_v12  ;;  %v11971_v60 = vld [vmem:[#allocation7 + $0x148] sm:$0xff]   ;;  %v11968_v12 = vld [vmem:[#allocation2 + $0x1728] ss:$60 sps:$4 sm:$0xff]  }
 0x433   :  { %7238 = vmatprep.subr.bf16.mxu0 %v11925_v14  ;;  %10236 = vmatprep.subr.bf16.mxu1 %v11926_v15  ;;  %v11975_v14 = vld [vmem:[#allocation2 + $0x17a4] ss:$60 sps:$4 sm:$0xff]  }
 0x434   :  { %v11976_v15 = vld [vmem:[#allocation7 + $0x150] sm:$0xff]  }
 0x435   :  { %8494 = vmatmul.mubr.bf16.vlgmr.msra.gmra.mrb[28].mxu1 %v7479_v16  ;;  %v11981_v16 = vld [vmem:[#allocation7 + $0x158] sm:$0xff]  }
 0x436   :  { %7239 = vmatpush1.bf16.msra.mxu0 %v11923_v18  ;;  %10237 = vmatpush3.bf16.msra.mxu1 %v11927_v45  ;;  %v11977_v18 = vld [vmem:[#allocation7 + $0x110] sm:$0xff]   ;;  %v11980_v45 = vld [vmem:[#allocation2 + $0x181c] ss:$60 sps:$4 sm:$0xff]  }
 0x437   :  { %8533 = vmatprep.mubr.bf16.mxu1 %v7482_v47  ;;  %7240 = vmatprep.subr.bf16.mxu0 %v11930_v19  ;;  %v11982_v19 = vld [vmem:[#allocation7 + $0x118] sm:$0xff]   ;;  %v11986_v47 = vld [vmem:[#allocation7 + $0x160] sm:$0xff]  }
 0x438   :  { %10238 = vmatprep.subr.bf16.mxu1 %v11931_v21  ;;  %v11985_v21 = vld [vmem:[#allocation2 + $0x1894] ss:$60 sps:$4 sm:$0xff]  }
 0x43a   :  { %7241 = vmatpush1.bf16.msra.mxu0 %v11928_v22  ;;  %10239 = vmatpush3.bf16.msra.mxu1 %v11932_v23  ;;  %v11983_v22 = vld [vmem:[#allocation2 + $0x1890] ss:$60 sps:$4 sm:$0xff]   ;;  %v1235_v23 = vsub.s32 4, %v12503_v43 }
 0x43b   :  { %7242 = vmatprep.subr.bf16.mxu0 %v11935_v25  ;;  %10240 = vmatprep.subr.bf16.mxu1 %v11936_v27  ;;  %v11990_v25 = vld [vmem:[#allocation2 + $0x190c] ss:$60 sps:$4 sm:$0xff]   ;;  %v11991_v27 = vld [vmem:[#allocation7 + $0x168] sm:$0xff]  }
 0x43e   :  { %7243 = vmatpush1.bf16.msra.mxu0 %v11933_v20  ;;  %10241 = vmatpush3.bf16.msra.mxu1 %v11937_v28  ;;  %v1247_v20 = vsub.s32 7, %v12503_v43  ;;  %v11988_v28 = vld [vmem:[#allocation2 + $0x1908] ss:$60 sps:$4 sm:$0xff]  }
 0x43f   :  { %7244 = vmatprep.subr.bf16.mxu0 %v11940_v9  ;;  %10242 = vmatprep.subr.bf16.mxu1 %v11941_v30  ;;  %v11992_v9 = vld [vmem:[#allocation7 + $0x128] sm:$0xff]   ;;  %v1236_v30 = vrot.slane %v12632_v11, %v1235_v23 }
 0x442   :  { %7245 = vmatpush1.bf16.msra.mxu0 %v11938_v31  ;;  %10243 = vmatpush3.bf16.msra.mxu1 %v11942_v33  ;;  %v11995_v31 = vld [vmem:[#allocation2 + $0x1984] ss:$60 sps:$4 sm:$0xff]  }
 0x443   :  { %7246 = vmatprep.subr.bf16.mxu0 %v11945_v35  ;;  %10244 = vmatprep.subr.bf16.mxu1 %v11946_v46  ;;  %v11996_v33 = vld [vmem:[#allocation7 + $0x170] sm:$0xff]  }
 0x446   :  { %7247 = vmatpush1.bf16.msra.mxu0 %v11943_v36  ;;  %10245 = vmatpush3.bf16.msra.mxu1 %v11947_v37  ;;  %v1248_v36 = vrot.slane %v12632_v11, %v1247_v20  ;;  %v12035_v20 = vld [vmem:[#allocation2 + $0x1d44] ss:$60 sps:$4 sm:$0xff]  }
 0x447   :  { %7248 = vmatprep.subr.bf16.mxu0 %v11950_v39  ;;  %10246 = vmatprep.subr.bf16.mxu1 %v11951_v49 }
 0x448   :  { %v10462_v58 = vadd.f32 %v12617_v57, %v1248_v36  ;;  %v12033_v36 = vld [vmem:[#allocation2 + $0x1d40] ss:$60 sps:$4 sm:$0xff]  }
 0x44a   :  { %7249 = vmatpush1.bf16.msra.mxu0 %v11948_v41  ;;  %10247 = vmatpush3.bf16.msra.mxu1 %v11952_v24  ;;  %v11993_v24 = vld [vmem:[#allocation2 + $0x1980] ss:$60 sps:$4 sm:$0xff]   ;;  %v7471_v2 = vmax.f32 %v10462_v58, 0.0  ;;  %v12043_v58 = vld [vmem:[#allocation7 + $0x240] sm:$0xff]  }
 0x44b   :  { %7250 = vmatprep.subr.bf16.mxu0 %v11955_v50  ;;  %10248 = vmatprep.subr.bf16.mxu1 %v11956_v51  ;;  %v10459_v50 = vadd.f32 %v12611_v55, %v1236_v30  ;;  %v12003_v55 = vld [vmem:[#allocation2 + $0x1a70] ss:$60 sps:$4 sm:$0xff]  }
 0x44c   :  { %v7486_v57 = vpack.c.bf16 %v7471_v2, %v7471_v2  ;;  %v12048_v2 = vld [vmem:[#allocation7 + $0x2c8] sm:$0xff]  }
 0x44d   :  { %v7468_v63 = vmax.f32 %v10459_v50, 0.0  ;;  %v12041_v50 = vld [vmem:[#allocation7 + $0x1f8] sm:$0xff]  }
 0x44e   :  { %7251 = vmatpush1.bf16.msra.mxu0 %v11953_v34  ;;  %10249 = vmatpush3.bf16.msra.mxu1 %v11957_v54  ;;  %v12000_v34 = vld [vmem:[#allocation2 + $0x19fc] ss:$60 sps:$4 sm:$0xff]   ;;  %v12001_v54 = vld [vmem:[#allocation7 + $0x178] sm:$0xff]  }
 0x44f   :  { %7252 = vmatprep.subr.bf16.mxu0 %v11960_v61  ;;  %10250 = vmatprep.subr.bf16.mxu1 %v11961_v62  ;;  %v11998_v61 = vld [vmem:[#allocation2 + $0x19f8] ss:$60 sps:$4 sm:$0xff]   ;;  %v12002_v62 = vld [vmem:[#allocation7 + $0x138] sm:$0xff]  }
 0x452   :  { %7253 = vmatpush1.bf16.msra.mxu0 %v11958_v0  ;;  %10251 = vmatpush3.bf16.msra.mxu1 %v11962_v1  ;;  %v12005_v0 = vld [vmem:[#allocation2 + $0x1a74] ss:$60 sps:$4 sm:$0xff]  }
 0x453   :  { %7263 = vmatprep.subr.bf16.mxu0 %v11965_v3  ;;  %10258 = vmatprep.subr.bf16.mxu1 %v11966_v4  ;;  %v12006_v1 = vld [vmem:[#allocation7 + $0x1c0] sm:$0xff]   ;;  %v7483_v4 = vpack.c.bf16 %v7468_v63, %v7468_v63 }
 0x454   :  { %v12007_v3 = vld [vmem:[#allocation7 + $0x180] sm:$0xff]  }
 0x455   :  { %8534 = vmatmul.mubr.bf16.vlgmr.msra.gmra.mrb[32].mxu1 %v7481_v7  ;;  %7255 = vmatmul.mubr.bf16.vlgmr.msra.gmra.mrb[12].mxu0 %v12559_v38  ;;  %v11978_v38 = vld [vmem:[#allocation2 + $0x1818] ss:$60 sps:$4 sm:$0xff]  }
 0x456   :  { %7264 = vmatpush1.bf16.msra.mxu0 %v11963_v6  ;;  %10259 = vmatpush3.bf16.msra.mxu1 %v11967_v29  ;;  %v12011_v6 = vld [vmem:[#allocation7 + $0x1c8] sm:$0xff]   ;;  %v12008_v29 = vld [vmem:[#allocation2 + $0x1ae8] ss:$60 sps:$4 sm:$0xff]   ;;  %v12045_v63 = vld [vmem:[#allocation7 + $0x200] sm:$0xff]  }
 0x457   :  { %8573 = vmatprep.mubr.bf16.mxu1 %v7484_v56  ;;  %7265 = vmatprep.subr.bf16.mxu0 %v11970_v8  ;;  %v12012_v7 = vld [vmem:[#allocation7 + $0x188] sm:$0xff]   ;;  %v12015_v8 = vld [vmem:[#allocation2 + $0x1b64] ss:$60 sps:$4 sm:$0xff]  }
 0x458   :  { %10260 = vmatprep.subr.bf16.mxu1 %v11971_v60  ;;  %7295 = vmatprep.mubr.bf16.mxu0 %v12561_v42  ;;  %v11987_v42 = vld [vmem:[#allocation7 + $0x120] sm:$0xff]   ;;  %v12016_v60 = vld [vmem:[#allocation7 + $0x1d0] sm:$0xff]  }
 0x459   :  { %v12013_v56 = vld [vmem:[#allocation2 + $0x1b60] ss:$60 sps:$4 sm:$0xff]  }
 0x45a   :  { %7266 = vmatpush1.bf16.msra.mxu0 %v11968_v12  ;;  %10261 = vmatpush3.bf16.msra.mxu1 %v11972_v13  ;;  %v12017_v12 = vld [vmem:[#allocation7 + $0x190] sm:$0xff]   ;;  %v12020_v13 = vld [vmem:[#allocation2 + $0x1bdc] ss:$60 sps:$4 sm:$0xff]  }
 0x45b   :  { %7267 = vmatprep.subr.bf16.mxu0 %v11975_v14  ;;  %10262 = vmatprep.subr.bf16.mxu1 %v11976_v15  ;;  %v12021_v14 = vld [vmem:[#allocation7 + $0x1d8] sm:$0xff]   ;;  %v12018_v15 = vld [vmem:[#allocation2 + $0x1bd8] ss:$60 sps:$4 sm:$0xff]  }
 0x45e   :  { %7268 = vmatpush1.bf16.msra.mxu0 %v11973_v17  ;;  %10263 = vmatpush3.bf16.msra.mxu1 %v11977_v18  ;;  %v12022_v17 = vld [vmem:[#allocation7 + $0x198] sm:$0xff]   ;;  %v12025_v18 = vld [vmem:[#allocation2 + $0x1c54] ss:$60 sps:$4 sm:$0xff]  }
 0x45f   :  { %7269 = vmatprep.subr.bf16.mxu0 %v11980_v45  ;;  %10264 = vmatprep.subr.bf16.mxu1 %v11981_v16  ;;  %v12026_v45 = vld [vmem:[#allocation7 + $0x1e0] sm:$0xff]  }
 0x460   :  { %v12023_v16 = vld [vmem:[#allocation2 + $0x1c50] ss:$60 sps:$4 sm:$0xff]  }
 0x462   :  { %7270 = vmatpush1.bf16.msra.mxu0 %v11978_v38  ;;  %10265 = vmatpush3.bf16.msra.mxu1 %v11982_v19  ;;  %v12027_v38 = vld [vmem:[#allocation7 + $0x1a0] sm:$0xff]   ;;  %v1243_v19 = vsub.s32 6, %v12503_v43  ;;  %v12100_v43 = vld [vmem:[#allocation10 + $0x8] sm:$0xff]  }
 0x463   :  { %7271 = vmatprep.subr.bf16.mxu0 %v11985_v21  ;;  %10266 = vmatprep.subr.bf16.mxu1 %v11986_v47  ;;  %v12030_v21 = vld [vmem:[#allocation2 + $0x1ccc] ss:$60 sps:$4 sm:$0xff]   ;;  %v12031_v47 = vld [vmem:[#allocation7 + $0x1e8] sm:$0xff]  }
 0x466   :  { %7272 = vmatpush1.bf16.msra.mxu0 %v11983_v22  ;;  %10267 = vmatpush3.bf16.msra.mxu1 %v11987_v42  ;;  %v12680_v22 = vld [vmem:[#allocation5 + $0x8] sm:$0xff] }
 0x467   :  { %7273 = vmatprep.subr.bf16.mxu0 %v11990_v25  ;;  %10268 = vmatprep.subr.bf16.mxu1 %v11991_v27  ;;  %v12028_v42 = vld [vmem:[#allocation2 + $0x1cc8] ss:$60 sps:$4 sm:$0xff]   ;;  %v12032_v25 = vld [vmem:[#allocation7 + $0x1a8] sm:$0xff]   ;;  %v1244_v27 = vrot.slane %v12632_v11, %v1243_v19 }
 0x468   :  { %v12668_v35 = vpop.f32.mrb[8].mxu0  ;;  %v12670_v46 = vpop.f32.mrb[8].mxu1 }
 0x469   :  { %v12673_v37 = vpop.f32.mrb[9].mxu0  ;;  %v12675_v39 = vpop.f32.mrb[9].mxu1 }
 0x46a   :  { %v6973_v49 = vpop.f32.mrb[10].mxu0  ;;  %v7137_v41 = vpop.f32.mrb[10].mxu1  ;;  %7274 = vmatpush1.bf16.msra.mxu0 %v11988_v28  ;;  %10269 = vmatpush3.bf16.msra.mxu1 %v11992_v9  ;;  %v12036_v28 = vld [vmem:[#allocation7 + $0x1f0] sm:$0xff]   ;;  %v1256_v9 = vrot.slane %v12680_v22, %v1223_v10 }
 0x46b   :  { %v6974_v51 = vpop.f32.mrb[11].mxu0  ;;  %v7138_v52 = vpop.f32.mrb[11].mxu1  ;;  %7275 = vmatprep.subr.bf16.mxu0 %v11995_v31  ;;  %10270 = vmatprep.subr.bf16.mxu1 %v11996_v33  ;;  %v1264_v31 = vrot.slane %v12680_v22, %v1231_v59  ;;  %v12037_v49 = vld [vmem:[#allocation7 + $0x1b0] sm:$0xff]   ;;  %v12038_v59 = vld [vmem:[#allocation2 + $0x1db8] ss:$60 sps:$4 sm:$0xff]  }
 0x46c   :  { %v10464_v51 = vadd.f32 %v12673_v37, %v1256_v9  ;;  %v12046_v37 = vld [vmem:[#allocation7 + $0x280] sm:$0xff]  }
 0x46d   :  { %v10466_v52 = vadd.f32 %v12675_v39, %v1264_v31  ;;  %v12047_v39 = vld [vmem:[#allocation7 + $0x248] sm:$0xff]   ;;  %v12071_v31 = vld [vmem:[#allocation7 + $0x278] sm:$0xff]  }
 0x46e   :  { %7276 = vmatpush1.bf16.msra.mxu0 %v11993_v24  ;;  %10271 = vmatpush3.bf16.msra.mxu1 %v11997_v44  ;;  %v10461_v24 = vadd.f32 %v12613_v32, %v1244_v27  ;;  %v12040_v44 = vld [vmem:[#allocation2 + $0x1dbc] ss:$60 sps:$4 sm:$0xff]  }
 0x46f   :  { %7277 = vmatprep.subr.bf16.mxu0 %v12000_v34  ;;  %10272 = vmatprep.subr.bf16.mxu1 %v12001_v54  ;;  %v12042_v34 = vld [vmem:[#allocation7 + $0x1b8] sm:$0xff]   ;;  %v7475_v32 = vmax.f32 %v10466_v52, 0.0  ;;  %v12077_v52 = vld [vmem:[#allocation7 + $0x390] sm:$0xff]  }
 0x470   :  { %v7470_v54 = vmax.f32 %v10461_v24, 0.0  ;;  %v12074_v24 = vld [vmem:[#allocation7 + $0x2b8] sm:$0xff]  }
 0x472   :  { %7278 = vmatpush1.bf16.msra.mxu0 %v11998_v61  ;;  %10273 = vmatpush3.bf16.msra.mxu1 %v12002_v62  ;;  %v12044_v61 = vld [vmem:[#allocation7 + $0x2c0] sm:$0xff]   ;;  %v7473_v62 = vmax.f32 %v10464_v51, 0.0  ;;  %v12338_v51 = vmov 0.0  }
 0x473   :  { %7279 = vmatprep.subr.bf16.mxu0 %v12005_v0  ;;  %10280 = vmatprep.subr.bf16.mxu1 %v12006_v1  ;;  %v7485_v0 = vpack.c.bf16 %v7470_v54, %v7470_v54  ;;  %v12080_v54 = vld [vmem:[#allocation7 + $0x3a8] sm:$0xff]  }
 0x474   :  { %v7488_v1 = vpack.c.bf16 %v7473_v62, %v7473_v62 }
 0x475   :  { %8574 = vmatmul.mubr.bf16.vlgmr.msra.gmra.mrb[36].mxu1 %v7483_v4  ;;  %v12050_v4 = vld [vmem:[#allocation7 + $0x288] sm:$0xff]  }
 0x476   :  { %7280 = vmatpush1.bf16.msra.mxu0 %v12003_v55  ;;  %10281 = vmatpush3.bf16.msra.mxu1 %v12007_v3  ;;  %v7490_v55 = vpack.c.bf16 %v7475_v32, %v7475_v32  ;;  %v12049_v3 = vld [vmem:[#allocation7 + $0x208] sm:$0xff]  }
 0x477   :  { %8613 = vmatprep.mubr.bf16.mxu1 %v7486_v57  ;;  %7281 = vmatprep.subr.bf16.mxu0 %v12010_v5  ;;  %v12051_v5 = vld [vmem:[#allocation7 + $0x250] sm:$0xff]  }
 0x478   :  { %10282 = vmatprep.subr.bf16.mxu1 %v12011_v6  ;;  %v12052_v6 = vld [vmem:[#allocation7 + $0x2d0] sm:$0xff]  }
 0x479   :  { %v12053_v57 = vld [vmem:[#allocation7 + $0x210] sm:$0xff]  }
 0x47a   :  { %7282 = vmatpush1.bf16.msra.mxu0 %v12008_v29  ;;  %10283 = vmatpush3.bf16.msra.mxu1 %v12012_v7  ;;  %v12054_v29 = vld [vmem:[#allocation7 + $0x290] sm:$0xff]   ;;  %v12055_v7 = vld [vmem:[#allocation7 + $0x258] sm:$0xff]  }
 0x47b   :  { %7283 = vmatprep.subr.bf16.mxu0 %v12015_v8  ;;  %10284 = vmatprep.subr.bf16.mxu1 %v12016_v60  ;;  %v12056_v8 = vld [vmem:[#allocation7 + $0x2d8] sm:$0xff]  }
 0x47c   :  { %v12058_v60 = vld [vmem:[#allocation7 + $0x298] sm:$0xff]  }
 0x47e   :  { %7284 = vmatpush1.bf16.msra.mxu0 %v12013_v56  ;;  %10285 = vmatpush3.bf16.msra.mxu1 %v12017_v12  ;;  %v12059_v56 = vld [vmem:[#allocation7 + $0x260] sm:$0xff]  }
 0x47f   :  { %7285 = vmatprep.subr.bf16.mxu0 %v12020_v13  ;;  %10286 = vmatprep.subr.bf16.mxu1 %v12021_v14  ;;  %v12060_v12 = vld [vmem:[#allocation7 + $0x2e0] sm:$0xff]  }
 0x480   :  { %v12061_v13 = vld [vmem:[#allocation7 + $0x220] sm:$0xff]  }
 0x481   :  { %v12062_v14 = vld [vmem:[#allocation7 + $0x2a0] sm:$0xff]  }
 0x482   :  { %7286 = vmatpush1.bf16.msra.mxu0 %v12018_v15  ;;  %10287 = vmatpush3.bf16.msra.mxu1 %v12022_v17  ;;  %v12063_v15 = vld [vmem:[#allocation7 + $0x268] sm:$0xff]  }
 0x483   :  { %7287 = vmatprep.subr.bf16.mxu0 %v12025_v18  ;;  %10288 = vmatprep.subr.bf16.mxu1 %v12026_v45  ;;  %v12064_v17 = vld [vmem:[#allocation7 + $0x2e8] sm:$0xff]   ;;  %v1276_v18 = vrot.slane %v12680_v22, %v1243_v19 }
 0x484   :  { %v12065_v45 = vld [vmem:[#allocation7 + $0x228] sm:$0xff]  }
 0x486   :  { %7288 = vmatpush1.bf16.msra.mxu0 %v12023_v16  ;;  %10289 = vmatpush3.bf16.msra.mxu1 %v12027_v38  ;;  %v1252_v16 = vrot.slane %v12680_v22, %v1219_v53  ;;  %v12066_v38 = vld [vmem:[#allocation7 + $0x2a8] sm:$0xff]  }
 0x487   :  { %7289 = vmatprep.subr.bf16.mxu0 %v12030_v21  ;;  %10290 = vmatprep.subr.bf16.mxu1 %v12031_v47  ;;  %v12067_v21 = vld [vmem:[#allocation7 + $0x270] sm:$0xff]   ;;  %v1260_v47 = vrot.slane %v12680_v22, %v1227_v26  ;;  %v12072_v26 = vld [vmem:[#allocation7 + $0x2f8] sm:$0xff]  }
 0x488   :  { %v10142_v30 = vpop.f32.mrb[12].mxu1  ;;  %v10463_v53 = vadd.f32 %v12668_v35, %v1252_v16  ;;  %v12098_v16 = vld [vmem:[#allocation7 + $0x338] sm:$0xff]  }
 0x489   :  { %v10143_v33 = vpop.f32.mrb[13].mxu1 }
 0x48a   :  { %7290 = vmatpush1.bf16.msra.mxu0 %v12028_v42  ;;  %10291 = vmatpush3.bf16.msra.mxu1 %v12032_v25  ;;  %v12691_v41 = vadd.f32 %v10143_v33, %v10142_v30  ;;  %v10145_v11 = vpop.f32.mrb[14].mxu1  ;;  %v12068_v42 = vld [vmem:[#allocation7 + $0x2f0] sm:$0xff]  }
 0x48b   :  { %7291 = vmatprep.subr.bf16.mxu0 %v12035_v20  ;;  %10292 = vmatprep.subr.bf16.mxu1 %v12036_v28  ;;  %v10146_v10 = vpop.f32.mrb[15].mxu1  ;;  %v12069_v20 = vld [vmem:[#allocation7 + $0x230] sm:$0xff]   ;;  %v7472_v11 = vmax.f32 %v10463_v53, 0.0 }
 0x48c   :  { %v7339_v25 = vadd.f32 %v12691_v41, %v1276_v18  ;;  %v12070_v30 = vld [vmem:[#allocation7 + $0x2b0] sm:$0xff]   ;;  %v12073_v41 = vld [vmem:[#allocation7 + $0x238] sm:$0xff]  }
 0x48d   :  { %v7487_v35 = vpack.c.bf16 %v7472_v11, %v7472_v11 }
 0x48e   :  { %7292 = vmatpush1.bf16.msra.mxu0 %v12033_v36  ;;  %10293 = vmatpush3.bf16.msra.mxu1 %v12037_v49  ;;  %v10465_v36 = vadd.f32 %v12670_v46, %v1260_v47  ;;  %v12076_v46 = vld [vmem:[#allocation7 + $0x388] sm:$0xff]  }
 0x48f   :  { %7293 = vmatprep.subr.bf16.mxu0 %v12040_v44  ;;  %10294 = vmatprep.subr.bf16.mxu1 %v12041_v50  ;;  %v12075_v50 = vld [vmem:[#allocation7 + $0x380] sm:$0xff]  }
 0x490   :  { %v7474_v44 = vmax.f32 %v10465_v36, 0.0 }
 0x492   :  { %7294 = vmatpush1.bf16.msra.mxu0 %v12038_v59  ;;  %10295 = vmatpush3.bf16.msra.mxu1 %v12042_v34  ;;  %v7489_v10 = vpack.c.bf16 %v7474_v44, %v7474_v44  ;;  %v12078_v59 = vld [vmem:[#allocation7 + $0x398] sm:$0xff]   ;;  %v12079_v34 = vld [vmem:[#allocation7 + $0x3a0] sm:$0xff]  }
 0x493   :  { %10302 = vmatprep.subr.bf16.mxu0 %v12043_v58  ;;  %10324 = vmatprep.subr.bf16.mxu1 %v12044_v61 }
 0x495   :  { %7296 = vmatmul.mubr.bf16.vlgmr.msra.gmra.mrb[12].mxu0 %v12569_v48  ;;  %8614 = vmatmul.mubr.bf16.vlgmr.msra.gmra.mrb[40].mxu1 %v7485_v0  ;;  %v12057_v48 = vld [vmem:[#allocation7 + $0x218] sm:$0xff]   ;;  %v12081_v0 = vld [vmem:[#allocation7 + $0x3b0] sm:$0xff]  }
 0x496   :  { %10303 = vmatpush3.bf16.msra.mxu0 %v12045_v63  ;;  %8653 = vmatprep.mubr.bf16.mxu0 %v7488_v1  ;;  %v12083_v1 = vld [vmem:[#allocation7 + $0x340] sm:$0xff]  }
 0x497   :  { %10325 = vmatpush3.bf16.msra.mxu1 %v12046_v37  ;;  %8693 = vmatprep.mubr.bf16.mxu1 %v7490_v55  ;;  %v12082_v55 = vld [vmem:[#allocation7 + $0x3b8] sm:$0xff]  }
 0x498   :  { %10304 = vmatprep.subr.bf16.mxu0 %v12047_v39  ;;  %10326 = vmatprep.subr.bf16.mxu1 %v12048_v2  ;;  %v12084_v39 = vld [vmem:[#allocation7 + $0x300] sm:$0xff]   ;;  %v12085_v2 = vld [vmem:[#allocation7 + $0x348] sm:$0xff]  }
 0x49a   :  { %10305 = vmatpush3.bf16.msra.mxu0 %v12049_v3  ;;  %v12086_v3 = vld [vmem:[#allocation7 + $0x308] sm:$0xff]  }
 0x49b   :  { %10327 = vmatpush3.bf16.msra.mxu1 %v12050_v4  ;;  %10306 = vmatprep.subr.bf16.mxu0 %v12051_v5  ;;  %v12087_v4 = vld [vmem:[#allocation7 + $0x350] sm:$0xff]  }
 0x49c   :  { %10328 = vmatprep.subr.bf16.mxu1 %v12052_v6  ;;  %v12088_v5 = vld [vmem:[#allocation7 + $0x310] sm:$0xff]   ;;  %v12089_v6 = vld [vmem:[#allocation7 + $0x358] sm:$0xff]  }
 0x49e   :  { %10307 = vmatpush3.bf16.msra.mxu0 %v12053_v57  ;;  %v12090_v57 = vld [vmem:[#allocation7 + $0x318] sm:$0xff]  }
 0x49f   :  { %10329 = vmatpush3.bf16.msra.mxu1 %v12054_v29  ;;  %10308 = vmatprep.subr.bf16.mxu0 %v12055_v7  ;;  %v12091_v29 = vld [vmem:[#allocation7 + $0x360] sm:$0xff]  }
 0x4a0   :  { %10330 = vmatprep.subr.bf16.mxu1 %v12056_v8  ;;  %v12092_v7 = vld [vmem:[#allocation7 + $0x320] sm:$0xff]   ;;  %v12093_v8 = vld [vmem:[#allocation7 + $0x368] sm:$0xff]  }
 0x4a2   :  { %10309 = vmatpush3.bf16.msra.mxu0 %v12057_v48  ;;  %v12094_v48 = vld [vmem:[#allocation7 + $0x328] sm:$0xff]  }
 0x4a3   :  { %10331 = vmatpush3.bf16.msra.mxu1 %v12058_v60  ;;  %10310 = vmatprep.subr.bf16.mxu0 %v12059_v56  ;;  %v12095_v56 = vld [vmem:[#allocation7 + $0x370] sm:$0xff]  }
 0x4a4   :  { %10332 = vmatprep.subr.bf16.mxu1 %v12060_v12 }
 0x4a6   :  { %10311 = vmatpush3.bf16.msra.mxu0 %v12061_v13  ;;  %v12096_v13 = vld [vmem:[#allocation7 + $0x330] sm:$0xff]  }
 0x4a7   :  { %10333 = vmatpush3.bf16.msra.mxu1 %v12062_v14  ;;  %10312 = vmatprep.subr.bf16.mxu0 %v12063_v15 }
 0x4a8   :  { %10334 = vmatprep.subr.bf16.mxu1 %v12064_v17  ;;  %v10164_v27 = vpop.f32.mrb[16].mxu1 }
 0x4a9   :  { %v10165_v19 = vpop.f32.mrb[17].mxu1 }
 0x4aa   :  { %10313 = vmatpush3.bf16.msra.mxu0 %v12065_v45  ;;  %v10166_v28 = vadd.f32 %v10165_v19, %v10164_v27  ;;  %v10167_v9 = vpop.f32.mrb[18].mxu1  ;;  %v12097_v45 = vld [vmem:[#allocation7 + $0x378] sm:$0xff]  }
 0x4ab   :  { %10335 = vmatpush3.bf16.msra.mxu1 %v12066_v38  ;;  %10314 = vmatprep.subr.bf16.mxu0 %v12067_v21  ;;  %v10168_v33 = vpop.f32.mrb[19].mxu1 }
 0x4ac   :  { %10336 = vmatprep.subr.bf16.mxu1 %v12068_v42  ;;  %v7379_v49 = vadd.f32 %v10166_v28, %v7339_v25 }
 0x4ae   :  { %10315 = vmatpush3.bf16.msra.mxu0 %v12069_v20  ;;  %v9987_v20 = vld [vmem:[#allocation8] ss:$0 sm:$0xff] }
 0x4af   :  { %10337 = vmatpush3.bf16.msra.mxu1 %v12070_v30  ;;  %10316 = vmatprep.subr.bf16.mxu0 %v12071_v31 }
 0x4b0   :  { %10338 = vmatprep.subr.bf16.mxu1 %v12072_v26 }
 0x4b2   :  { %10317 = vmatpush3.bf16.msra.mxu0 %v12073_v41 }
 0x4b3   :  { %10339 = vmatpush3.bf16.msra.mxu1 %v12074_v24  ;;  %10346 = vmatprep.subr.bf16.mxu0 %v12083_v1 }
 0x4b4   :  { %10395 = vmatprep.subr.bf16.mxu1 %v12338_v51 }
 0x4b5   :  { %8654 = vmatmul.mubr.bf16.vlgmr.msra.gmra.mrb[16].mxu0 %v7487_v35  ;;  %v1268_v35 = vrot.slane %v12680_v22, %v1235_v23  ;;  %v12099_v23 = vld [vmem:[#allocation10] sm:$0xff]  }
 0x4b6   :  { %8694 = vmatmul.mubr.bf16.vlgmr.msra.gmra.mrb[44].mxu1 %v7489_v10  ;;  %10347 = vmatpush3.bf16.msra.mxu0 %v12084_v39 }
 0x4b7   :  { %10396 = vmatpush3.bf16.msra.mxu1 %v12075_v50  ;;  %10411 = vmatprep.mubr.msk.bf16.mxu1 %vm12339_vm0, %v12338_v51  ;;  %v1272_v50 = vrot.slane %v12680_v22, %v1239_v40  ;;  %v12101_v40 = vld [vmem:[#allocation10 + $0x10] sm:$0xff]   ;;  %v12102_v22 = vld [vmem:[#allocation10 + $0x18] sm:$0xff]  }
 0x4b8   :  { %10397 = vmatprep.subr.bf16.mxu1 %v12338_v51  ;;  %10348 = vmatprep.subr.bf16.mxu0 %v12085_v2 }
 0x4ba   :  { %10349 = vmatpush3.bf16.msra.mxu0 %v12086_v3 }
 0x4bb   :  { %10398 = vmatpush3.bf16.msra.mxu1 %v12076_v46  ;;  %10350 = vmatprep.subr.bf16.mxu0 %v12087_v4 }
 0x4bc   :  { %10399 = vmatprep.subr.bf16.mxu1 %v12338_v51 }
 0x4be   :  { %10351 = vmatpush3.bf16.msra.mxu0 %v12088_v5 }
 0x4bf   :  { %10400 = vmatpush3.bf16.msra.mxu1 %v12077_v52  ;;  %10352 = vmatprep.subr.bf16.mxu0 %v12089_v6 }
 0x4c0   :  { %10401 = vmatprep.subr.bf16.mxu1 %v12338_v51 }
 0x4c2   :  { %10353 = vmatpush3.bf16.msra.mxu0 %v12090_v57 }
 0x4c3   :  { %10402 = vmatpush3.bf16.msra.mxu1 %v12078_v59  ;;  %10354 = vmatprep.subr.bf16.mxu0 %v12091_v29 }
 0x4c4   :  { %10403 = vmatprep.subr.bf16.mxu1 %v12338_v51 }
 0x4c6   :  { %10355 = vmatpush3.bf16.msra.mxu0 %v12092_v7 }
 0x4c7   :  { %10404 = vmatpush3.bf16.msra.mxu1 %v12079_v34  ;;  %10356 = vmatprep.subr.bf16.mxu0 %v12093_v8 }
 0x4c8   :  { %v10186_v58 = vpop.f32.mrb[20].mxu1  ;;  %10405 = vmatprep.subr.bf16.mxu1 %v12338_v51 }
 0x4c9   :  { %v10187_v61 = vpop.f32.mrb[21].mxu1 }
 0x4ca   :  { %v10188_v62 = vadd.f32 %v10187_v61, %v10186_v58  ;;  %v10189_v32 = vpop.f32.mrb[22].mxu1  ;;  %10357 = vmatpush3.bf16.msra.mxu0 %v12094_v48 }
 0x4cb   :  { %v10190_v63 = vpop.f32.mrb[23].mxu1  ;;  %10406 = vmatpush3.bf16.msra.mxu1 %v12080_v54  ;;  %10358 = vmatprep.subr.bf16.mxu0 %v12095_v56 }
 0x4cc   :  { %v7419_v37 = vadd.f32 %v10188_v62, %v7379_v49  ;;  %10407 = vmatprep.subr.bf16.mxu1 %v12338_v51 }
 0x4ce   :  { %10359 = vmatpush3.bf16.msra.mxu0 %v12096_v13  ;;  %v12104_v13 = vld [vmem:[#allocation10 + $0x28] sm:$0xff]  }
 0x4cf   :  { %10408 = vmatpush3.bf16.msra.mxu1 %v12081_v0  ;;  %10360 = vmatprep.subr.bf16.mxu0 %v12097_v45  ;;  %v12105_v45 = vld [vmem:[#allocation10 + $0x30] sm:$0xff]  }
 0x4d0   :  { %10409 = vmatprep.subr.bf16.mxu1 %v12338_v51 }
 0x4d2   :  { %10361 = vmatpush3.bf16.msra.mxu0 %v12098_v16  ;;  %v12106_v16 = vld [vmem:[#allocation10 + $0x38] sm:$0xff]  }
 0x4d3   :  { %10410 = vmatpush3.bf16.msra.mxu1 %v12082_v55  ;;  %10415 = vmatprep.subr.bf16.mxu0 %v12338_v51  ;;  %v12103_v55 = vld [vmem:[#allocation10 + $0x20] sm:$0xff]  }
 0x4d4   :  { %10435 = vmatprep.subr.bf16.mxu1 %v12338_v51 }
 0x4e8   :  { %v10208_v60 = vpop.f32.mrb[24].mxu1 }
 0x4e9   :  { %v10209_v12 = vpop.f32.mrb[25].mxu1 }
 0x4ea   :  { %v10210_v14 = vadd.f32 %v10209_v12, %v10208_v60  ;;  %v10211_v15 = vpop.f32.mrb[26].mxu1 }
 0x4eb   :  { %v10212_v17 = vpop.f32.mrb[27].mxu1 }
 0x4ec   :  { %v7459_v18 = vadd.f32 %v10210_v14, %v7419_v37 }
 0x4ee   :  { %v7478_v38 = vmax.f32 %v7459_v18, 0.0 }
 0x4f0   :  { %v7493_v21 = vpack.c.bf16 %v7478_v38, %v7478_v38  ;;  %v12107_v38 = vld [vmem:[#allocation13] sm:$0xff]  }
 0x4f2   :  { %10412 = vmatmul.mubr.bf16.vlgmr.msra.gmra.mrb[48].mxu1 %v7493_v21  ;;  %v12108_v21 = vld [vmem:[#allocation13 + $0x8] sm:$0xff]  }
 0x4f3   :  { %10451 = vmatprep.mubr.msk.bf16.mxu1 %vm12339_vm0, %v12338_v51  ;;  %10436 = vmatpush3.bf16.msra.mxu1 %v12107_v38 }
 0x4f4   :  { %10437 = vmatprep.subr.bf16.mxu1 %v12338_v51 }
 0x4f7   :  { %10438 = vmatpush3.bf16.msra.mxu1 %v12108_v21 }
 0x4f8   :  { %10439 = vmatprep.subr.bf16.mxu1 %v12338_v51 }
 0x508   :  { %v10230_v47 = vpop.f32.mrb[28].mxu1 }
 0x509   :  { %v10231_v42 = vpop.f32.mrb[29].mxu1 }
 0x50a   :  { %v10232_v25 = vadd.f32 %v10231_v42, %v10230_v47  ;;  %v10233_v27 = vpop.f32.mrb[30].mxu1  ;;  %v12109_v47 = vld [vmem:[#allocation13 + $0x10] sm:$0xff]   ;;  %v12110_v42 = vld [vmem:[#allocation13 + $0x18] sm:$0xff]  }
 0x50b   :  { %v10234_v19 = vpop.f32.mrb[31].mxu1  ;;  %10440 = vmatpush3.bf16.msra.mxu1 %v12109_v47  ;;  %v12112_v27 = vld [vmem:[#allocation13 + $0x28] sm:$0xff]  }
 0x50c   :  { %v8496_v53 = vadd.f32 %v10232_v25, %v9987_v20  ;;  %10441 = vmatprep.subr.bf16.mxu1 %v12338_v51  ;;  %v12111_v25 = vld [vmem:[#allocation13 + $0x20] sm:$0xff]  }
 0x50f   :  { %10442 = vmatpush3.bf16.msra.mxu1 %v12110_v42 }
 0x510   :  { %10443 = vmatprep.subr.bf16.mxu1 %v12338_v51 }
 0x513   :  { %10444 = vmatpush3.bf16.msra.mxu1 %v12111_v25 }
 0x514   :  { %10445 = vmatprep.subr.bf16.mxu1 %v12338_v51 }
 0x517   :  { %10446 = vmatpush3.bf16.msra.mxu1 %v12112_v27 }
 0x518   :  { %10447 = vmatprep.subr.bf16.mxu1 %v12338_v51 }
 0x528   :  { %v10252_v28 = vpop.f32.mrb[32].mxu1 }
 0x529   :  { %v10253_v9 = vpop.f32.mrb[33].mxu1 }
 0x52a   :  { %v10254_v30 = vadd.f32 %v10253_v9, %v10252_v28  ;;  %v10255_v31 = vpop.f32.mrb[34].mxu1 }
 0x52b   :  { %v10256_v33 = vpop.f32.mrb[35].mxu1 }
 0x52c   :  { %v8536_v36 = vadd.f32 %v10254_v30, %v8496_v53 }
 0x548   :  { %v10274_v26 = vpop.f32.mrb[36].mxu1 }
 0x549   :  { %v10275_v49 = vpop.f32.mrb[37].mxu1 }
 0x54a   :  { %v10276_v41 = vadd.f32 %v10275_v49, %v10274_v26  ;;  %v10277_v11 = vpop.f32.mrb[38].mxu1  ;;  %v12113_v26 = vld [vmem:[#allocation13 + $0x30] sm:$0xff]   ;;  %v12114_v49 = vld [vmem:[#allocation13 + $0x38] sm:$0xff]  }
 0x54b   :  { %v10278_v24 = vpop.f32.mrb[39].mxu1  ;;  %10448 = vmatpush3.bf16.msra.mxu1 %v12113_v26 }
 0x54c   :  { %v8576_v44 = vadd.f32 %v10276_v41, %v8536_v36  ;;  %10449 = vmatprep.subr.bf16.mxu1 %v12338_v51  ;;  %v10108_v41 = vld [vmem:[#allocation11] ss:$0 sm:$0xff] }
 0x54f   :  { %10450 = vmatpush3.bf16.msra.mxu1 %v12114_v49 }
 0x568   :  { %v7297_v10 = vpop.f32.mrb[12].mxu0  ;;  %v10296_v46 = vpop.f32.mrb[40].mxu1 }
 0x569   :  { %v10467_v52 = vadd.f32 %v7297_v10, %v1268_v35  ;;  %v7299_v59 = vpop.f32.mrb[13].mxu0  ;;  %v10297_v34 = vpop.f32.mrb[41].mxu1 }
 0x56a   :  { %v10468_v54 = vadd.f32 %v7299_v59, %v1272_v50  ;;  %v10298_v58 = vadd.f32 %v10297_v34, %v10296_v46  ;;  %v7301_v61 = vpop.f32.mrb[14].mxu0  ;;  %v10299_v62 = vpop.f32.mrb[42].mxu1 }
 0x56b   :  { %v7476_v32 = vmax.f32 %v10467_v52, 0.0  ;;  %v7302_v63 = vpop.f32.mrb[15].mxu0  ;;  %v10300_v0 = vpop.f32.mrb[43].mxu1  ;;  %v10117_v52 = vld [vmem:[#allocation14] ss:$0 sm:$0xff] }
 0x56c   :  { %v7477_v37 = vmax.f32 %v10468_v54, 0.0  ;;  %v8616_v1 = vadd.f32 %v10298_v58, %v8576_v44 }
 0x56d   :  { %v7491_v2 = vpack.c.bf16 %v7476_v32, %v7476_v32 }
 0x56e   :  { %v7492_v39 = vpack.c.bf16 %v7477_v37, %v7477_v37 }
 0x570   :  { %8733 = vmatprep.mubr.bf16.mxu0 %v7492_v39 }
 0x571   :  { %8734 = vmatmul.mubr.bf16.vlgmr.msra.gmra.mrb[20].mxu0 %v7491_v2 }
 0x572   :  { %10416 = vmatpush3.bf16.msra.mxu0 %v12099_v23  ;;  %10431 = vmatprep.mubr.msk.bf16.mxu0 %vm12339_vm0, %v12338_v51 }
 0x573   :  { %10417 = vmatprep.subr.bf16.mxu0 %v12338_v51 }
 0x576   :  { %10418 = vmatpush3.bf16.msra.mxu0 %v12100_v43 }
 0x577   :  { %10419 = vmatprep.subr.bf16.mxu0 %v12338_v51 }
 0x57a   :  { %10420 = vmatpush3.bf16.msra.mxu0 %v12101_v40 }
 0x57b   :  { %10421 = vmatprep.subr.bf16.mxu0 %v12338_v51 }
 0x57e   :  { %10422 = vmatpush3.bf16.msra.mxu0 %v12102_v22 }
 0x57f   :  { %10423 = vmatprep.subr.bf16.mxu0 %v12338_v51 }
 0x582   :  { %10424 = vmatpush3.bf16.msra.mxu0 %v12103_v55 }
 0x583   :  { %10425 = vmatprep.subr.bf16.mxu0 %v12338_v51 }
 0x586   :  { %10426 = vmatpush3.bf16.msra.mxu0 %v12104_v13 }
 0x587   :  { %10427 = vmatprep.subr.bf16.mxu0 %v12338_v51 }
 0x588   :  { %v10318_v3 = vpop.f32.mrb[16].mxu0 }
 0x589   :  { %v10340_v4 = vpop.f32.mrb[44].mxu1  ;;  %v10319_v5 = vpop.f32.mrb[17].mxu0 }
 0x58a   :  { %v10320_v6 = vadd.f32 %v10319_v5, %v10318_v3  ;;  %v10341_v57 = vpop.f32.mrb[45].mxu1  ;;  %v10321_v29 = vpop.f32.mrb[18].mxu0  ;;  %10428 = vmatpush3.bf16.msra.mxu0 %v12105_v45 }
 0x58b   :  { %v10342_v7 = vadd.f32 %v10341_v57, %v10340_v4  ;;  %v10343_v8 = vpop.f32.mrb[46].mxu1  ;;  %v10322_v48 = vpop.f32.mrb[19].mxu0  ;;  %10429 = vmatprep.subr.bf16.mxu0 %v12338_v51 }
 0x58c   :  { %v8656_v60 = vadd.f32 %v10320_v6, %v8616_v1  ;;  %v10344_v56 = vpop.f32.mrb[47].mxu1 }
 0x58e   :  { %v8696_v12 = vadd.f32 %v10342_v7, %v8656_v60  ;;  %10430 = vmatpush3.bf16.msra.mxu0 %v12106_v16 }
 0x5c5   :  { %v8775_v14 = vpop.f32.mrb[48].mxu1 }
 0x5c6   :  { %v10413_v15 = vpop.f32.mrb[49].mxu1 }
 0x5c7   :  { %v8778_v17 = vpop.f32.mrb[50].mxu1 }
 0x5c8   :  { %v10414_v18 = vpop.f32.mrb[51].mxu1 }
 0x644   :  { %v10362_v19 = vpop.f32.mrb[20].mxu0 }
 0x645   :  { %v10363_v20 = vpop.f32.mrb[21].mxu0 }
 0x646   :  { %v10364_v28 = vadd.f32 %v10363_v20, %v10362_v19  ;;  %v10365_v9 = vpop.f32.mrb[22].mxu0 }
 0x647   :  { %v10366_v53 = vpop.f32.mrb[23].mxu0 }
 0x648   :  { %v8736_v30 = vadd.f32 %v10364_v28, %v8696_v12 }
 0x64a   :  { %v8776_v31 = vadd.f32 %v8775_v14, %v8736_v30 }
 0x64c   :  { %v8781_v33 = vmax.f32 %v8776_v31, 0.0 }
 0x64e   :  { %v8782_v36 = vpack.c.bf16 %v8781_v33, %v8781_v33 }
 0x650   :  { %10432 = vmatmul.mubr.bf16.vlgmr.msra.gmra.mrb[24].mxu0 %v8782_v36 }
 0x723   :  { %v8888_v11 = vpop.f32.mrb[24].mxu0 }
 0x724   :  { %v8889_v24 = vadd.f32 %v10108_v41, %v8888_v11  ;;  %v10433_v44 = vpop.f32.mrb[25].mxu0 }
 0x725   :  { %v8891_v35 = vpop.f32.mrb[26].mxu0 }
 0x726   :  { %v8894_v50 = vmax.f32 %v8889_v24, 0.0  ;;  %v10434_v10 = vpop.f32.mrb[27].mxu0 }
 0x728   :  { %v8895_v46 = vpack.c.bf16 %v8894_v50, %v8894_v50 }
 0x72a   :  { %10452 = vmatmul.mubr.bf16.vlgmr.msra.gmra.mrb[52].mxu1 %v8895_v46 }
 0x7fd   :  { %v9001_v59 = vpop.f32.mrb[52].mxu1 }
 0x7fe   :  { %v9002_v34 = vadd.f32 %v10117_v52, %v9001_v59  ;;  %v10453_v54 = vpop.f32.mrb[53].mxu1 }
 0x7ff   :  { %v9004_v58 = vpop.f32.mrb[54].mxu1 }
 0x800   :  { %9007 = vst [vmem:[#allocation16] sm:$0x3] %v9002_v34  ;;  %v10454_v51 = vpop.f32.mrb[55].mxu1 }
 0x801   :  { %12302 = shalt.err (!%p12299_p12)
}
 0x802   :  { %s12303_s22 = scalar_lea.hbm %s12766_s9, 32 }
 0x803   :  { %p12304_p13 = scmp.ne.s32.totalorder %s12766_s9, %s12303_s22  ;;  %p12307_p0 = scmp.lt.u32.totalorder %s12303_s22, %s12766_s9 }
 0x805   :  { %p12309_p1 = pnand %p12307_p0, %p12304_p13 }
 0x807   :  { %12312 = shalt.err (!%p12309_p1)
}
 0x808   :  { %9017 = dma.vmem_to_hbm [thread:$0]  %s9015_s18, 32, %s12766_s9, [#allocation4]  }
 0x809   :  { %12323 = dma.done.wait [#allocation4], 32  }
 0x80a   :  { %12324 = vsyncadd [#allocation4], 4294967264 }
 0x80b   :  { %9021 = vsyncpa [#allocation3], 1 }
 0x80c   :  { %9022 = vsyncpa [#allocation6], 1 }
 0x80d   :  { %9023 = vsyncpa [#allocation9], 1 }
 0x80e   :  { %9024 = vsyncpa [#allocation12], 1 }
 0x80f   :  { %9025 = vsyncpa [#allocation15], 1 }
 0x810   :  { %9026 = vsyncpa [#allocation4], 1 }

</bundles_post_ra>
